<compile_context>
chip_gen: v5e
topology: v5e:2x2
jax: 0.10.0
libtpu: 0.0.40
codegen_flags: <defaults>
</compile_context>

<pallas_src>
import math
from functools import partial

import jax
import jax.numpy as jnp
from jax.experimental import pallas as pl
from jax.experimental.pallas import tpu as pltpu


# MXU operand dtype. bf16 engages the native v6e/v7x 256x256 MXU path (also supported on
# v5e's 128x128 MXU) and halves resident weight VMEM. Set to jnp.float32 if closer bit
# parity with the PyTorch reference is preferred over throughput.
MATMUL_DTYPE = jnp.bfloat16


# ----------------------------------------------------------------------------
# helpers
# ----------------------------------------------------------------------------
def get_slopes(n):
    def pow2(n):
        start = 2.0 ** (-2.0 ** -(math.log2(n) - 3))
        return [start * (start ** i) for i in range(n)]
    if math.log2(n).is_integer():
        return pow2(n)
    closest = 2 ** math.floor(math.log2(n))
    return pow2(closest) + get_slopes(2 * closest)[0::2][: n - closest]


def _mm(a, w):
    # matmul with operands cast to the (pre-cast) weight dtype, f32 accumulation.
    return jnp.dot(a.astype(w.dtype), w, preferred_element_type=jnp.float32)


_GELU_C = math.sqrt(2.0 / math.pi)


def _gelu_tanh(v):
    # tanh-based GELU (EUP slot). ~1e-3 relative difference vs PyTorch exact-erf F.gelu.
    # TODO(synk): switch to lax.erf if exact-erf bit parity is required and it lowers in Mosaic.
    return 0.5 * v * (1.0 + jnp.tanh(_GELU_C * (v + 0.044715 * (v * v * v))))


def _leaky_bn(z, aux):
    # LeakyReLU(0.2) then eval-mode BatchNorm1d folded to scale/shift (aux rows: b, scale, shift)
    z = jnp.where(z > 0, z, 0.2 * z)
    return z * aux[1:2] + aux[2:3]


def _layer_norm(v, g, b):
    mu = jnp.mean(v, axis=-1, keepdims=True)
    var = jnp.mean((v - mu) ** 2, axis=-1, keepdims=True)
    return (v - mu) * jax.lax.rsqrt(var + 1e-5) * g + b


# ----------------------------------------------------------------------------
# fused Pallas kernel (TB batch elements per grid step)
# ----------------------------------------------------------------------------
def _fused_encoder_kernel(x4_ref,
                          wc1_ref, aux1_ref, wc2_ref, aux2_ref,
                          wemb_ref, bemb_ref,
                          wq_ref, bq_ref, wk_ref, bk_ref, wv_ref, bv_ref,
                          wo_ref, bo_ref, ln1_ref,
                          wff1_ref, bff1_ref, wff2_ref, bff2_ref, ln2_ref,
                          o_ref, hpe_ref, hpo_ref,
                          *, num_heads, head_dim, num_layers, slopes):
    TB, S, H = o_ref.shape                 # batch block, sequence length, hidden size
    M = TB * S                             # rows folded into the matmul M dimension
    aux1 = aux1_ref[...]
    aux2 = aux2_ref[...]

    def conv5(rows, w_ref, bias_row):      # 5 accumulated (M, Cin) x (Cin, Cout) matmuls
        acc = _mm(rows[0], w_ref[0]) + bias_row
        for t in range(1, 5):
            acc = acc + _mm(rows[t], w_ref[t])
        return acc

    # ---- squasher block 0: Conv1d(k=5, stride=2, replicate pad=2) + LeakyReLU + BN ----------
    # x4[b, j, s, :] == x_padded[b, 4*s + j, :]; outputs produced as even/odd phase rows so
    # the stride-2 conv and the later MaxPool reduce to static slices + matmuls.
    x4 = x4_ref[...]                        # (TB, 4, Sp, Cin)
    Cin = x4.shape[-1]

    def tap(phase, d):
        return x4[:, phase, d:d + S, :].reshape(M, Cin)

    e1 = conv5([tap(0, 0), tap(1, 0), tap(2, 0), tap(3, 0), tap(0, 1)], wc1_ref, aux1[0:1])
    o1 = conv5([tap(2, 0), tap(3, 0), tap(0, 1), tap(1, 1), tap(2, 1)], wc1_ref, aux1[0:1])
    h1e = _leaky_bn(e1, aux1).reshape(TB, S, H)     # rows 0,2,4,... of block-0 output
    h1o = _leaky_bn(o1, aux1).reshape(TB, S, H)     # rows 1,3,5,...

    # ---- squasher block 1: Conv1d(k=5, stride=1, replicate pad=2) + LeakyReLU + BN + MaxPool(2)
    # Replicate-padded even/odd row sequences live in an 8-row aligned VMEM scratch.
    hpe_ref[:, 1:S + 1, :] = h1e
    hpe_ref[:, 0:1, :] = h1e[:, 0:1, :]
    hpe_ref[:, S + 1:S + 2, :] = h1o[:, S - 1:S, :]
    hpo_ref[:, 1:S + 1, :] = h1o
    hpo_ref[:, 0:1, :] = h1e[:, 0:1, :]
    hpo_ref[:, S + 1:S + 2, :] = h1o[:, S - 1:S, :]

    def pe(d):
        return hpe_ref[:, d:d + S, :].reshape(M, H)

    def po(d):
        return hpo_ref[:, d:d + S, :].reshape(M, H)

    ve = conv5([pe(0), po(0), pe(1), po(1), pe(2)], wc2_ref, aux2[0:1])
    vo = conv5([po(0), pe(1), po(1), pe(2), po(2)], wc2_ref, aux2[0:1])
    h2 = jnp.maximum(_leaky_bn(ve, aux2), _leaky_bn(vo, aux2))      # MaxPool1d(2)

    # ---- LinearEmbedding(hidden, hidden) ----------------------------------------------------
    h = _mm(h2, wemb_ref[...]) + bemb_ref[...]                      # (M, H)

    # ---- ALiBi bias, hoisted out of the layer loop (scale is folded into Wq in the wrapper) --
    ii = jax.lax.broadcasted_iota(jnp.int32, (S, S), 0)
    jj = jax.lax.broadcasted_iota(jnp.int32, (S, S), 1)
    dist = jnp.abs(ii - jj).astype(jnp.float32)
    # TODO(synk): assumes init_alibi_biased_mask_future builds the symmetric -slope*|i-j| bias.
    alibi = [(-slopes[hh]) * dist for hh in range(num_heads)]       # nh x (S, S), built once

    # ---- TransformerEncoder (batch_first, post-norm, gelu, eval-mode dropout) ----------------
    # TODO(synk): for large num_layers, switch to lax.fori_loop with dynamic leading-dim ref
    # indexing, or stream per-layer weights over an 'arbitrary' grid axis (needed on v7x's
    # 64 MiB VMEM for production-sized models).
    for l in range(num_layers):
        xl = h
        attn = jnp.zeros((M, H), jnp.float32)
        for hh in range(num_heads):
            q = _mm(xl, wq_ref[l, hh]) + bq_ref[l, hh]              # (M, hd), pre-scaled
            k = _mm(xl, wk_ref[l, hh]) + bk_ref[l, hh]
            v = _mm(xl, wv_ref[l, hh]) + bv_ref[l, hh]
            q3 = q.reshape(TB, S, head_dim).astype(MATMUL_DTYPE)
            k3 = k.reshape(TB, S, head_dim).astype(MATMUL_DTYPE)
            v3 = v.reshape(TB, S, head_dim).astype(MATMUL_DTYPE)
            s = jnp.einsum('bqd,bkd->bqk', q3, k3,
                           preferred_element_type=jnp.float32)      # per-sequence scores
            s = s + alibi[hh]                                       # additive ALiBi bias
            s = s - jnp.max(s, axis=-1, keepdims=True)
            e = jnp.exp(s)
            p = e * pl.reciprocal(jnp.sum(e, axis=-1, keepdims=True), approx=True)
            ctx = jnp.einsum('bqk,bkd->bqd', p.astype(MATMUL_DTYPE), v3,
                             preferred_element_type=jnp.float32)
            # accumulate this head directly through its out-projection slice (no concat):
            attn = attn + _mm(ctx.reshape(M, head_dim), wo_ref[l, hh])
        attn = attn + bo_ref[l]
        ln1 = ln1_ref[l]
        y = _layer_norm(xl + attn, ln1[0:1], ln1[1:2])              # norm1 (post-norm)
        ff = _gelu_tanh(_mm(y, wff1_ref[l]) + bff1_ref[l])
        ff = _mm(ff, wff2_ref[l]) + bff2_ref[l]
        ln2 = ln2_ref[l]
        h = _layer_norm(y + ff, ln2[0:1], ln2[1:2])                 # norm2

    o_ref[...] = h.reshape(TB, S, H)


# ----------------------------------------------------------------------------
# wrapper: parameter packing + single pallas_call
# ----------------------------------------------------------------------------
def transformer_encoder_forward(x, squasher_params, emb_w, emb_b, layer_params, num_heads,
                                block_batch=None):
    """Eval-mode forward of TransformerEncoder fused into a single pallas_call."""
    assert len(squasher_params) == 2, "fused squasher path is specialized to quant_factor=2"
    # TODO(synk): generalize the fused squasher phase decomposition to arbitrary quant_factor.
    B, T_in, Cin = x.shape
    assert T_in % 4 == 0
    H = emb_w.shape[0]
    L = len(layer_params)
    S = T_in // 4                       # sequence length after the squasher
    Sp = S + 1
    assert H % num_heads == 0
    head_dim = H // num_heads
    slopes = tuple(float(v) for v in get_slopes(num_heads))

    # Batch blocking: fold TB batch elements into the matmul M dimension per grid step.
    # Target ~256 rows (fills a v6e/v7x MXU push; >=128 already saturates v5e).
    if block_batch is None:
        block_batch = 1
        for tb in range(1, B + 1):
            if B % tb == 0 and tb * S <= 256:
                block_batch = tb
    TB = block_batch
    assert B % TB == 0

    f32 = lambda a: jnp.asarray(a, jnp.float32)
    mmt = lambda a: jnp.asarray(a, MATMUL_DTYPE)

    # Replicate-pad (pad=2) and split the padded time axis into its 4 phases
    # (zero duplication: T_in+4 rows -> 4 x (T_in//4 + 1) rows; no im2col).
    xp = jnp.concatenate([jnp.repeat(x[:, :1], 2, axis=1), x,
                          jnp.repeat(x[:, -1:], 2, axis=1)], axis=1)
    x4 = f32(xp).reshape(B, Sp, 4, Cin).transpose(0, 2, 1, 3)       # (B, 4, Sp, Cin)

    def conv_pack(p):
        w = mmt(jnp.transpose(f32(p["w"]), (2, 1, 0)))              # (K, Cin, Cout), tap-major
        scale = f32(p["gamma"]) / jnp.sqrt(f32(p["var"]) + 1e-5)    # BN(eval) folded
        shift = f32(p["beta"]) - f32(p["mean"]) * scale
        aux = jnp.stack([f32(p["b"]), scale, shift])                # (3, Cout): bias/scale/shift
        return w, aux

    wc1, aux1 = conv_pack(squasher_params[0])
    wc2, aux2 = conv_pack(squasher_params[1])

    scale = 1.0 / math.sqrt(head_dim)

    def split_heads_in(w_rows, b_rows, mul=1.0):
        # PyTorch in_proj rows (H_out, H_in) -> per-head right-multiply form
        wt = f32(w_rows).T * mul                                    # (H_in, H_out)
        wh = jnp.transpose(wt.reshape(H, num_heads, head_dim), (1, 0, 2))   # (nh, H, hd)
        bh = (f32(b_rows) * mul).reshape(num_heads, 1, head_dim)            # (nh, 1, hd)
        return wh, bh

    wq_l, bq_l, wk_l, bk_l, wv_l, bv_l, wo_l = [], [], [], [], [], [], []
    for p in layer_params:
        wqkv, bqkv = f32(p["wqkv"]), f32(p["bqkv"])
        q_w, q_b = split_heads_in(wqkv[0:H], bqkv[0:H], mul=scale)  # fold 1/sqrt(hd) into Q
        k_w, k_b = split_heads_in(wqkv[H:2 * H], bqkv[H:2 * H])
        v_w, v_b = split_heads_in(wqkv[2 * H:3 * H], bqkv[2 * H:3 * H])
        o_w = f32(p["wo"]).T.reshape(num_heads, head_dim, H)        # (nh, hd, H)
        wq_l.append(q_w); bq_l.append(q_b); wk_l.append(k_w); bk_l.append(k_b)
        wv_l.append(v_w); bv_l.append(v_b); wo_l.append(o_w)

    wq = mmt(jnp.stack(wq_l)); bq = jnp.stack(bq_l)                 # (L, nh, H, hd) / (L, nh, 1, hd)
    wk = mmt(jnp.stack(wk_l)); bk = jnp.stack(bk_l)
    wv = mmt(jnp.stack(wv_l)); bv = jnp.stack(bv_l)
    wo = mmt(jnp.stack(wo_l))                                       # (L, nh, hd, H)
    bo = jnp.stack([f32(p["bo"]).reshape(1, H) for p in layer_params])
    ln1 = jnp.stack([jnp.stack([f32(p["g1"]), f32(p["be1"])]) for p in layer_params])
    w1 = mmt(jnp.stack([f32(p["w1"]).T for p in layer_params]))     # (L, H, F)
    b1 = jnp.stack([f32(p["b1"]).reshape(1, -1) for p in layer_params])
    w2 = mmt(jnp.stack([f32(p["w2"]).T for p in layer_params]))     # (L, F, H)
    b2 = jnp.stack([f32(p["b2"]).reshape(1, -1) for p in layer_params])
    ln2 = jnp.stack([jnp.stack([f32(p["g2"]), f32(p["be2"])]) for p in layer_params])

    weights = (wc1, aux1, wc2, aux2,
               mmt(f32(emb_w).T), f32(emb_b).reshape(1, H),
               wq, bq, wk, bk, wv, bv, wo, bo, ln1, w1, b1, w2, b2, ln2)

    def rep(a):
        # Grid-invariant weight block (constant index_map) -> fetched once, stays resident.
        # TODO(synk): add pipeline_mode single-buffering + explicit vmem_limit_bytes (and
        # per-layer weight streaming on v7x) once the weight set outgrows the scoped-VMEM limit.
        n = a.ndim
        return pl.BlockSpec(a.shape, lambda b, _n=n: (0,) * _n)

    pad_rows = ((S + 2 + 7) // 8) * 8       # 8-row aligned scratch for the padded conv-1 input

    kern = partial(_fused_encoder_kernel, num_heads=num_heads, head_dim=head_dim,
                   num_layers=L, slopes=slopes)
    return pl.pallas_call(
        kern,
        out_shape=jax.ShapeDtypeStruct((B, S, H), jnp.float32),
        grid=(B // TB,),
        in_specs=[pl.BlockSpec((TB, 4, Sp, Cin), lambda b: (b, 0, 0, 0))]
                 + [rep(w) for w in weights],
        out_specs=pl.BlockSpec((TB, S, H), lambda b: (b, 0, 0)),
        scratch_shapes=[pltpu.VMEM((TB, pad_rows, H), jnp.float32),
                        pltpu.VMEM((TB, pad_rows, H), jnp.float32)],
        compiler_params=pltpu.CompilerParams(dimension_semantics=("parallel",)),
    )(x4, *weights)


# ----------------------------------------------------------------------------
# main
# ----------------------------------------------------------------------------
if __name__ == "__main__":
    key = jax.random.PRNGKey(0)
    B, T_in = 2, 32
    in_dim, hidden, ffn = 8, 32, 64
    n_heads, n_layers = 4, 2
    quant_factor = 2

    keys = iter(jax.random.split(key, 64))

    def nrm(shape, scale=0.1):
        return (scale * jax.random.normal(next(keys), shape)).astype(jnp.float32)

    # squasher parameters (Conv1d(C_in->hidden, k=5) + BN per block)
    squasher = []
    c_in = in_dim
    for _ in range(quant_factor):
        squasher.append(dict(
            w=nrm((hidden, c_in, 5), 0.2),
            b=nrm((hidden,), 0.1),
            gamma=1.0 + nrm((hidden,), 0.1),
            beta=nrm((hidden,), 0.1),
            mean=nrm((hidden,), 0.1),
            var=1.0 + jnp.abs(nrm((hidden,), 0.1)),
        ))
        c_in = hidden

    # LinearEmbedding(hidden, hidden)
    emb_w = nrm((hidden, hidden), 0.1)
    emb_b = nrm((hidden,), 0.1)

    # TransformerEncoder layers (MHA in_proj/out_proj, FFN, LayerNorms)
    layers = []
    for _ in range(n_layers):
        layers.append(dict(
            wqkv=nrm((3 * hidden, hidden), 0.1), bqkv=nrm((3 * hidden,), 0.05),
            wo=nrm((hidden, hidden), 0.1), bo=nrm((hidden,), 0.05),
            g1=1.0 + nrm((hidden,), 0.05), be1=nrm((hidden,), 0.05),
            w1=nrm((ffn, hidden), 0.1), b1=nrm((ffn,), 0.05),
            w2=nrm((hidden, ffn), 0.1), b2=nrm((hidden,), 0.05),
            g2=1.0 + nrm((hidden,), 0.05), be2=nrm((hidden,), 0.05),
        ))

    x = jax.random.normal(next(keys), (B, T_in, in_dim)).astype(jnp.float32)

    out = transformer_encoder_forward(x, squasher, emb_w, emb_b, layers, n_heads)
    out = jax.block_until_ready(out)
    assert out.shape == (B, T_in // (2 ** quant_factor), hidden), out.shape
    assert bool(jnp.all(jnp.isfinite(out)))
    print("KERNEL_OK")
</pallas_src>

<mosaic_0001>
module attributes {stable_mosaic.version = 11 : i64} {
  func.func @_fused_encoder_kernel(%arg0: i32, %arg1: memref<2x4x9x8xf32, #tpu.memory_space<vmem>>, %arg2: memref<5x8x32xbf16, #tpu.memory_space<vmem>>, %arg3: memref<3x32xf32, #tpu.memory_space<vmem>>, %arg4: memref<5x32x32xbf16, #tpu.memory_space<vmem>>, %arg5: memref<3x32xf32, #tpu.memory_space<vmem>>, %arg6: memref<32x32xbf16, #tpu.memory_space<vmem>>, %arg7: memref<1x32xf32, #tpu.memory_space<vmem>>, %arg8: memref<2x4x32x8xbf16, #tpu.memory_space<vmem>>, %arg9: memref<2x4x1x8xf32, #tpu.memory_space<vmem>>, %arg10: memref<2x4x32x8xbf16, #tpu.memory_space<vmem>>, %arg11: memref<2x4x1x8xf32, #tpu.memory_space<vmem>>, %arg12: memref<2x4x32x8xbf16, #tpu.memory_space<vmem>>, %arg13: memref<2x4x1x8xf32, #tpu.memory_space<vmem>>, %arg14: memref<2x4x8x32xbf16, #tpu.memory_space<vmem>>, %arg15: memref<2x1x32xf32, #tpu.memory_space<vmem>>, %arg16: memref<2x2x32xf32, #tpu.memory_space<vmem>>, %arg17: memref<2x32x64xbf16, #tpu.memory_space<vmem>>, %arg18: memref<2x1x64xf32, #tpu.memory_space<vmem>>, %arg19: memref<2x64x32xbf16, #tpu.memory_space<vmem>>, %arg20: memref<2x1x32xf32, #tpu.memory_space<vmem>>, %arg21: memref<2x2x32xf32, #tpu.memory_space<vmem>>, %arg22: memref<2x8x32xf32, #tpu.memory_space<vmem>>, %arg23: memref<2x16x32xf32, #tpu.memory_space<vmem>>, %arg24: memref<2x16x32xf32, #tpu.memory_space<vmem>>) attributes {dimension_semantics = [#tpu.dimension_semantics<parallel>], iteration_bounds = array<i64: 1>, scalar_prefetch = 0 : i64, scratch_operands = 2 : i64, tpu.core_type = #tpu.core_type<tc>, window_params = [{transform_indices = @transform_0, window_bounds = array<i64: 2, 4, 9, 8>}, {pipeline_mode = #tpu.pipeline_mode<synchronous>, transform_indices = @transform_1, window_bounds = array<i64: 5, 8, 32>}, {pipeline_mode = #tpu.pipeline_mode<synchronous>, transform_indices = @transform_2, window_bounds = array<i64: 3, 32>}, {pipeline_mode = #tpu.pipeline_mode<synchronous>, transform_indices = @transform_3, window_bounds = array<i64: 5, 32, 32>}, {pipeline_mode = #tpu.pipeline_mode<synchronous>, transform_indices = @transform_4, window_bounds = array<i64: 3, 32>}, {pipeline_mode = #tpu.pipeline_mode<synchronous>, transform_indices = @transform_5, window_bounds = array<i64: 32, 32>}, {pipeline_mode = #tpu.pipeline_mode<synchronous>, transform_indices = @transform_6, window_bounds = array<i64: 1, 32>}, {pipeline_mode = #tpu.pipeline_mode<synchronous>, transform_indices = @transform_7, window_bounds = array<i64: 2, 4, 32, 8>}, {pipeline_mode = #tpu.pipeline_mode<synchronous>, transform_indices = @transform_8, window_bounds = array<i64: 2, 4, 1, 8>}, {pipeline_mode = #tpu.pipeline_mode<synchronous>, transform_indices = @transform_9, window_bounds = array<i64: 2, 4, 32, 8>}, {pipeline_mode = #tpu.pipeline_mode<synchronous>, transform_indices = @transform_10, window_bounds = array<i64: 2, 4, 1, 8>}, {pipeline_mode = #tpu.pipeline_mode<synchronous>, transform_indices = @transform_11, window_bounds = array<i64: 2, 4, 32, 8>}, {pipeline_mode = #tpu.pipeline_mode<synchronous>, transform_indices = @transform_12, window_bounds = array<i64: 2, 4, 1, 8>}, {pipeline_mode = #tpu.pipeline_mode<synchronous>, transform_indices = @transform_13, window_bounds = array<i64: 2, 4, 8, 32>}, {pipeline_mode = #tpu.pipeline_mode<synchronous>, transform_indices = @transform_14, window_bounds = array<i64: 2, 1, 32>}, {pipeline_mode = #tpu.pipeline_mode<synchronous>, transform_indices = @transform_15, window_bounds = array<i64: 2, 2, 32>}, {pipeline_mode = #tpu.pipeline_mode<synchronous>, transform_indices = @transform_16, window_bounds = array<i64: 2, 32, 64>}, {pipeline_mode = #tpu.pipeline_mode<synchronous>, transform_indices = @transform_17, window_bounds = array<i64: 2, 1, 64>}, {pipeline_mode = #tpu.pipeline_mode<synchronous>, transform_indices = @transform_18, window_bounds = array<i64: 2, 64, 32>}, {pipeline_mode = #tpu.pipeline_mode<synchronous>, transform_indices = @transform_19, window_bounds = array<i64: 2, 1, 32>}, {pipeline_mode = #tpu.pipeline_mode<synchronous>, transform_indices = @transform_20, window_bounds = array<i64: 2, 2, 32>}, {transform_indices = @transform_21, window_bounds = array<i64: 2, 8, 32>}]} {
    %c0 = arith.constant 0 : index
    %c0_0 = arith.constant 0 : index
    %0 = vector.load %arg3[%c0, %c0_0] : memref<3x32xf32, #tpu.memory_space<vmem>>, vector<3x32xf32>
    %c0_1 = arith.constant 0 : index
    %c0_2 = arith.constant 0 : index
    %1 = vector.load %arg5[%c0_1, %c0_2] : memref<3x32xf32, #tpu.memory_space<vmem>>, vector<3x32xf32>
    %c0_3 = arith.constant 0 : index
    %c0_4 = arith.constant 0 : index
    %c0_5 = arith.constant 0 : index
    %c0_6 = arith.constant 0 : index
    %2 = vector.load %arg1[%c0_3, %c0_4, %c0_5, %c0_6] : memref<2x4x9x8xf32, #tpu.memory_space<vmem>>, vector<2x4x9x8xf32>
    %3 = vector.extract_strided_slice %2 {offsets = [0, 0, 0, 0], sizes = [2, 1, 8, 8], strides = [1, 1, 1, 1]} : vector<2x4x9x8xf32> to vector<2x1x8x8xf32>
    %4 = vector.shape_cast %3 : vector<2x1x8x8xf32> to vector<2x8x8xf32>
    %5 = vector.shape_cast %4 : vector<2x8x8xf32> to vector<16x8xf32>
    %6 = vector.extract_strided_slice %2 {offsets = [0, 1, 0, 0], sizes = [2, 1, 8, 8], strides = [1, 1, 1, 1]} : vector<2x4x9x8xf32> to vector<2x1x8x8xf32>
    %7 = vector.shape_cast %6 : vector<2x1x8x8xf32> to vector<2x8x8xf32>
    %8 = vector.shape_cast %7 : vector<2x8x8xf32> to vector<16x8xf32>
    %9 = vector.extract_strided_slice %2 {offsets = [0, 2, 0, 0], sizes = [2, 1, 8, 8], strides = [1, 1, 1, 1]} : vector<2x4x9x8xf32> to vector<2x1x8x8xf32>
    %10 = vector.shape_cast %9 : vector<2x1x8x8xf32> to vector<2x8x8xf32>
    %11 = vector.shape_cast %10 : vector<2x8x8xf32> to vector<16x8xf32>
    %12 = vector.extract_strided_slice %2 {offsets = [0, 3, 0, 0], sizes = [2, 1, 8, 8], strides = [1, 1, 1, 1]} : vector<2x4x9x8xf32> to vector<2x1x8x8xf32>
    %13 = vector.shape_cast %12 : vector<2x1x8x8xf32> to vector<2x8x8xf32>
    %14 = vector.shape_cast %13 : vector<2x8x8xf32> to vector<16x8xf32>
    %15 = vector.extract_strided_slice %2 {offsets = [0, 0, 1, 0], sizes = [2, 1, 8, 8], strides = [1, 1, 1, 1]} : vector<2x4x9x8xf32> to vector<2x1x8x8xf32>
    %16 = vector.shape_cast %15 : vector<2x1x8x8xf32> to vector<2x8x8xf32>
    %17 = vector.shape_cast %16 : vector<2x8x8xf32> to vector<16x8xf32>
    %18 = vector.extract_strided_slice %0 {offsets = [0, 0], sizes = [1, 32], strides = [1, 1]} : vector<3x32xf32> to vector<1x32xf32>
    %c0_7 = arith.constant 0 : index
    %c0_8 = arith.constant 0 : index
    %c0_9 = arith.constant 0 : index
    %19 = vector.load %arg2[%c0_7, %c0_8, %c0_9] : memref<5x8x32xbf16, #tpu.memory_space<vmem>>, vector<1x8x32xbf16>
    %20 = vector.shape_cast %19 : vector<1x8x32xbf16> to vector<8x32xbf16>
    %21 = arith.truncf %5 : vector<16x8xf32> to vector<16x8xbf16>
    %cst = arith.constant dense<0.000000e+00> : vector<16x32xf32>
    %22 = tpu.matmul %21, %20, %cst {dimension_numbers = #tpu.dot_dimension_numbers<[1], [0], [0], [1], [0, 0, 1, 1], [], []>} : vector<16x8xbf16>, vector<8x32xbf16>, vector<16x32xf32> -> vector<16x32xf32>
    %23 = vector.broadcast %18 : vector<1x32xf32> to vector<16x32xf32>
    %24 = arith.addf %22, %23 : vector<16x32xf32>
    %c1 = arith.constant 1 : index
    %c0_10 = arith.constant 0 : index
    %c0_11 = arith.constant 0 : index
    %25 = vector.load %arg2[%c1, %c0_10, %c0_11] : memref<5x8x32xbf16, #tpu.memory_space<vmem>>, vector<1x8x32xbf16>
    %26 = vector.shape_cast %25 : vector<1x8x32xbf16> to vector<8x32xbf16>
    %27 = arith.truncf %8 : vector<16x8xf32> to vector<16x8xbf16>
    %cst_12 = arith.constant dense<0.000000e+00> : vector<16x32xf32>
    %28 = tpu.matmul %27, %26, %cst_12 {dimension_numbers = #tpu.dot_dimension_numbers<[1], [0], [0], [1], [0, 0, 1, 1], [], []>} : vector<16x8xbf16>, vector<8x32xbf16>, vector<16x32xf32> -> vector<16x32xf32>
    %29 = arith.addf %24, %28 : vector<16x32xf32>
    %c2 = arith.constant 2 : index
    %c0_13 = arith.constant 0 : index
    %c0_14 = arith.constant 0 : index
    %30 = vector.load %arg2[%c2, %c0_13, %c0_14] : memref<5x8x32xbf16, #tpu.memory_space<vmem>>, vector<1x8x32xbf16>
    %31 = vector.shape_cast %30 : vector<1x8x32xbf16> to vector<8x32xbf16>
    %32 = arith.truncf %11 : vector<16x8xf32> to vector<16x8xbf16>
    %cst_15 = arith.constant dense<0.000000e+00> : vector<16x32xf32>
    %33 = tpu.matmul %32, %31, %cst_15 {dimension_numbers = #tpu.dot_dimension_numbers<[1], [0], [0], [1], [0, 0, 1, 1], [], []>} : vector<16x8xbf16>, vector<8x32xbf16>, vector<16x32xf32> -> vector<16x32xf32>
    %34 = arith.addf %29, %33 : vector<16x32xf32>
    %c3 = arith.constant 3 : index
    %c0_16 = arith.constant 0 : index
    %c0_17 = arith.constant 0 : index
    %35 = vector.load %arg2[%c3, %c0_16, %c0_17] : memref<5x8x32xbf16, #tpu.memory_space<vmem>>, vector<1x8x32xbf16>
    %36 = vector.shape_cast %35 : vector<1x8x32xbf16> to vector<8x32xbf16>
    %37 = arith.truncf %14 : vector<16x8xf32> to vector<16x8xbf16>
    %cst_18 = arith.constant dense<0.000000e+00> : vector<16x32xf32>
    %38 = tpu.matmul %37, %36, %cst_18 {dimension_numbers = #tpu.dot_dimension_numbers<[1], [0], [0], [1], [0, 0, 1, 1], [], []>} : vector<16x8xbf16>, vector<8x32xbf16>, vector<16x32xf32> -> vector<16x32xf32>
    %39 = arith.addf %34, %38 : vector<16x32xf32>
    %c4 = arith.constant 4 : index
    %c0_19 = arith.constant 0 : index
    %c0_20 = arith.constant 0 : index
    %40 = vector.load %arg2[%c4, %c0_19, %c0_20] : memref<5x8x32xbf16, #tpu.memory_space<vmem>>, vector<1x8x32xbf16>
    %41 = vector.shape_cast %40 : vector<1x8x32xbf16> to vector<8x32xbf16>
    %42 = arith.truncf %17 : vector<16x8xf32> to vector<16x8xbf16>
    %cst_21 = arith.constant dense<0.000000e+00> : vector<16x32xf32>
    %43 = tpu.matmul %42, %41, %cst_21 {dimension_numbers = #tpu.dot_dimension_numbers<[1], [0], [0], [1], [0, 0, 1, 1], [], []>} : vector<16x8xbf16>, vector<8x32xbf16>, vector<16x32xf32> -> vector<16x32xf32>
    %44 = arith.addf %39, %43 : vector<16x32xf32>
    %45 = vector.extract_strided_slice %2 {offsets = [0, 2, 0, 0], sizes = [2, 1, 8, 8], strides = [1, 1, 1, 1]} : vector<2x4x9x8xf32> to vector<2x1x8x8xf32>
    %46 = vector.shape_cast %45 : vector<2x1x8x8xf32> to vector<2x8x8xf32>
    %47 = vector.shape_cast %46 : vector<2x8x8xf32> to vector<16x8xf32>
    %48 = vector.extract_strided_slice %2 {offsets = [0, 3, 0, 0], sizes = [2, 1, 8, 8], strides = [1, 1, 1, 1]} : vector<2x4x9x8xf32> to vector<2x1x8x8xf32>
    %49 = vector.shape_cast %48 : vector<2x1x8x8xf32> to vector<2x8x8xf32>
    %50 = vector.shape_cast %49 : vector<2x8x8xf32> to vector<16x8xf32>
    %51 = vector.extract_strided_slice %2 {offsets = [0, 0, 1, 0], sizes = [2, 1, 8, 8], strides = [1, 1, 1, 1]} : vector<2x4x9x8xf32> to vector<2x1x8x8xf32>
    %52 = vector.shape_cast %51 : vector<2x1x8x8xf32> to vector<2x8x8xf32>
    %53 = vector.shape_cast %52 : vector<2x8x8xf32> to vector<16x8xf32>
    %54 = vector.extract_strided_slice %2 {offsets = [0, 1, 1, 0], sizes = [2, 1, 8, 8], strides = [1, 1, 1, 1]} : vector<2x4x9x8xf32> to vector<2x1x8x8xf32>
    %55 = vector.shape_cast %54 : vector<2x1x8x8xf32> to vector<2x8x8xf32>
    %56 = vector.shape_cast %55 : vector<2x8x8xf32> to vector<16x8xf32>
    %57 = vector.extract_strided_slice %2 {offsets = [0, 2, 1, 0], sizes = [2, 1, 8, 8], strides = [1, 1, 1, 1]} : vector<2x4x9x8xf32> to vector<2x1x8x8xf32>
    %58 = vector.shape_cast %57 : vector<2x1x8x8xf32> to vector<2x8x8xf32>
    %59 = vector.shape_cast %58 : vector<2x8x8xf32> to vector<16x8xf32>
    %60 = vector.extract_strided_slice %0 {offsets = [0, 0], sizes = [1, 32], strides = [1, 1]} : vector<3x32xf32> to vector<1x32xf32>
    %c0_22 = arith.constant 0 : index
    %c0_23 = arith.constant 0 : index
    %c0_24 = arith.constant 0 : index
    %61 = vector.load %arg2[%c0_22, %c0_23, %c0_24] : memref<5x8x32xbf16, #tpu.memory_space<vmem>>, vector<1x8x32xbf16>
    %62 = vector.shape_cast %61 : vector<1x8x32xbf16> to vector<8x32xbf16>
    %63 = arith.truncf %47 : vector<16x8xf32> to vector<16x8xbf16>
    %cst_25 = arith.constant dense<0.000000e+00> : vector<16x32xf32>
    %64 = tpu.matmul %63, %62, %cst_25 {dimension_numbers = #tpu.dot_dimension_numbers<[1], [0], [0], [1], [0, 0, 1, 1], [], []>} : vector<16x8xbf16>, vector<8x32xbf16>, vector<16x32xf32> -> vector<16x32xf32>
    %65 = vector.broadcast %60 : vector<1x32xf32> to vector<16x32xf32>
    %66 = arith.addf %64, %65 : vector<16x32xf32>
    %c1_26 = arith.constant 1 : index
    %c0_27 = arith.constant 0 : index
    %c0_28 = arith.constant 0 : index
    %67 = vector.load %arg2[%c1_26, %c0_27, %c0_28] : memref<5x8x32xbf16, #tpu.memory_space<vmem>>, vector<1x8x32xbf16>
    %68 = vector.shape_cast %67 : vector<1x8x32xbf16> to vector<8x32xbf16>
    %69 = arith.truncf %50 : vector<16x8xf32> to vector<16x8xbf16>
    %cst_29 = arith.constant dense<0.000000e+00> : vector<16x32xf32>
    %70 = tpu.matmul %69, %68, %cst_29 {dimension_numbers = #tpu.dot_dimension_numbers<[1], [0], [0], [1], [0, 0, 1, 1], [], []>} : vector<16x8xbf16>, vector<8x32xbf16>, vector<16x32xf32> -> vector<16x32xf32>
    %71 = arith.addf %66, %70 : vector<16x32xf32>
    %c2_30 = arith.constant 2 : index
    %c0_31 = arith.constant 0 : index
    %c0_32 = arith.constant 0 : index
    %72 = vector.load %arg2[%c2_30, %c0_31, %c0_32] : memref<5x8x32xbf16, #tpu.memory_space<vmem>>, vector<1x8x32xbf16>
    %73 = vector.shape_cast %72 : vector<1x8x32xbf16> to vector<8x32xbf16>
    %74 = arith.truncf %53 : vector<16x8xf32> to vector<16x8xbf16>
    %cst_33 = arith.constant dense<0.000000e+00> : vector<16x32xf32>
    %75 = tpu.matmul %74, %73, %cst_33 {dimension_numbers = #tpu.dot_dimension_numbers<[1], [0], [0], [1], [0, 0, 1, 1], [], []>} : vector<16x8xbf16>, vector<8x32xbf16>, vector<16x32xf32> -> vector<16x32xf32>
    %76 = arith.addf %71, %75 : vector<16x32xf32>
    %c3_34 = arith.constant 3 : index
    %c0_35 = arith.constant 0 : index
    %c0_36 = arith.constant 0 : index
    %77 = vector.load %arg2[%c3_34, %c0_35, %c0_36] : memref<5x8x32xbf16, #tpu.memory_space<vmem>>, vector<1x8x32xbf16>
    %78 = vector.shape_cast %77 : vector<1x8x32xbf16> to vector<8x32xbf16>
    %79 = arith.truncf %56 : vector<16x8xf32> to vector<16x8xbf16>
    %cst_37 = arith.constant dense<0.000000e+00> : vector<16x32xf32>
    %80 = tpu.matmul %79, %78, %cst_37 {dimension_numbers = #tpu.dot_dimension_numbers<[1], [0], [0], [1], [0, 0, 1, 1], [], []>} : vector<16x8xbf16>, vector<8x32xbf16>, vector<16x32xf32> -> vector<16x32xf32>
    %81 = arith.addf %76, %80 : vector<16x32xf32>
    %c4_38 = arith.constant 4 : index
    %c0_39 = arith.constant 0 : index
    %c0_40 = arith.constant 0 : index
    %82 = vector.load %arg2[%c4_38, %c0_39, %c0_40] : memref<5x8x32xbf16, #tpu.memory_space<vmem>>, vector<1x8x32xbf16>
    %83 = vector.shape_cast %82 : vector<1x8x32xbf16> to vector<8x32xbf16>
    %84 = arith.truncf %59 : vector<16x8xf32> to vector<16x8xbf16>
    %cst_41 = arith.constant dense<0.000000e+00> : vector<16x32xf32>
    %85 = tpu.matmul %84, %83, %cst_41 {dimension_numbers = #tpu.dot_dimension_numbers<[1], [0], [0], [1], [0, 0, 1, 1], [], []>} : vector<16x8xbf16>, vector<8x32xbf16>, vector<16x32xf32> -> vector<16x32xf32>
    %86 = arith.addf %81, %85 : vector<16x32xf32>
    %cst_42 = arith.constant 0.000000e+00 : f32
    %87 = vector.broadcast %cst_42 : f32 to vector<16x32xf32>
    %88 = arith.cmpf ogt, %44, %87 : vector<16x32xf32>
    %cst_43 = arith.constant 2.000000e-01 : f32
    %89 = vector.broadcast %cst_43 : f32 to vector<16x32xf32>
    %90 = arith.mulf %89, %44 : vector<16x32xf32>
    %91 = arith.select %88, %44, %90 : vector<16x32xi1>, vector<16x32xf32>
    %92 = vector.extract_strided_slice %0 {offsets = [1, 0], sizes = [1, 32], strides = [1, 1]} : vector<3x32xf32> to vector<1x32xf32>
    %93 = vector.broadcast %92 : vector<1x32xf32> to vector<16x32xf32>
    %94 = arith.mulf %91, %93 : vector<16x32xf32>
    %95 = vector.extract_strided_slice %0 {offsets = [2, 0], sizes = [1, 32], strides = [1, 1]} : vector<3x32xf32> to vector<1x32xf32>
    %96 = vector.broadcast %95 : vector<1x32xf32> to vector<16x32xf32>
    %97 = arith.addf %94, %96 : vector<16x32xf32>
    %98 = vector.shape_cast %97 : vector<16x32xf32> to vector<2x8x32xf32>
    %cst_44 = arith.constant 0.000000e+00 : f32
    %99 = vector.broadcast %cst_44 : f32 to vector<16x32xf32>
    %100 = arith.cmpf ogt, %86, %99 : vector<16x32xf32>
    %cst_45 = arith.constant 2.000000e-01 : f32
    %101 = vector.broadcast %cst_45 : f32 to vector<16x32xf32>
    %102 = arith.mulf %101, %86 : vector<16x32xf32>
    %103 = arith.select %100, %86, %102 : vector<16x32xi1>, vector<16x32xf32>
    %104 = vector.extract_strided_slice %0 {offsets = [1, 0], sizes = [1, 32], strides = [1, 1]} : vector<3x32xf32> to vector<1x32xf32>
    %105 = vector.broadcast %104 : vector<1x32xf32> to vector<16x32xf32>
    %106 = arith.mulf %103, %105 : vector<16x32xf32>
    %107 = vector.extract_strided_slice %0 {offsets = [2, 0], sizes = [1, 32], strides = [1, 1]} : vector<3x32xf32> to vector<1x32xf32>
    %108 = vector.broadcast %107 : vector<1x32xf32> to vector<16x32xf32>
    %109 = arith.addf %106, %108 : vector<16x32xf32>
    %110 = vector.shape_cast %109 : vector<16x32xf32> to vector<2x8x32xf32>
    %c0_46 = arith.constant 0 : index
    %c1_47 = arith.constant 1 : index
    %c0_48 = arith.constant 0 : index
    %111 = vector.load %arg23[%c0_46, %c1_47, %c0_48] : memref<2x16x32xf32, #tpu.memory_space<vmem>>, vector<2x8x32xf32>
    tpu.vector_store %arg23[%c0_46, %c1_47, %c0_48], %98 {strides = array<i32>} : memref<2x16x32xf32, #tpu.memory_space<vmem>>, vector<2x8x32xf32>,
    %112 = vector.extract_strided_slice %98 {offsets = [0, 0, 0], sizes = [2, 1, 32], strides = [1, 1, 1]} : vector<2x8x32xf32> to vector<2x1x32xf32>
    %c0_49 = arith.constant 0 : index
    %c0_50 = arith.constant 0 : index
    %c0_51 = arith.constant 0 : index
    %113 = vector.load %arg23[%c0_49, %c0_50, %c0_51] : memref<2x16x32xf32, #tpu.memory_space<vmem>>, vector<2x1x32xf32>
    tpu.vector_store %arg23[%c0_49, %c0_50, %c0_51], %112 {strides = array<i32>} : memref<2x16x32xf32, #tpu.memory_space<vmem>>, vector<2x1x32xf32>,
    %114 = vector.extract_strided_slice %110 {offsets = [0, 7, 0], sizes = [2, 1, 32], strides = [1, 1, 1]} : vector<2x8x32xf32> to vector<2x1x32xf32>
    %c0_52 = arith.constant 0 : index
    %c9 = arith.constant 9 : index
    %c0_53 = arith.constant 0 : index
    %115 = vector.load %arg23[%c0_52, %c9, %c0_53] : memref<2x16x32xf32, #tpu.memory_space<vmem>>, vector<2x1x32xf32>
    tpu.vector_store %arg23[%c0_52, %c9, %c0_53], %114 {strides = array<i32>} : memref<2x16x32xf32, #tpu.memory_space<vmem>>, vector<2x1x32xf32>,
    %c0_54 = arith.constant 0 : index
    %c1_55 = arith.constant 1 : index
    %c0_56 = arith.constant 0 : index
    %116 = vector.load %arg24[%c0_54, %c1_55, %c0_56] : memref<2x16x32xf32, #tpu.memory_space<vmem>>, vector<2x8x32xf32>
    tpu.vector_store %arg24[%c0_54, %c1_55, %c0_56], %110 {strides = array<i32>} : memref<2x16x32xf32, #tpu.memory_space<vmem>>, vector<2x8x32xf32>,
    %117 = vector.extract_strided_slice %98 {offsets = [0, 0, 0], sizes = [2, 1, 32], strides = [1, 1, 1]} : vector<2x8x32xf32> to vector<2x1x32xf32>
    %c0_57 = arith.constant 0 : index
    %c0_58 = arith.constant 0 : index
    %c0_59 = arith.constant 0 : index
    %118 = vector.load %arg24[%c0_57, %c0_58, %c0_59] : memref<2x16x32xf32, #tpu.memory_space<vmem>>, vector<2x1x32xf32>
    tpu.vector_store %arg24[%c0_57, %c0_58, %c0_59], %117 {strides = array<i32>} : memref<2x16x32xf32, #tpu.memory_space<vmem>>, vector<2x1x32xf32>,
    %119 = vector.extract_strided_slice %110 {offsets = [0, 7, 0], sizes = [2, 1, 32], strides = [1, 1, 1]} : vector<2x8x32xf32> to vector<2x1x32xf32>
    %c0_60 = arith.constant 0 : index
    %c9_61 = arith.constant 9 : index
    %c0_62 = arith.constant 0 : index
    %120 = vector.load %arg24[%c0_60, %c9_61, %c0_62] : memref<2x16x32xf32, #tpu.memory_space<vmem>>, vector<2x1x32xf32>
    tpu.vector_store %arg24[%c0_60, %c9_61, %c0_62], %119 {strides = array<i32>} : memref<2x16x32xf32, #tpu.memory_space<vmem>>, vector<2x1x32xf32>,
    %c0_63 = arith.constant 0 : index
    %c0_64 = arith.constant 0 : index
    %c0_65 = arith.constant 0 : index
    %121 = vector.load %arg23[%c0_63, %c0_64, %c0_65] : memref<2x16x32xf32, #tpu.memory_space<vmem>>, vector<2x8x32xf32>
    %122 = vector.shape_cast %121 : vector<2x8x32xf32> to vector<16x32xf32>
    %c0_66 = arith.constant 0 : index
    %c0_67 = arith.constant 0 : index
    %c0_68 = arith.constant 0 : index
    %123 = vector.load %arg24[%c0_66, %c0_67, %c0_68] : memref<2x16x32xf32, #tpu.memory_space<vmem>>, vector<2x8x32xf32>
    %124 = vector.shape_cast %123 : vector<2x8x32xf32> to vector<16x32xf32>
    %c0_69 = arith.constant 0 : index
    %c1_70 = arith.constant 1 : index
    %c0_71 = arith.constant 0 : index
    %125 = vector.load %arg23[%c0_69, %c1_70, %c0_71] : memref<2x16x32xf32, #tpu.memory_space<vmem>>, vector<2x8x32xf32>
    %126 = vector.shape_cast %125 : vector<2x8x32xf32> to vector<16x32xf32>
    %c0_72 = arith.constant 0 : index
    %c1_73 = arith.constant 1 : index
    %c0_74 = arith.constant 0 : index
    %127 = vector.load %arg24[%c0_72, %c1_73, %c0_74] : memref<2x16x32xf32, #tpu.memory_space<vmem>>, vector<2x8x32xf32>
    %128 = vector.shape_cast %127 : vector<2x8x32xf32> to vector<16x32xf32>
    %c0_75 = arith.constant 0 : index
    %c2_76 = arith.constant 2 : index
    %c0_77 = arith.constant 0 : index
    %129 = vector.load %arg23[%c0_75, %c2_76, %c0_77] : memref<2x16x32xf32, #tpu.memory_space<vmem>>, vector<2x8x32xf32>
    %130 = vector.shape_cast %129 : vector<2x8x32xf32> to vector<16x32xf32>
    %131 = vector.extract_strided_slice %1 {offsets = [0, 0], sizes = [1, 32], strides = [1, 1]} : vector<3x32xf32> to vector<1x32xf32>
    %c0_78 = arith.constant 0 : index
    %c0_79 = arith.constant 0 : index
    %c0_80 = arith.constant 0 : index
    %132 = vector.load %arg4[%c0_78, %c0_79, %c0_80] : memref<5x32x32xbf16, #tpu.memory_space<vmem>>, vector<1x32x32xbf16>
    %133 = vector.shape_cast %132 : vector<1x32x32xbf16> to vector<32x32xbf16>
    %134 = arith.truncf %122 : vector<16x32xf32> to vector<16x32xbf16>
    %cst_81 = arith.constant dense<0.000000e+00> : vector<16x32xf32>
    %135 = tpu.matmul %134, %133, %cst_81 {dimension_numbers = #tpu.dot_dimension_numbers<[1], [0], [0], [1], [0, 0, 1, 1], [], []>} : vector<16x32xbf16>, vector<32x32xbf16>, vector<16x32xf32> -> vector<16x32xf32>
    %136 = vector.broadcast %131 : vector<1x32xf32> to vector<16x32xf32>
    %137 = arith.addf %135, %136 : vector<16x32xf32>
    %c1_82 = arith.constant 1 : index
    %c0_83 = arith.constant 0 : index
    %c0_84 = arith.constant 0 : index
    %138 = vector.load %arg4[%c1_82, %c0_83, %c0_84] : memref<5x32x32xbf16, #tpu.memory_space<vmem>>, vector<1x32x32xbf16>
    %139 = vector.shape_cast %138 : vector<1x32x32xbf16> to vector<32x32xbf16>
    %140 = arith.truncf %124 : vector<16x32xf32> to vector<16x32xbf16>
    %cst_85 = arith.constant dense<0.000000e+00> : vector<16x32xf32>
    %141 = tpu.matmul %140, %139, %cst_85 {dimension_numbers = #tpu.dot_dimension_numbers<[1], [0], [0], [1], [0, 0, 1, 1], [], []>} : vector<16x32xbf16>, vector<32x32xbf16>, vector<16x32xf32> -> vector<16x32xf32>
    %142 = arith.addf %137, %141 : vector<16x32xf32>
    %c2_86 = arith.constant 2 : index
    %c0_87 = arith.constant 0 : index
    %c0_88 = arith.constant 0 : index
    %143 = vector.load %arg4[%c2_86, %c0_87, %c0_88] : memref<5x32x32xbf16, #tpu.memory_space<vmem>>, vector<1x32x32xbf16>
    %144 = vector.shape_cast %143 : vector<1x32x32xbf16> to vector<32x32xbf16>
    %145 = arith.truncf %126 : vector<16x32xf32> to vector<16x32xbf16>
    %cst_89 = arith.constant dense<0.000000e+00> : vector<16x32xf32>
    %146 = tpu.matmul %145, %144, %cst_89 {dimension_numbers = #tpu.dot_dimension_numbers<[1], [0], [0], [1], [0, 0, 1, 1], [], []>} : vector<16x32xbf16>, vector<32x32xbf16>, vector<16x32xf32> -> vector<16x32xf32>
    %147 = arith.addf %142, %146 : vector<16x32xf32>
    %c3_90 = arith.constant 3 : index
    %c0_91 = arith.constant 0 : index
    %c0_92 = arith.constant 0 : index
    %148 = vector.load %arg4[%c3_90, %c0_91, %c0_92] : memref<5x32x32xbf16, #tpu.memory_space<vmem>>, vector<1x32x32xbf16>
    %149 = vector.shape_cast %148 : vector<1x32x32xbf16> to vector<32x32xbf16>
    %150 = arith.truncf %128 : vector<16x32xf32> to vector<16x32xbf16>
    %cst_93 = arith.constant dense<0.000000e+00> : vector<16x32xf32>
    %151 = tpu.matmul %150, %149, %cst_93 {dimension_numbers = #tpu.dot_dimension_numbers<[1], [0], [0], [1], [0, 0, 1, 1], [], []>} : vector<16x32xbf16>, vector<32x32xbf16>, vector<16x32xf32> -> vector<16x32xf32>
    %152 = arith.addf %147, %151 : vector<16x32xf32>
    %c4_94 = arith.constant 4 : index
    %c0_95 = arith.constant 0 : index
    %c0_96 = arith.constant 0 : index
    %153 = vector.load %arg4[%c4_94, %c0_95, %c0_96] : memref<5x32x32xbf16, #tpu.memory_space<vmem>>, vector<1x32x32xbf16>
    %154 = vector.shape_cast %153 : vector<1x32x32xbf16> to vector<32x32xbf16>
    %155 = arith.truncf %130 : vector<16x32xf32> to vector<16x32xbf16>
    %cst_97 = arith.constant dense<0.000000e+00> : vector<16x32xf32>
    %156 = tpu.matmul %155, %154, %cst_97 {dimension_numbers = #tpu.dot_dimension_numbers<[1], [0], [0], [1], [0, 0, 1, 1], [], []>} : vector<16x32xbf16>, vector<32x32xbf16>, vector<16x32xf32> -> vector<16x32xf32>
    %157 = arith.addf %152, %156 : vector<16x32xf32>
    %c0_98 = arith.constant 0 : index
    %c0_99 = arith.constant 0 : index
    %c0_100 = arith.constant 0 : index
    %158 = vector.load %arg24[%c0_98, %c0_99, %c0_100] : memref<2x16x32xf32, #tpu.memory_space<vmem>>, vector<2x8x32xf32>
    %159 = vector.shape_cast %158 : vector<2x8x32xf32> to vector<16x32xf32>
    %c0_101 = arith.constant 0 : index
    %c1_102 = arith.constant 1 : index
    %c0_103 = arith.constant 0 : index
    %160 = vector.load %arg23[%c0_101, %c1_102, %c0_103] : memref<2x16x32xf32, #tpu.memory_space<vmem>>, vector<2x8x32xf32>
    %161 = vector.shape_cast %160 : vector<2x8x32xf32> to vector<16x32xf32>
    %c0_104 = arith.constant 0 : index
    %c1_105 = arith.constant 1 : index
    %c0_106 = arith.constant 0 : index
    %162 = vector.load %arg24[%c0_104, %c1_105, %c0_106] : memref<2x16x32xf32, #tpu.memory_space<vmem>>, vector<2x8x32xf32>
    %163 = vector.shape_cast %162 : vector<2x8x32xf32> to vector<16x32xf32>
    %c0_107 = arith.constant 0 : index
    %c2_108 = arith.constant 2 : index
    %c0_109 = arith.constant 0 : index
    %164 = vector.load %arg23[%c0_107, %c2_108, %c0_109] : memref<2x16x32xf32, #tpu.memory_space<vmem>>, vector<2x8x32xf32>
    %165 = vector.shape_cast %164 : vector<2x8x32xf32> to vector<16x32xf32>
    %c0_110 = arith.constant 0 : index
    %c2_111 = arith.constant 2 : index
    %c0_112 = arith.constant 0 : index
    %166 = vector.load %arg24[%c0_110, %c2_111, %c0_112] : memref<2x16x32xf32, #tpu.memory_space<vmem>>, vector<2x8x32xf32>
    %167 = vector.shape_cast %166 : vector<2x8x32xf32> to vector<16x32xf32>
    %168 = vector.extract_strided_slice %1 {offsets = [0, 0], sizes = [1, 32], strides = [1, 1]} : vector<3x32xf32> to vector<1x32xf32>
    %c0_113 = arith.constant 0 : index
    %c0_114 = arith.constant 0 : index
    %c0_115 = arith.constant 0 : index
    %169 = vector.load %arg4[%c0_113, %c0_114, %c0_115] : memref<5x32x32xbf16, #tpu.memory_space<vmem>>, vector<1x32x32xbf16>
    %170 = vector.shape_cast %169 : vector<1x32x32xbf16> to vector<32x32xbf16>
    %171 = arith.truncf %159 : vector<16x32xf32> to vector<16x32xbf16>
    %cst_116 = arith.constant dense<0.000000e+00> : vector<16x32xf32>
    %172 = tpu.matmul %171, %170, %cst_116 {dimension_numbers = #tpu.dot_dimension_numbers<[1], [0], [0], [1], [0, 0, 1, 1], [], []>} : vector<16x32xbf16>, vector<32x32xbf16>, vector<16x32xf32> -> vector<16x32xf32>
    %173 = vector.broadcast %168 : vector<1x32xf32> to vector<16x32xf32>
    %174 = arith.addf %172, %173 : vector<16x32xf32>
    %c1_117 = arith.constant 1 : index
    %c0_118 = arith.constant 0 : index
    %c0_119 = arith.constant 0 : index
    %175 = vector.load %arg4[%c1_117, %c0_118, %c0_119] : memref<5x32x32xbf16, #tpu.memory_space<vmem>>, vector<1x32x32xbf16>
    %176 = vector.shape_cast %175 : vector<1x32x32xbf16> to vector<32x32xbf16>
    %177 = arith.truncf %161 : vector<16x32xf32> to vector<16x32xbf16>
    %cst_120 = arith.constant dense<0.000000e+00> : vector<16x32xf32>
    %178 = tpu.matmul %177, %176, %cst_120 {dimension_numbers = #tpu.dot_dimension_numbers<[1], [0], [0], [1], [0, 0, 1, 1], [], []>} : vector<16x32xbf16>, vector<32x32xbf16>, vector<16x32xf32> -> vector<16x32xf32>
    %179 = arith.addf %174, %178 : vector<16x32xf32>
    %c2_121 = arith.constant 2 : index
    %c0_122 = arith.constant 0 : index
    %c0_123 = arith.constant 0 : index
    %180 = vector.load %arg4[%c2_121, %c0_122, %c0_123] : memref<5x32x32xbf16, #tpu.memory_space<vmem>>, vector<1x32x32xbf16>
    %181 = vector.shape_cast %180 : vector<1x32x32xbf16> to vector<32x32xbf16>
    %182 = arith.truncf %163 : vector<16x32xf32> to vector<16x32xbf16>
    %cst_124 = arith.constant dense<0.000000e+00> : vector<16x32xf32>
    %183 = tpu.matmul %182, %181, %cst_124 {dimension_numbers = #tpu.dot_dimension_numbers<[1], [0], [0], [1], [0, 0, 1, 1], [], []>} : vector<16x32xbf16>, vector<32x32xbf16>, vector<16x32xf32> -> vector<16x32xf32>
    %184 = arith.addf %179, %183 : vector<16x32xf32>
    %c3_125 = arith.constant 3 : index
    %c0_126 = arith.constant 0 : index
    %c0_127 = arith.constant 0 : index
    %185 = vector.load %arg4[%c3_125, %c0_126, %c0_127] : memref<5x32x32xbf16, #tpu.memory_space<vmem>>, vector<1x32x32xbf16>
    %186 = vector.shape_cast %185 : vector<1x32x32xbf16> to vector<32x32xbf16>
    %187 = arith.truncf %165 : vector<16x32xf32> to vector<16x32xbf16>
    %cst_128 = arith.constant dense<0.000000e+00> : vector<16x32xf32>
    %188 = tpu.matmul %187, %186, %cst_128 {dimension_numbers = #tpu.dot_dimension_numbers<[1], [0], [0], [1], [0, 0, 1, 1], [], []>} : vector<16x32xbf16>, vector<32x32xbf16>, vector<16x32xf32> -> vector<16x32xf32>
    %189 = arith.addf %184, %188 : vector<16x32xf32>
    %c4_129 = arith.constant 4 : index
    %c0_130 = arith.constant 0 : index
    %c0_131 = arith.constant 0 : index
    %190 = vector.load %arg4[%c4_129, %c0_130, %c0_131] : memref<5x32x32xbf16, #tpu.memory_space<vmem>>, vector<1x32x32xbf16>
    %191 = vector.shape_cast %190 : vector<1x32x32xbf16> to vector<32x32xbf16>
    %192 = arith.truncf %167 : vector<16x32xf32> to vector<16x32xbf16>
    %cst_132 = arith.constant dense<0.000000e+00> : vector<16x32xf32>
    %193 = tpu.matmul %192, %191, %cst_132 {dimension_numbers = #tpu.dot_dimension_numbers<[1], [0], [0], [1], [0, 0, 1, 1], [], []>} : vector<16x32xbf16>, vector<32x32xbf16>, vector<16x32xf32> -> vector<16x32xf32>
    %194 = arith.addf %189, %193 : vector<16x32xf32>
    %cst_133 = arith.constant 0.000000e+00 : f32
    %195 = vector.broadcast %cst_133 : f32 to vector<16x32xf32>
    %196 = arith.cmpf ogt, %157, %195 : vector<16x32xf32>
    %cst_134 = arith.constant 2.000000e-01 : f32
    %197 = vector.broadcast %cst_134 : f32 to vector<16x32xf32>
    %198 = arith.mulf %197, %157 : vector<16x32xf32>
    %199 = arith.select %196, %157, %198 : vector<16x32xi1>, vector<16x32xf32>
    %200 = vector.extract_strided_slice %1 {offsets = [1, 0], sizes = [1, 32], strides = [1, 1]} : vector<3x32xf32> to vector<1x32xf32>
    %201 = vector.broadcast %200 : vector<1x32xf32> to vector<16x32xf32>
    %202 = arith.mulf %199, %201 : vector<16x32xf32>
    %203 = vector.extract_strided_slice %1 {offsets = [2, 0], sizes = [1, 32], strides = [1, 1]} : vector<3x32xf32> to vector<1x32xf32>
    %204 = vector.broadcast %203 : vector<1x32xf32> to vector<16x32xf32>
    %205 = arith.addf %202, %204 : vector<16x32xf32>
    %cst_135 = arith.constant 0.000000e+00 : f32
    %206 = vector.broadcast %cst_135 : f32 to vector<16x32xf32>
    %207 = arith.cmpf ogt, %194, %206 : vector<16x32xf32>
    %cst_136 = arith.constant 2.000000e-01 : f32
    %208 = vector.broadcast %cst_136 : f32 to vector<16x32xf32>
    %209 = arith.mulf %208, %194 : vector<16x32xf32>
    %210 = arith.select %207, %194, %209 : vector<16x32xi1>, vector<16x32xf32>
    %211 = vector.extract_strided_slice %1 {offsets = [1, 0], sizes = [1, 32], strides = [1, 1]} : vector<3x32xf32> to vector<1x32xf32>
    %212 = vector.broadcast %211 : vector<1x32xf32> to vector<16x32xf32>
    %213 = arith.mulf %210, %212 : vector<16x32xf32>
    %214 = vector.extract_strided_slice %1 {offsets = [2, 0], sizes = [1, 32], strides = [1, 1]} : vector<3x32xf32> to vector<1x32xf32>
    %215 = vector.broadcast %214 : vector<1x32xf32> to vector<16x32xf32>
    %216 = arith.addf %213, %215 : vector<16x32xf32>
    %217 = arith.maximumf %205, %216 : vector<16x32xf32>
    %c0_137 = arith.constant 0 : index
    %c0_138 = arith.constant 0 : index
    %218 = vector.load %arg6[%c0_137, %c0_138] : memref<32x32xbf16, #tpu.memory_space<vmem>>, vector<32x32xbf16>
    %219 = arith.truncf %217 : vector<16x32xf32> to vector<16x32xbf16>
    %cst_139 = arith.constant dense<0.000000e+00> : vector<16x32xf32>
    %220 = tpu.matmul %219, %218, %cst_139 {dimension_numbers = #tpu.dot_dimension_numbers<[1], [0], [0], [1], [0, 0, 1, 1], [], []>} : vector<16x32xbf16>, vector<32x32xbf16>, vector<16x32xf32> -> vector<16x32xf32>
    %c0_140 = arith.constant 0 : index
    %c0_141 = arith.constant 0 : index
    %221 = vector.load %arg7[%c0_140, %c0_141] : memref<1x32xf32, #tpu.memory_space<vmem>>, vector<1x32xf32>
    %222 = vector.broadcast %221 : vector<1x32xf32> to vector<16x32xf32>
    %223 = arith.addf %220, %222 : vector<16x32xf32>
    %224 = tpu.iota {dimensions = array<i32: 0>} : vector<8x8xi32>
    %225 = tpu.iota {dimensions = array<i32: 1>} : vector<8x8xi32>
    %226 = arith.subi %224, %225 : vector<8x8xi32>
    %227 = math.absi %226 : vector<8x8xi32>
    %228 = arith.sitofp %227 : vector<8x8xi32> to vector<8x8xf32>
    %cst_142 = arith.constant -2.500000e-01 : f32
    %229 = vector.broadcast %cst_142 : f32 to vector<8x8xf32>
    %230 = arith.mulf %229, %228 : vector<8x8xf32>
    %cst_143 = arith.constant -6.250000e-02 : f32
    %231 = vector.broadcast %cst_143 : f32 to vector<8x8xf32>
    %232 = arith.mulf %231, %228 : vector<8x8xf32>
    %cst_144 = arith.constant -1.562500e-02 : f32
    %233 = vector.broadcast %cst_144 : f32 to vector<8x8xf32>
    %234 = arith.mulf %233, %228 : vector<8x8xf32>
    %cst_145 = arith.constant -3.906250e-03 : f32
    %235 = vector.broadcast %cst_145 : f32 to vector<8x8xf32>
    %236 = arith.mulf %235, %228 : vector<8x8xf32>
    %cst_146 = arith.constant 0.000000e+00 : f32
    %237 = vector.broadcast %cst_146 : f32 to vector<16x32xf32>
    %c0_147 = arith.constant 0 : index
    %c0_148 = arith.constant 0 : index
    %c0_149 = arith.constant 0 : index
    %c0_150 = arith.constant 0 : index
    %238 = vector.load %arg8[%c0_147, %c0_148, %c0_149, %c0_150] : memref<2x4x32x8xbf16, #tpu.memory_space<vmem>>, vector<1x1x32x8xbf16>
    %239 = vector.shape_cast %238 : vector<1x1x32x8xbf16> to vector<32x8xbf16>
    %240 = arith.truncf %223 : vector<16x32xf32> to vector<16x32xbf16>
    %cst_151 = arith.constant dense<0.000000e+00> : vector<16x8xf32>
    %241 = tpu.matmul %240, %239, %cst_151 {dimension_numbers = #tpu.dot_dimension_numbers<[1], [0], [0], [1], [0, 0, 1, 1], [], []>} : vector<16x32xbf16>, vector<32x8xbf16>, vector<16x8xf32> -> vector<16x8xf32>
    %c0_152 = arith.constant 0 : index
    %c0_153 = arith.constant 0 : index
    %c0_154 = arith.constant 0 : index
    %c0_155 = arith.constant 0 : index
    %242 = vector.load %arg9[%c0_152, %c0_153, %c0_154, %c0_155] : memref<2x4x1x8xf32, #tpu.memory_space<vmem>>, vector<1x1x1x8xf32>
    %243 = vector.shape_cast %242 : vector<1x1x1x8xf32> to vector<1x8xf32>
    %244 = vector.broadcast %243 : vector<1x8xf32> to vector<16x8xf32>
    %245 = arith.addf %241, %244 : vector<16x8xf32>
    %c0_156 = arith.constant 0 : index
    %c0_157 = arith.constant 0 : index
    %c0_158 = arith.constant 0 : index
    %c0_159 = arith.constant 0 : index
    %246 = vector.load %arg10[%c0_156, %c0_157, %c0_158, %c0_159] : memref<2x4x32x8xbf16, #tpu.memory_space<vmem>>, vector<1x1x32x8xbf16>
    %247 = vector.shape_cast %246 : vector<1x1x32x8xbf16> to vector<32x8xbf16>
    %248 = arith.truncf %223 : vector<16x32xf32> to vector<16x32xbf16>
    %cst_160 = arith.constant dense<0.000000e+00> : vector<16x8xf32>
    %249 = tpu.matmul %248, %247, %cst_160 {dimension_numbers = #tpu.dot_dimension_numbers<[1], [0], [0], [1], [0, 0, 1, 1], [], []>} : vector<16x32xbf16>, vector<32x8xbf16>, vector<16x8xf32> -> vector<16x8xf32>
    %c0_161 = arith.constant 0 : index
    %c0_162 = arith.constant 0 : index
    %c0_163 = arith.constant 0 : index
    %c0_164 = arith.constant 0 : index
    %250 = vector.load %arg11[%c0_161, %c0_162, %c0_163, %c0_164] : memref<2x4x1x8xf32, #tpu.memory_space<vmem>>, vector<1x1x1x8xf32>
    %251 = vector.shape_cast %250 : vector<1x1x1x8xf32> to vector<1x8xf32>
    %252 = vector.broadcast %251 : vector<1x8xf32> to vector<16x8xf32>
    %253 = arith.addf %249, %252 : vector<16x8xf32>
    %c0_165 = arith.constant 0 : index
    %c0_166 = arith.constant 0 : index
    %c0_167 = arith.constant 0 : index
    %c0_168 = arith.constant 0 : index
    %254 = vector.load %arg12[%c0_165, %c0_166, %c0_167, %c0_168] : memref<2x4x32x8xbf16, #tpu.memory_space<vmem>>, vector<1x1x32x8xbf16>
    %255 = vector.shape_cast %254 : vector<1x1x32x8xbf16> to vector<32x8xbf16>
    %256 = arith.truncf %223 : vector<16x32xf32> to vector<16x32xbf16>
    %cst_169 = arith.constant dense<0.000000e+00> : vector<16x8xf32>
    %257 = tpu.matmul %256, %255, %cst_169 {dimension_numbers = #tpu.dot_dimension_numbers<[1], [0], [0], [1], [0, 0, 1, 1], [], []>} : vector<16x32xbf16>, vector<32x8xbf16>, vector<16x8xf32> -> vector<16x8xf32>
    %c0_170 = arith.constant 0 : index
    %c0_171 = arith.constant 0 : index
    %c0_172 = arith.constant 0 : index
    %c0_173 = arith.constant 0 : index
    %258 = vector.load %arg13[%c0_170, %c0_171, %c0_172, %c0_173] : memref<2x4x1x8xf32, #tpu.memory_space<vmem>>, vector<1x1x1x8xf32>
    %259 = vector.shape_cast %258 : vector<1x1x1x8xf32> to vector<1x8xf32>
    %260 = vector.broadcast %259 : vector<1x8xf32> to vector<16x8xf32>
    %261 = arith.addf %257, %260 : vector<16x8xf32>
    %262 = vector.shape_cast %245 : vector<16x8xf32> to vector<2x8x8xf32>
    %263 = arith.truncf %262 : vector<2x8x8xf32> to vector<2x8x8xbf16>
    %264 = vector.shape_cast %253 : vector<16x8xf32> to vector<2x8x8xf32>
    %265 = arith.truncf %264 : vector<2x8x8xf32> to vector<2x8x8xbf16>
    %266 = vector.shape_cast %261 : vector<16x8xf32> to vector<2x8x8xf32>
    %267 = arith.truncf %266 : vector<2x8x8xf32> to vector<2x8x8xbf16>
    "tpu.trace_start"() <{level = 10 : i32, message = "bqd,bkd->bqk"}> : () -> ()
    %cst_174 = arith.constant dense<0.000000e+00> : vector<2x8x8xf32>
    %268 = tpu.matmul %263, %265, %cst_174 {dimension_numbers = #tpu.dot_dimension_numbers<[2], [2], [1], [1], [0, 0, 0, 1, 1, 1], [0], [0]>} : vector<2x8x8xbf16>, vector<2x8x8xbf16>, vector<2x8x8xf32> -> vector<2x8x8xf32>
    "tpu.trace_stop"() : () -> ()
    %269 = vector.shape_cast %230 : vector<8x8xf32> to vector<1x8x8xf32>
    %270 = vector.broadcast %269 : vector<1x8x8xf32> to vector<2x8x8xf32>
    %271 = arith.addf %268, %270 : vector<2x8x8xf32>
    %cst_175 = arith.constant dense<0xFF800000> : vector<2x8xf32>
    %272 = vector.multi_reduction <maximumf>, %271, %cst_175 [2] : vector<2x8x8xf32> to vector<2x8xf32>
    %273 = vector.shape_cast %272 : vector<2x8xf32> to vector<2x8x1xf32>
    %274 = vector.broadcast %273 : vector<2x8x1xf32> to vector<2x8x8xf32>
    %275 = arith.subf %271, %274 : vector<2x8x8xf32>
    %276 = math.exp %275 : vector<2x8x8xf32>
    %cst_176 = arith.constant dense<0.000000e+00> : vector<2x8xf32>
    %277 = vector.multi_reduction <add>, %276, %cst_176 [2] : vector<2x8x8xf32> to vector<2x8xf32>
    %278 = vector.shape_cast %277 : vector<2x8xf32> to vector<2x8x1xf32>
    %279 = tpu.reciprocal %278 {approx = true} : vector<2x8x1xf32> -> vector<2x8x1xf32>
    %280 = vector.broadcast %279 : vector<2x8x1xf32> to vector<2x8x8xf32>
    %281 = arith.mulf %276, %280 : vector<2x8x8xf32>
    %282 = arith.truncf %281 : vector<2x8x8xf32> to vector<2x8x8xbf16>
    "tpu.trace_start"() <{level = 10 : i32, message = "bqk,bkd->bqd"}> : () -> ()
    %cst_177 = arith.constant dense<0.000000e+00> : vector<2x8x8xf32>
    %283 = tpu.matmul %282, %267, %cst_177 {dimension_numbers = #tpu.dot_dimension_numbers<[2], [1], [1], [2], [0, 0, 0, 1, 1, 2], [0], [0]>} : vector<2x8x8xbf16>, vector<2x8x8xbf16>, vector<2x8x8xf32> -> vector<2x8x8xf32>
    "tpu.trace_stop"() : () -> ()
    %284 = vector.shape_cast %283 : vector<2x8x8xf32> to vector<16x8xf32>
    %c0_178 = arith.constant 0 : index
    %c0_179 = arith.constant 0 : index
    %c0_180 = arith.constant 0 : index
    %c0_181 = arith.constant 0 : index
    %285 = vector.load %arg14[%c0_178, %c0_179, %c0_180, %c0_181] : memref<2x4x8x32xbf16, #tpu.memory_space<vmem>>, vector<1x1x8x32xbf16>
    %286 = vector.shape_cast %285 : vector<1x1x8x32xbf16> to vector<8x32xbf16>
    %287 = arith.truncf %284 : vector<16x8xf32> to vector<16x8xbf16>
    %cst_182 = arith.constant dense<0.000000e+00> : vector<16x32xf32>
    %288 = tpu.matmul %287, %286, %cst_182 {dimension_numbers = #tpu.dot_dimension_numbers<[1], [0], [0], [1], [0, 0, 1, 1], [], []>} : vector<16x8xbf16>, vector<8x32xbf16>, vector<16x32xf32> -> vector<16x32xf32>
    %289 = arith.addf %237, %288 : vector<16x32xf32>
    %c0_183 = arith.constant 0 : index
    %c1_184 = arith.constant 1 : index
    %c0_185 = arith.constant 0 : index
    %c0_186 = arith.constant 0 : index
    %290 = vector.load %arg8[%c0_183, %c1_184, %c0_185, %c0_186] : memref<2x4x32x8xbf16, #tpu.memory_space<vmem>>, vector<1x1x32x8xbf16>
    %291 = vector.shape_cast %290 : vector<1x1x32x8xbf16> to vector<32x8xbf16>
    %292 = arith.truncf %223 : vector<16x32xf32> to vector<16x32xbf16>
    %cst_187 = arith.constant dense<0.000000e+00> : vector<16x8xf32>
    %293 = tpu.matmul %292, %291, %cst_187 {dimension_numbers = #tpu.dot_dimension_numbers<[1], [0], [0], [1], [0, 0, 1, 1], [], []>} : vector<16x32xbf16>, vector<32x8xbf16>, vector<16x8xf32> -> vector<16x8xf32>
    %c0_188 = arith.constant 0 : index
    %c1_189 = arith.constant 1 : index
    %c0_190 = arith.constant 0 : index
    %c0_191 = arith.constant 0 : index
    %294 = vector.load %arg9[%c0_188, %c1_189, %c0_190, %c0_191] : memref<2x4x1x8xf32, #tpu.memory_space<vmem>>, vector<1x1x1x8xf32>
    %295 = vector.shape_cast %294 : vector<1x1x1x8xf32> to vector<1x8xf32>
    %296 = vector.broadcast %295 : vector<1x8xf32> to vector<16x8xf32>
    %297 = arith.addf %293, %296 : vector<16x8xf32>
    %c0_192 = arith.constant 0 : index
    %c1_193 = arith.constant 1 : index
    %c0_194 = arith.constant 0 : index
    %c0_195 = arith.constant 0 : index
    %298 = vector.load %arg10[%c0_192, %c1_193, %c0_194, %c0_195] : memref<2x4x32x8xbf16, #tpu.memory_space<vmem>>, vector<1x1x32x8xbf16>
    %299 = vector.shape_cast %298 : vector<1x1x32x8xbf16> to vector<32x8xbf16>
    %300 = arith.truncf %223 : vector<16x32xf32> to vector<16x32xbf16>
    %cst_196 = arith.constant dense<0.000000e+00> : vector<16x8xf32>
    %301 = tpu.matmul %300, %299, %cst_196 {dimension_numbers = #tpu.dot_dimension_numbers<[1], [0], [0], [1], [0, 0, 1, 1], [], []>} : vector<16x32xbf16>, vector<32x8xbf16>, vector<16x8xf32> -> vector<16x8xf32>
    %c0_197 = arith.constant 0 : index
    %c1_198 = arith.constant 1 : index
    %c0_199 = arith.constant 0 : index
    %c0_200 = arith.constant 0 : index
    %302 = vector.load %arg11[%c0_197, %c1_198, %c0_199, %c0_200] : memref<2x4x1x8xf32, #tpu.memory_space<vmem>>, vector<1x1x1x8xf32>
    %303 = vector.shape_cast %302 : vector<1x1x1x8xf32> to vector<1x8xf32>
    %304 = vector.broadcast %303 : vector<1x8xf32> to vector<16x8xf32>
    %305 = arith.addf %301, %304 : vector<16x8xf32>
    %c0_201 = arith.constant 0 : index
    %c1_202 = arith.constant 1 : index
    %c0_203 = arith.constant 0 : index
    %c0_204 = arith.constant 0 : index
    %306 = vector.load %arg12[%c0_201, %c1_202, %c0_203, %c0_204] : memref<2x4x32x8xbf16, #tpu.memory_space<vmem>>, vector<1x1x32x8xbf16>
    %307 = vector.shape_cast %306 : vector<1x1x32x8xbf16> to vector<32x8xbf16>
    %308 = arith.truncf %223 : vector<16x32xf32> to vector<16x32xbf16>
    %cst_205 = arith.constant dense<0.000000e+00> : vector<16x8xf32>
    %309 = tpu.matmul %308, %307, %cst_205 {dimension_numbers = #tpu.dot_dimension_numbers<[1], [0], [0], [1], [0, 0, 1, 1], [], []>} : vector<16x32xbf16>, vector<32x8xbf16>, vector<16x8xf32> -> vector<16x8xf32>
    %c0_206 = arith.constant 0 : index
    %c1_207 = arith.constant 1 : index
    %c0_208 = arith.constant 0 : index
    %c0_209 = arith.constant 0 : index
    %310 = vector.load %arg13[%c0_206, %c1_207, %c0_208, %c0_209] : memref<2x4x1x8xf32, #tpu.memory_space<vmem>>, vector<1x1x1x8xf32>
    %311 = vector.shape_cast %310 : vector<1x1x1x8xf32> to vector<1x8xf32>
    %312 = vector.broadcast %311 : vector<1x8xf32> to vector<16x8xf32>
    %313 = arith.addf %309, %312 : vector<16x8xf32>
    %314 = vector.shape_cast %297 : vector<16x8xf32> to vector<2x8x8xf32>
    %315 = arith.truncf %314 : vector<2x8x8xf32> to vector<2x8x8xbf16>
    %316 = vector.shape_cast %305 : vector<16x8xf32> to vector<2x8x8xf32>
    %317 = arith.truncf %316 : vector<2x8x8xf32> to vector<2x8x8xbf16>
    %318 = vector.shape_cast %313 : vector<16x8xf32> to vector<2x8x8xf32>
    %319 = arith.truncf %318 : vector<2x8x8xf32> to vector<2x8x8xbf16>
    "tpu.trace_start"() <{level = 10 : i32, message = "bqd,bkd->bqk"}> : () -> ()
    %cst_210 = arith.constant dense<0.000000e+00> : vector<2x8x8xf32>
    %320 = tpu.matmul %315, %317, %cst_210 {dimension_numbers = #tpu.dot_dimension_numbers<[2], [2], [1], [1], [0, 0, 0, 1, 1, 1], [0], [0]>} : vector<2x8x8xbf16>, vector<2x8x8xbf16>, vector<2x8x8xf32> -> vector<2x8x8xf32>
    "tpu.trace_stop"() : () -> ()
    %321 = vector.shape_cast %232 : vector<8x8xf32> to vector<1x8x8xf32>
    %322 = vector.broadcast %321 : vector<1x8x8xf32> to vector<2x8x8xf32>
    %323 = arith.addf %320, %322 : vector<2x8x8xf32>
    %cst_211 = arith.constant dense<0xFF800000> : vector<2x8xf32>
    %324 = vector.multi_reduction <maximumf>, %323, %cst_211 [2] : vector<2x8x8xf32> to vector<2x8xf32>
    %325 = vector.shape_cast %324 : vector<2x8xf32> to vector<2x8x1xf32>
    %326 = vector.broadcast %325 : vector<2x8x1xf32> to vector<2x8x8xf32>
    %327 = arith.subf %323, %326 : vector<2x8x8xf32>
    %328 = math.exp %327 : vector<2x8x8xf32>
    %cst_212 = arith.constant dense<0.000000e+00> : vector<2x8xf32>
    %329 = vector.multi_reduction <add>, %328, %cst_212 [2] : vector<2x8x8xf32> to vector<2x8xf32>
    %330 = vector.shape_cast %329 : vector<2x8xf32> to vector<2x8x1xf32>
    %331 = tpu.reciprocal %330 {approx = true} : vector<2x8x1xf32> -> vector<2x8x1xf32>
    %332 = vector.broadcast %331 : vector<2x8x1xf32> to vector<2x8x8xf32>
    %333 = arith.mulf %328, %332 : vector<2x8x8xf32>
    %334 = arith.truncf %333 : vector<2x8x8xf32> to vector<2x8x8xbf16>
    "tpu.trace_start"() <{level = 10 : i32, message = "bqk,bkd->bqd"}> : () -> ()
    %cst_213 = arith.constant dense<0.000000e+00> : vector<2x8x8xf32>
    %335 = tpu.matmul %334, %319, %cst_213 {dimension_numbers = #tpu.dot_dimension_numbers<[2], [1], [1], [2], [0, 0, 0, 1, 1, 2], [0], [0]>} : vector<2x8x8xbf16>, vector<2x8x8xbf16>, vector<2x8x8xf32> -> vector<2x8x8xf32>
    "tpu.trace_stop"() : () -> ()
    %336 = vector.shape_cast %335 : vector<2x8x8xf32> to vector<16x8xf32>
    %c0_214 = arith.constant 0 : index
    %c1_215 = arith.constant 1 : index
    %c0_216 = arith.constant 0 : index
    %c0_217 = arith.constant 0 : index
    %337 = vector.load %arg14[%c0_214, %c1_215, %c0_216, %c0_217] : memref<2x4x8x32xbf16, #tpu.memory_space<vmem>>, vector<1x1x8x32xbf16>
    %338 = vector.shape_cast %337 : vector<1x1x8x32xbf16> to vector<8x32xbf16>
    %339 = arith.truncf %336 : vector<16x8xf32> to vector<16x8xbf16>
    %cst_218 = arith.constant dense<0.000000e+00> : vector<16x32xf32>
    %340 = tpu.matmul %339, %338, %cst_218 {dimension_numbers = #tpu.dot_dimension_numbers<[1], [0], [0], [1], [0, 0, 1, 1], [], []>} : vector<16x8xbf16>, vector<8x32xbf16>, vector<16x32xf32> -> vector<16x32xf32>
    %341 = arith.addf %289, %340 : vector<16x32xf32>
    %c0_219 = arith.constant 0 : index
    %c2_220 = arith.constant 2 : index
    %c0_221 = arith.constant 0 : index
    %c0_222 = arith.constant 0 : index
    %342 = vector.load %arg8[%c0_219, %c2_220, %c0_221, %c0_222] : memref<2x4x32x8xbf16, #tpu.memory_space<vmem>>, vector<1x1x32x8xbf16>
    %343 = vector.shape_cast %342 : vector<1x1x32x8xbf16> to vector<32x8xbf16>
    %344 = arith.truncf %223 : vector<16x32xf32> to vector<16x32xbf16>
    %cst_223 = arith.constant dense<0.000000e+00> : vector<16x8xf32>
    %345 = tpu.matmul %344, %343, %cst_223 {dimension_numbers = #tpu.dot_dimension_numbers<[1], [0], [0], [1], [0, 0, 1, 1], [], []>} : vector<16x32xbf16>, vector<32x8xbf16>, vector<16x8xf32> -> vector<16x8xf32>
    %c0_224 = arith.constant 0 : index
    %c2_225 = arith.constant 2 : index
    %c0_226 = arith.constant 0 : index
    %c0_227 = arith.constant 0 : index
    %346 = vector.load %arg9[%c0_224, %c2_225, %c0_226, %c0_227] : memref<2x4x1x8xf32, #tpu.memory_space<vmem>>, vector<1x1x1x8xf32>
    %347 = vector.shape_cast %346 : vector<1x1x1x8xf32> to vector<1x8xf32>
    %348 = vector.broadcast %347 : vector<1x8xf32> to vector<16x8xf32>
    %349 = arith.addf %345, %348 : vector<16x8xf32>
    %c0_228 = arith.constant 0 : index
    %c2_229 = arith.constant 2 : index
    %c0_230 = arith.constant 0 : index
    %c0_231 = arith.constant 0 : index
    %350 = vector.load %arg10[%c0_228, %c2_229, %c0_230, %c0_231] : memref<2x4x32x8xbf16, #tpu.memory_space<vmem>>, vector<1x1x32x8xbf16>
    %351 = vector.shape_cast %350 : vector<1x1x32x8xbf16> to vector<32x8xbf16>
    %352 = arith.truncf %223 : vector<16x32xf32> to vector<16x32xbf16>
    %cst_232 = arith.constant dense<0.000000e+00> : vector<16x8xf32>
    %353 = tpu.matmul %352, %351, %cst_232 {dimension_numbers = #tpu.dot_dimension_numbers<[1], [0], [0], [1], [0, 0, 1, 1], [], []>} : vector<16x32xbf16>, vector<32x8xbf16>, vector<16x8xf32> -> vector<16x8xf32>
    %c0_233 = arith.constant 0 : index
    %c2_234 = arith.constant 2 : index
    %c0_235 = arith.constant 0 : index
    %c0_236 = arith.constant 0 : index
    %354 = vector.load %arg11[%c0_233, %c2_234, %c0_235, %c0_236] : memref<2x4x1x8xf32, #tpu.memory_space<vmem>>, vector<1x1x1x8xf32>
    %355 = vector.shape_cast %354 : vector<1x1x1x8xf32> to vector<1x8xf32>
    %356 = vector.broadcast %355 : vector<1x8xf32> to vector<16x8xf32>
    %357 = arith.addf %353, %356 : vector<16x8xf32>
    %c0_237 = arith.constant 0 : index
    %c2_238 = arith.constant 2 : index
    %c0_239 = arith.constant 0 : index
    %c0_240 = arith.constant 0 : index
    %358 = vector.load %arg12[%c0_237, %c2_238, %c0_239, %c0_240] : memref<2x4x32x8xbf16, #tpu.memory_space<vmem>>, vector<1x1x32x8xbf16>
    %359 = vector.shape_cast %358 : vector<1x1x32x8xbf16> to vector<32x8xbf16>
    %360 = arith.truncf %223 : vector<16x32xf32> to vector<16x32xbf16>
    %cst_241 = arith.constant dense<0.000000e+00> : vector<16x8xf32>
    %361 = tpu.matmul %360, %359, %cst_241 {dimension_numbers = #tpu.dot_dimension_numbers<[1], [0], [0], [1], [0, 0, 1, 1], [], []>} : vector<16x32xbf16>, vector<32x8xbf16>, vector<16x8xf32> -> vector<16x8xf32>
    %c0_242 = arith.constant 0 : index
    %c2_243 = arith.constant 2 : index
    %c0_244 = arith.constant 0 : index
    %c0_245 = arith.constant 0 : index
    %362 = vector.load %arg13[%c0_242, %c2_243, %c0_244, %c0_245] : memref<2x4x1x8xf32, #tpu.memory_space<vmem>>, vector<1x1x1x8xf32>
    %363 = vector.shape_cast %362 : vector<1x1x1x8xf32> to vector<1x8xf32>
    %364 = vector.broadcast %363 : vector<1x8xf32> to vector<16x8xf32>
    %365 = arith.addf %361, %364 : vector<16x8xf32>
    %366 = vector.shape_cast %349 : vector<16x8xf32> to vector<2x8x8xf32>
    %367 = arith.truncf %366 : vector<2x8x8xf32> to vector<2x8x8xbf16>
    %368 = vector.shape_cast %357 : vector<16x8xf32> to vector<2x8x8xf32>
    %369 = arith.truncf %368 : vector<2x8x8xf32> to vector<2x8x8xbf16>
    %370 = vector.shape_cast %365 : vector<16x8xf32> to vector<2x8x8xf32>
    %371 = arith.truncf %370 : vector<2x8x8xf32> to vector<2x8x8xbf16>
    "tpu.trace_start"() <{level = 10 : i32, message = "bqd,bkd->bqk"}> : () -> ()
    %cst_246 = arith.constant dense<0.000000e+00> : vector<2x8x8xf32>
    %372 = tpu.matmul %367, %369, %cst_246 {dimension_numbers = #tpu.dot_dimension_numbers<[2], [2], [1], [1], [0, 0, 0, 1, 1, 1], [0], [0]>} : vector<2x8x8xbf16>, vector<2x8x8xbf16>, vector<2x8x8xf32> -> vector<2x8x8xf32>
    "tpu.trace_stop"() : () -> ()
    %373 = vector.shape_cast %234 : vector<8x8xf32> to vector<1x8x8xf32>
    %374 = vector.broadcast %373 : vector<1x8x8xf32> to vector<2x8x8xf32>
    %375 = arith.addf %372, %374 : vector<2x8x8xf32>
    %cst_247 = arith.constant dense<0xFF800000> : vector<2x8xf32>
    %376 = vector.multi_reduction <maximumf>, %375, %cst_247 [2] : vector<2x8x8xf32> to vector<2x8xf32>
    %377 = vector.shape_cast %376 : vector<2x8xf32> to vector<2x8x1xf32>
    %378 = vector.broadcast %377 : vector<2x8x1xf32> to vector<2x8x8xf32>
    %379 = arith.subf %375, %378 : vector<2x8x8xf32>
    %380 = math.exp %379 : vector<2x8x8xf32>
    %cst_248 = arith.constant dense<0.000000e+00> : vector<2x8xf32>
    %381 = vector.multi_reduction <add>, %380, %cst_248 [2] : vector<2x8x8xf32> to vector<2x8xf32>
    %382 = vector.shape_cast %381 : vector<2x8xf32> to vector<2x8x1xf32>
    %383 = tpu.reciprocal %382 {approx = true} : vector<2x8x1xf32> -> vector<2x8x1xf32>
    %384 = vector.broadcast %383 : vector<2x8x1xf32> to vector<2x8x8xf32>
    %385 = arith.mulf %380, %384 : vector<2x8x8xf32>
    %386 = arith.truncf %385 : vector<2x8x8xf32> to vector<2x8x8xbf16>
    "tpu.trace_start"() <{level = 10 : i32, message = "bqk,bkd->bqd"}> : () -> ()
    %cst_249 = arith.constant dense<0.000000e+00> : vector<2x8x8xf32>
    %387 = tpu.matmul %386, %371, %cst_249 {dimension_numbers = #tpu.dot_dimension_numbers<[2], [1], [1], [2], [0, 0, 0, 1, 1, 2], [0], [0]>} : vector<2x8x8xbf16>, vector<2x8x8xbf16>, vector<2x8x8xf32> -> vector<2x8x8xf32>
    "tpu.trace_stop"() : () -> ()
    %388 = vector.shape_cast %387 : vector<2x8x8xf32> to vector<16x8xf32>
    %c0_250 = arith.constant 0 : index
    %c2_251 = arith.constant 2 : index
    %c0_252 = arith.constant 0 : index
    %c0_253 = arith.constant 0 : index
    %389 = vector.load %arg14[%c0_250, %c2_251, %c0_252, %c0_253] : memref<2x4x8x32xbf16, #tpu.memory_space<vmem>>, vector<1x1x8x32xbf16>
    %390 = vector.shape_cast %389 : vector<1x1x8x32xbf16> to vector<8x32xbf16>
    %391 = arith.truncf %388 : vector<16x8xf32> to vector<16x8xbf16>
    %cst_254 = arith.constant dense<0.000000e+00> : vector<16x32xf32>
    %392 = tpu.matmul %391, %390, %cst_254 {dimension_numbers = #tpu.dot_dimension_numbers<[1], [0], [0], [1], [0, 0, 1, 1], [], []>} : vector<16x8xbf16>, vector<8x32xbf16>, vector<16x32xf32> -> vector<16x32xf32>
    %393 = arith.addf %341, %392 : vector<16x32xf32>
    %c0_255 = arith.constant 0 : index
    %c3_256 = arith.constant 3 : index
    %c0_257 = arith.constant 0 : index
    %c0_258 = arith.constant 0 : index
    %394 = vector.load %arg8[%c0_255, %c3_256, %c0_257, %c0_258] : memref<2x4x32x8xbf16, #tpu.memory_space<vmem>>, vector<1x1x32x8xbf16>
    %395 = vector.shape_cast %394 : vector<1x1x32x8xbf16> to vector<32x8xbf16>
    %396 = arith.truncf %223 : vector<16x32xf32> to vector<16x32xbf16>
    %cst_259 = arith.constant dense<0.000000e+00> : vector<16x8xf32>
    %397 = tpu.matmul %396, %395, %cst_259 {dimension_numbers = #tpu.dot_dimension_numbers<[1], [0], [0], [1], [0, 0, 1, 1], [], []>} : vector<16x32xbf16>, vector<32x8xbf16>, vector<16x8xf32> -> vector<16x8xf32>
    %c0_260 = arith.constant 0 : index
    %c3_261 = arith.constant 3 : index
    %c0_262 = arith.constant 0 : index
    %c0_263 = arith.constant 0 : index
    %398 = vector.load %arg9[%c0_260, %c3_261, %c0_262, %c0_263] : memref<2x4x1x8xf32, #tpu.memory_space<vmem>>, vector<1x1x1x8xf32>
    %399 = vector.shape_cast %398 : vector<1x1x1x8xf32> to vector<1x8xf32>
    %400 = vector.broadcast %399 : vector<1x8xf32> to vector<16x8xf32>
    %401 = arith.addf %397, %400 : vector<16x8xf32>
    %c0_264 = arith.constant 0 : index
    %c3_265 = arith.constant 3 : index
    %c0_266 = arith.constant 0 : index
    %c0_267 = arith.constant 0 : index
    %402 = vector.load %arg10[%c0_264, %c3_265, %c0_266, %c0_267] : memref<2x4x32x8xbf16, #tpu.memory_space<vmem>>, vector<1x1x32x8xbf16>
    %403 = vector.shape_cast %402 : vector<1x1x32x8xbf16> to vector<32x8xbf16>
    %404 = arith.truncf %223 : vector<16x32xf32> to vector<16x32xbf16>
    %cst_268 = arith.constant dense<0.000000e+00> : vector<16x8xf32>
    %405 = tpu.matmul %404, %403, %cst_268 {dimension_numbers = #tpu.dot_dimension_numbers<[1], [0], [0], [1], [0, 0, 1, 1], [], []>} : vector<16x32xbf16>, vector<32x8xbf16>, vector<16x8xf32> -> vector<16x8xf32>
    %c0_269 = arith.constant 0 : index
    %c3_270 = arith.constant 3 : index
    %c0_271 = arith.constant 0 : index
    %c0_272 = arith.constant 0 : index
    %406 = vector.load %arg11[%c0_269, %c3_270, %c0_271, %c0_272] : memref<2x4x1x8xf32, #tpu.memory_space<vmem>>, vector<1x1x1x8xf32>
    %407 = vector.shape_cast %406 : vector<1x1x1x8xf32> to vector<1x8xf32>
    %408 = vector.broadcast %407 : vector<1x8xf32> to vector<16x8xf32>
    %409 = arith.addf %405, %408 : vector<16x8xf32>
    %c0_273 = arith.constant 0 : index
    %c3_274 = arith.constant 3 : index
    %c0_275 = arith.constant 0 : index
    %c0_276 = arith.constant 0 : index
    %410 = vector.load %arg12[%c0_273, %c3_274, %c0_275, %c0_276] : memref<2x4x32x8xbf16, #tpu.memory_space<vmem>>, vector<1x1x32x8xbf16>
    %411 = vector.shape_cast %410 : vector<1x1x32x8xbf16> to vector<32x8xbf16>
    %412 = arith.truncf %223 : vector<16x32xf32> to vector<16x32xbf16>
    %cst_277 = arith.constant dense<0.000000e+00> : vector<16x8xf32>
    %413 = tpu.matmul %412, %411, %cst_277 {dimension_numbers = #tpu.dot_dimension_numbers<[1], [0], [0], [1], [0, 0, 1, 1], [], []>} : vector<16x32xbf16>, vector<32x8xbf16>, vector<16x8xf32> -> vector<16x8xf32>
    %c0_278 = arith.constant 0 : index
    %c3_279 = arith.constant 3 : index
    %c0_280 = arith.constant 0 : index
    %c0_281 = arith.constant 0 : index
    %414 = vector.load %arg13[%c0_278, %c3_279, %c0_280, %c0_281] : memref<2x4x1x8xf32, #tpu.memory_space<vmem>>, vector<1x1x1x8xf32>
    %415 = vector.shape_cast %414 : vector<1x1x1x8xf32> to vector<1x8xf32>
    %416 = vector.broadcast %415 : vector<1x8xf32> to vector<16x8xf32>
    %417 = arith.addf %413, %416 : vector<16x8xf32>
    %418 = vector.shape_cast %401 : vector<16x8xf32> to vector<2x8x8xf32>
    %419 = arith.truncf %418 : vector<2x8x8xf32> to vector<2x8x8xbf16>
    %420 = vector.shape_cast %409 : vector<16x8xf32> to vector<2x8x8xf32>
    %421 = arith.truncf %420 : vector<2x8x8xf32> to vector<2x8x8xbf16>
    %422 = vector.shape_cast %417 : vector<16x8xf32> to vector<2x8x8xf32>
    %423 = arith.truncf %422 : vector<2x8x8xf32> to vector<2x8x8xbf16>
    "tpu.trace_start"() <{level = 10 : i32, message = "bqd,bkd->bqk"}> : () -> ()
    %cst_282 = arith.constant dense<0.000000e+00> : vector<2x8x8xf32>
    %424 = tpu.matmul %419, %421, %cst_282 {dimension_numbers = #tpu.dot_dimension_numbers<[2], [2], [1], [1], [0, 0, 0, 1, 1, 1], [0], [0]>} : vector<2x8x8xbf16>, vector<2x8x8xbf16>, vector<2x8x8xf32> -> vector<2x8x8xf32>
    "tpu.trace_stop"() : () -> ()
    %425 = vector.shape_cast %236 : vector<8x8xf32> to vector<1x8x8xf32>
    %426 = vector.broadcast %425 : vector<1x8x8xf32> to vector<2x8x8xf32>
    %427 = arith.addf %424, %426 : vector<2x8x8xf32>
    %cst_283 = arith.constant dense<0xFF800000> : vector<2x8xf32>
    %428 = vector.multi_reduction <maximumf>, %427, %cst_283 [2] : vector<2x8x8xf32> to vector<2x8xf32>
    %429 = vector.shape_cast %428 : vector<2x8xf32> to vector<2x8x1xf32>
    %430 = vector.broadcast %429 : vector<2x8x1xf32> to vector<2x8x8xf32>
    %431 = arith.subf %427, %430 : vector<2x8x8xf32>
    %432 = math.exp %431 : vector<2x8x8xf32>
    %cst_284 = arith.constant dense<0.000000e+00> : vector<2x8xf32>
    %433 = vector.multi_reduction <add>, %432, %cst_284 [2] : vector<2x8x8xf32> to vector<2x8xf32>
    %434 = vector.shape_cast %433 : vector<2x8xf32> to vector<2x8x1xf32>
    %435 = tpu.reciprocal %434 {approx = true} : vector<2x8x1xf32> -> vector<2x8x1xf32>
    %436 = vector.broadcast %435 : vector<2x8x1xf32> to vector<2x8x8xf32>
    %437 = arith.mulf %432, %436 : vector<2x8x8xf32>
    %438 = arith.truncf %437 : vector<2x8x8xf32> to vector<2x8x8xbf16>
    "tpu.trace_start"() <{level = 10 : i32, message = "bqk,bkd->bqd"}> : () -> ()
    %cst_285 = arith.constant dense<0.000000e+00> : vector<2x8x8xf32>
    %439 = tpu.matmul %438, %423, %cst_285 {dimension_numbers = #tpu.dot_dimension_numbers<[2], [1], [1], [2], [0, 0, 0, 1, 1, 2], [0], [0]>} : vector<2x8x8xbf16>, vector<2x8x8xbf16>, vector<2x8x8xf32> -> vector<2x8x8xf32>
    "tpu.trace_stop"() : () -> ()
    %440 = vector.shape_cast %439 : vector<2x8x8xf32> to vector<16x8xf32>
    %c0_286 = arith.constant 0 : index
    %c3_287 = arith.constant 3 : index
    %c0_288 = arith.constant 0 : index
    %c0_289 = arith.constant 0 : index
    %441 = vector.load %arg14[%c0_286, %c3_287, %c0_288, %c0_289] : memref<2x4x8x32xbf16, #tpu.memory_space<vmem>>, vector<1x1x8x32xbf16>
    %442 = vector.shape_cast %441 : vector<1x1x8x32xbf16> to vector<8x32xbf16>
    %443 = arith.truncf %440 : vector<16x8xf32> to vector<16x8xbf16>
    %cst_290 = arith.constant dense<0.000000e+00> : vector<16x32xf32>
    %444 = tpu.matmul %443, %442, %cst_290 {dimension_numbers = #tpu.dot_dimension_numbers<[1], [0], [0], [1], [0, 0, 1, 1], [], []>} : vector<16x8xbf16>, vector<8x32xbf16>, vector<16x32xf32> -> vector<16x32xf32>
    %445 = arith.addf %393, %444 : vector<16x32xf32>
    %c0_291 = arith.constant 0 : index
    %c0_292 = arith.constant 0 : index
    %c0_293 = arith.constant 0 : index
    %446 = vector.load %arg15[%c0_291, %c0_292, %c0_293] : memref<2x1x32xf32, #tpu.memory_space<vmem>>, vector<1x1x32xf32>
    %447 = vector.shape_cast %446 : vector<1x1x32xf32> to vector<1x32xf32>
    %448 = vector.broadcast %447 : vector<1x32xf32> to vector<16x32xf32>
    %449 = arith.addf %445, %448 : vector<16x32xf32>
    %c0_294 = arith.constant 0 : index
    %c0_295 = arith.constant 0 : index
    %c0_296 = arith.constant 0 : index
    %450 = vector.load %arg16[%c0_294, %c0_295, %c0_296] : memref<2x2x32xf32, #tpu.memory_space<vmem>>, vector<1x2x32xf32>
    %451 = vector.shape_cast %450 : vector<1x2x32xf32> to vector<2x32xf32>
    %452 = arith.addf %223, %449 : vector<16x32xf32>
    %453 = vector.extract_strided_slice %451 {offsets = [0, 0], sizes = [1, 32], strides = [1, 1]} : vector<2x32xf32> to vector<1x32xf32>
    %454 = vector.extract_strided_slice %451 {offsets = [1, 0], sizes = [1, 32], strides = [1, 1]} : vector<2x32xf32> to vector<1x32xf32>
    %cst_297 = arith.constant dense<0.000000e+00> : vector<16xf32>
    %455 = vector.multi_reduction <add>, %452, %cst_297 [1] : vector<16x32xf32> to vector<16xf32>
    %456 = vector.shape_cast %455 : vector<16xf32> to vector<16x1xf32>
    %cst_298 = arith.constant 3.200000e+01 : f32
    %457 = vector.broadcast %cst_298 : f32 to vector<16x1xf32>
    %458 = arith.divf %456, %457 : vector<16x1xf32>
    %459 = vector.broadcast %458 : vector<16x1xf32> to vector<16x32xf32>
    %460 = arith.subf %452, %459 : vector<16x32xf32>
    %461 = arith.mulf %460, %460 : vector<16x32xf32>
    %cst_299 = arith.constant dense<0.000000e+00> : vector<16xf32>
    %462 = vector.multi_reduction <add>, %461, %cst_299 [1] : vector<16x32xf32> to vector<16xf32>
    %463 = vector.shape_cast %462 : vector<16xf32> to vector<16x1xf32>
    %cst_300 = arith.constant 3.200000e+01 : f32
    %464 = vector.broadcast %cst_300 : f32 to vector<16x1xf32>
    %465 = arith.divf %463, %464 : vector<16x1xf32>
    %466 = vector.broadcast %458 : vector<16x1xf32> to vector<16x32xf32>
    %467 = arith.subf %452, %466 : vector<16x32xf32>
    %cst_301 = arith.constant 9.99999974E-6 : f32
    %468 = vector.broadcast %cst_301 : f32 to vector<16x1xf32>
    %469 = arith.addf %465, %468 : vector<16x1xf32>
    %470 = math.rsqrt %469 : vector<16x1xf32>
    %471 = vector.broadcast %470 : vector<16x1xf32> to vector<16x32xf32>
    %472 = arith.mulf %467, %471 : vector<16x32xf32>
    %473 = vector.broadcast %453 : vector<1x32xf32> to vector<16x32xf32>
    %474 = arith.mulf %472, %473 : vector<16x32xf32>
    %475 = vector.broadcast %454 : vector<1x32xf32> to vector<16x32xf32>
    %476 = arith.addf %474, %475 : vector<16x32xf32>
    %c0_302 = arith.constant 0 : index
    %c0_303 = arith.constant 0 : index
    %c0_304 = arith.constant 0 : index
    %477 = vector.load %arg17[%c0_302, %c0_303, %c0_304] : memref<2x32x64xbf16, #tpu.memory_space<vmem>>, vector<1x32x64xbf16>
    %478 = vector.shape_cast %477 : vector<1x32x64xbf16> to vector<32x64xbf16>
    %479 = arith.truncf %476 : vector<16x32xf32> to vector<16x32xbf16>
    %cst_305 = arith.constant dense<0.000000e+00> : vector<16x64xf32>
    %480 = tpu.matmul %479, %478, %cst_305 {dimension_numbers = #tpu.dot_dimension_numbers<[1], [0], [0], [1], [0, 0, 1, 1], [], []>} : vector<16x32xbf16>, vector<32x64xbf16>, vector<16x64xf32> -> vector<16x64xf32>
    %c0_306 = arith.constant 0 : index
    %c0_307 = arith.constant 0 : index
    %c0_308 = arith.constant 0 : index
    %481 = vector.load %arg18[%c0_306, %c0_307, %c0_308] : memref<2x1x64xf32, #tpu.memory_space<vmem>>, vector<1x1x64xf32>
    %482 = vector.shape_cast %481 : vector<1x1x64xf32> to vector<1x64xf32>
    %483 = vector.broadcast %482 : vector<1x64xf32> to vector<16x64xf32>
    %484 = arith.addf %480, %483 : vector<16x64xf32>
    %cst_309 = arith.constant 5.000000e-01 : f32
    %485 = vector.broadcast %cst_309 : f32 to vector<16x64xf32>
    %486 = arith.mulf %485, %484 : vector<16x64xf32>
    %487 = arith.mulf %484, %484 : vector<16x64xf32>
    %488 = arith.mulf %487, %484 : vector<16x64xf32>
    %cst_310 = arith.constant 4.471500e-02 : f32
    %489 = vector.broadcast %cst_310 : f32 to vector<16x64xf32>
    %490 = arith.mulf %489, %488 : vector<16x64xf32>
    %491 = arith.addf %484, %490 : vector<16x64xf32>
    %cst_311 = arith.constant 0.797884583 : f32
    %492 = vector.broadcast %cst_311 : f32 to vector<16x64xf32>
    %493 = arith.mulf %492, %491 : vector<16x64xf32>
    %494 = math.tanh %493 : vector<16x64xf32>
    %cst_312 = arith.constant 1.000000e+00 : f32
    %495 = vector.broadcast %cst_312 : f32 to vector<16x64xf32>
    %496 = arith.addf %495, %494 : vector<16x64xf32>
    %497 = arith.mulf %486, %496 : vector<16x64xf32>
    %c0_313 = arith.constant 0 : index
    %c0_314 = arith.constant 0 : index
    %c0_315 = arith.constant 0 : index
    %498 = vector.load %arg19[%c0_313, %c0_314, %c0_315] : memref<2x64x32xbf16, #tpu.memory_space<vmem>>, vector<1x64x32xbf16>
    %499 = vector.shape_cast %498 : vector<1x64x32xbf16> to vector<64x32xbf16>
    %500 = arith.truncf %497 : vector<16x64xf32> to vector<16x64xbf16>
    %cst_316 = arith.constant dense<0.000000e+00> : vector<16x32xf32>
    %501 = tpu.matmul %500, %499, %cst_316 {dimension_numbers = #tpu.dot_dimension_numbers<[1], [0], [0], [1], [0, 0, 1, 1], [], []>} : vector<16x64xbf16>, vector<64x32xbf16>, vector<16x32xf32> -> vector<16x32xf32>
    %c0_317 = arith.constant 0 : index
    %c0_318 = arith.constant 0 : index
    %c0_319 = arith.constant 0 : index
    %502 = vector.load %arg20[%c0_317, %c0_318, %c0_319] : memref<2x1x32xf32, #tpu.memory_space<vmem>>, vector<1x1x32xf32>
    %503 = vector.shape_cast %502 : vector<1x1x32xf32> to vector<1x32xf32>
    %504 = vector.broadcast %503 : vector<1x32xf32> to vector<16x32xf32>
    %505 = arith.addf %501, %504 : vector<16x32xf32>
    %c0_320 = arith.constant 0 : index
    %c0_321 = arith.constant 0 : index
    %c0_322 = arith.constant 0 : index
    %506 = vector.load %arg21[%c0_320, %c0_321, %c0_322] : memref<2x2x32xf32, #tpu.memory_space<vmem>>, vector<1x2x32xf32>
    %507 = vector.shape_cast %506 : vector<1x2x32xf32> to vector<2x32xf32>
    %508 = arith.addf %476, %505 : vector<16x32xf32>
    %509 = vector.extract_strided_slice %507 {offsets = [0, 0], sizes = [1, 32], strides = [1, 1]} : vector<2x32xf32> to vector<1x32xf32>
    %510 = vector.extract_strided_slice %507 {offsets = [1, 0], sizes = [1, 32], strides = [1, 1]} : vector<2x32xf32> to vector<1x32xf32>
    %cst_323 = arith.constant dense<0.000000e+00> : vector<16xf32>
    %511 = vector.multi_reduction <add>, %508, %cst_323 [1] : vector<16x32xf32> to vector<16xf32>
    %512 = vector.shape_cast %511 : vector<16xf32> to vector<16x1xf32>
    %cst_324 = arith.constant 3.200000e+01 : f32
    %513 = vector.broadcast %cst_324 : f32 to vector<16x1xf32>
    %514 = arith.divf %512, %513 : vector<16x1xf32>
    %515 = vector.broadcast %514 : vector<16x1xf32> to vector<16x32xf32>
    %516 = arith.subf %508, %515 : vector<16x32xf32>
    %517 = arith.mulf %516, %516 : vector<16x32xf32>
    %cst_325 = arith.constant dense<0.000000e+00> : vector<16xf32>
    %518 = vector.multi_reduction <add>, %517, %cst_325 [1] : vector<16x32xf32> to vector<16xf32>
    %519 = vector.shape_cast %518 : vector<16xf32> to vector<16x1xf32>
    %cst_326 = arith.constant 3.200000e+01 : f32
    %520 = vector.broadcast %cst_326 : f32 to vector<16x1xf32>
    %521 = arith.divf %519, %520 : vector<16x1xf32>
    %522 = vector.broadcast %514 : vector<16x1xf32> to vector<16x32xf32>
    %523 = arith.subf %508, %522 : vector<16x32xf32>
    %cst_327 = arith.constant 9.99999974E-6 : f32
    %524 = vector.broadcast %cst_327 : f32 to vector<16x1xf32>
    %525 = arith.addf %521, %524 : vector<16x1xf32>
    %526 = math.rsqrt %525 : vector<16x1xf32>
    %527 = vector.broadcast %526 : vector<16x1xf32> to vector<16x32xf32>
    %528 = arith.mulf %523, %527 : vector<16x32xf32>
    %529 = vector.broadcast %509 : vector<1x32xf32> to vector<16x32xf32>
    %530 = arith.mulf %528, %529 : vector<16x32xf32>
    %531 = vector.broadcast %510 : vector<1x32xf32> to vector<16x32xf32>
    %532 = arith.addf %530, %531 : vector<16x32xf32>
    %cst_328 = arith.constant 0.000000e+00 : f32
    %533 = vector.broadcast %cst_328 : f32 to vector<16x32xf32>
    %c1_329 = arith.constant 1 : index
    %c0_330 = arith.constant 0 : index
    %c0_331 = arith.constant 0 : index
    %c0_332 = arith.constant 0 : index
    %534 = vector.load %arg8[%c1_329, %c0_330, %c0_331, %c0_332] : memref<2x4x32x8xbf16, #tpu.memory_space<vmem>>, vector<1x1x32x8xbf16>
    %535 = vector.shape_cast %534 : vector<1x1x32x8xbf16> to vector<32x8xbf16>
    %536 = arith.truncf %532 : vector<16x32xf32> to vector<16x32xbf16>
    %cst_333 = arith.constant dense<0.000000e+00> : vector<16x8xf32>
    %537 = tpu.matmul %536, %535, %cst_333 {dimension_numbers = #tpu.dot_dimension_numbers<[1], [0], [0], [1], [0, 0, 1, 1], [], []>} : vector<16x32xbf16>, vector<32x8xbf16>, vector<16x8xf32> -> vector<16x8xf32>
    %c1_334 = arith.constant 1 : index
    %c0_335 = arith.constant 0 : index
    %c0_336 = arith.constant 0 : index
    %c0_337 = arith.constant 0 : index
    %538 = vector.load %arg9[%c1_334, %c0_335, %c0_336, %c0_337] : memref<2x4x1x8xf32, #tpu.memory_space<vmem>>, vector<1x1x1x8xf32>
    %539 = vector.shape_cast %538 : vector<1x1x1x8xf32> to vector<1x8xf32>
    %540 = vector.broadcast %539 : vector<1x8xf32> to vector<16x8xf32>
    %541 = arith.addf %537, %540 : vector<16x8xf32>
    %c1_338 = arith.constant 1 : index
    %c0_339 = arith.constant 0 : index
    %c0_340 = arith.constant 0 : index
    %c0_341 = arith.constant 0 : index
    %542 = vector.load %arg10[%c1_338, %c0_339, %c0_340, %c0_341] : memref<2x4x32x8xbf16, #tpu.memory_space<vmem>>, vector<1x1x32x8xbf16>
    %543 = vector.shape_cast %542 : vector<1x1x32x8xbf16> to vector<32x8xbf16>
    %544 = arith.truncf %532 : vector<16x32xf32> to vector<16x32xbf16>
    %cst_342 = arith.constant dense<0.000000e+00> : vector<16x8xf32>
    %545 = tpu.matmul %544, %543, %cst_342 {dimension_numbers = #tpu.dot_dimension_numbers<[1], [0], [0], [1], [0, 0, 1, 1], [], []>} : vector<16x32xbf16>, vector<32x8xbf16>, vector<16x8xf32> -> vector<16x8xf32>
    %c1_343 = arith.constant 1 : index
    %c0_344 = arith.constant 0 : index
    %c0_345 = arith.constant 0 : index
    %c0_346 = arith.constant 0 : index
    %546 = vector.load %arg11[%c1_343, %c0_344, %c0_345, %c0_346] : memref<2x4x1x8xf32, #tpu.memory_space<vmem>>, vector<1x1x1x8xf32>
    %547 = vector.shape_cast %546 : vector<1x1x1x8xf32> to vector<1x8xf32>
    %548 = vector.broadcast %547 : vector<1x8xf32> to vector<16x8xf32>
    %549 = arith.addf %545, %548 : vector<16x8xf32>
    %c1_347 = arith.constant 1 : index
    %c0_348 = arith.constant 0 : index
    %c0_349 = arith.constant 0 : index
    %c0_350 = arith.constant 0 : index
    %550 = vector.load %arg12[%c1_347, %c0_348, %c0_349, %c0_350] : memref<2x4x32x8xbf16, #tpu.memory_space<vmem>>, vector<1x1x32x8xbf16>
    %551 = vector.shape_cast %550 : vector<1x1x32x8xbf16> to vector<32x8xbf16>
    %552 = arith.truncf %532 : vector<16x32xf32> to vector<16x32xbf16>
    %cst_351 = arith.constant dense<0.000000e+00> : vector<16x8xf32>
    %553 = tpu.matmul %552, %551, %cst_351 {dimension_numbers = #tpu.dot_dimension_numbers<[1], [0], [0], [1], [0, 0, 1, 1], [], []>} : vector<16x32xbf16>, vector<32x8xbf16>, vector<16x8xf32> -> vector<16x8xf32>
    %c1_352 = arith.constant 1 : index
    %c0_353 = arith.constant 0 : index
    %c0_354 = arith.constant 0 : index
    %c0_355 = arith.constant 0 : index
    %554 = vector.load %arg13[%c1_352, %c0_353, %c0_354, %c0_355] : memref<2x4x1x8xf32, #tpu.memory_space<vmem>>, vector<1x1x1x8xf32>
    %555 = vector.shape_cast %554 : vector<1x1x1x8xf32> to vector<1x8xf32>
    %556 = vector.broadcast %555 : vector<1x8xf32> to vector<16x8xf32>
    %557 = arith.addf %553, %556 : vector<16x8xf32>
    %558 = vector.shape_cast %541 : vector<16x8xf32> to vector<2x8x8xf32>
    %559 = arith.truncf %558 : vector<2x8x8xf32> to vector<2x8x8xbf16>
    %560 = vector.shape_cast %549 : vector<16x8xf32> to vector<2x8x8xf32>
    %561 = arith.truncf %560 : vector<2x8x8xf32> to vector<2x8x8xbf16>
    %562 = vector.shape_cast %557 : vector<16x8xf32> to vector<2x8x8xf32>
    %563 = arith.truncf %562 : vector<2x8x8xf32> to vector<2x8x8xbf16>
    "tpu.trace_start"() <{level = 10 : i32, message = "bqd,bkd->bqk"}> : () -> ()
    %cst_356 = arith.constant dense<0.000000e+00> : vector<2x8x8xf32>
    %564 = tpu.matmul %559, %561, %cst_356 {dimension_numbers = #tpu.dot_dimension_numbers<[2], [2], [1], [1], [0, 0, 0, 1, 1, 1], [0], [0]>} : vector<2x8x8xbf16>, vector<2x8x8xbf16>, vector<2x8x8xf32> -> vector<2x8x8xf32>
    "tpu.trace_stop"() : () -> ()
    %565 = vector.shape_cast %230 : vector<8x8xf32> to vector<1x8x8xf32>
    %566 = vector.broadcast %565 : vector<1x8x8xf32> to vector<2x8x8xf32>
    %567 = arith.addf %564, %566 : vector<2x8x8xf32>
    %cst_357 = arith.constant dense<0xFF800000> : vector<2x8xf32>
    %568 = vector.multi_reduction <maximumf>, %567, %cst_357 [2] : vector<2x8x8xf32> to vector<2x8xf32>
    %569 = vector.shape_cast %568 : vector<2x8xf32> to vector<2x8x1xf32>
    %570 = vector.broadcast %569 : vector<2x8x1xf32> to vector<2x8x8xf32>
    %571 = arith.subf %567, %570 : vector<2x8x8xf32>
    %572 = math.exp %571 : vector<2x8x8xf32>
    %cst_358 = arith.constant dense<0.000000e+00> : vector<2x8xf32>
    %573 = vector.multi_reduction <add>, %572, %cst_358 [2] : vector<2x8x8xf32> to vector<2x8xf32>
    %574 = vector.shape_cast %573 : vector<2x8xf32> to vector<2x8x1xf32>
    %575 = tpu.reciprocal %574 {approx = true} : vector<2x8x1xf32> -> vector<2x8x1xf32>
    %576 = vector.broadcast %575 : vector<2x8x1xf32> to vector<2x8x8xf32>
    %577 = arith.mulf %572, %576 : vector<2x8x8xf32>
    %578 = arith.truncf %577 : vector<2x8x8xf32> to vector<2x8x8xbf16>
    "tpu.trace_start"() <{level = 10 : i32, message = "bqk,bkd->bqd"}> : () -> ()
    %cst_359 = arith.constant dense<0.000000e+00> : vector<2x8x8xf32>
    %579 = tpu.matmul %578, %563, %cst_359 {dimension_numbers = #tpu.dot_dimension_numbers<[2], [1], [1], [2], [0, 0, 0, 1, 1, 2], [0], [0]>} : vector<2x8x8xbf16>, vector<2x8x8xbf16>, vector<2x8x8xf32> -> vector<2x8x8xf32>
    "tpu.trace_stop"() : () -> ()
    %580 = vector.shape_cast %579 : vector<2x8x8xf32> to vector<16x8xf32>
    %c1_360 = arith.constant 1 : index
    %c0_361 = arith.constant 0 : index
    %c0_362 = arith.constant 0 : index
    %c0_363 = arith.constant 0 : index
    %581 = vector.load %arg14[%c1_360, %c0_361, %c0_362, %c0_363] : memref<2x4x8x32xbf16, #tpu.memory_space<vmem>>, vector<1x1x8x32xbf16>
    %582 = vector.shape_cast %581 : vector<1x1x8x32xbf16> to vector<8x32xbf16>
    %583 = arith.truncf %580 : vector<16x8xf32> to vector<16x8xbf16>
    %cst_364 = arith.constant dense<0.000000e+00> : vector<16x32xf32>
    %584 = tpu.matmul %583, %582, %cst_364 {dimension_numbers = #tpu.dot_dimension_numbers<[1], [0], [0], [1], [0, 0, 1, 1], [], []>} : vector<16x8xbf16>, vector<8x32xbf16>, vector<16x32xf32> -> vector<16x32xf32>
    %585 = arith.addf %533, %584 : vector<16x32xf32>
    %c1_365 = arith.constant 1 : index
    %c1_366 = arith.constant 1 : index
    %c0_367 = arith.constant 0 : index
    %c0_368 = arith.constant 0 : index
    %586 = vector.load %arg8[%c1_365, %c1_366, %c0_367, %c0_368] : memref<2x4x32x8xbf16, #tpu.memory_space<vmem>>, vector<1x1x32x8xbf16>
    %587 = vector.shape_cast %586 : vector<1x1x32x8xbf16> to vector<32x8xbf16>
    %588 = arith.truncf %532 : vector<16x32xf32> to vector<16x32xbf16>
    %cst_369 = arith.constant dense<0.000000e+00> : vector<16x8xf32>
    %589 = tpu.matmul %588, %587, %cst_369 {dimension_numbers = #tpu.dot_dimension_numbers<[1], [0], [0], [1], [0, 0, 1, 1], [], []>} : vector<16x32xbf16>, vector<32x8xbf16>, vector<16x8xf32> -> vector<16x8xf32>
    %c1_370 = arith.constant 1 : index
    %c1_371 = arith.constant 1 : index
    %c0_372 = arith.constant 0 : index
    %c0_373 = arith.constant 0 : index
    %590 = vector.load %arg9[%c1_370, %c1_371, %c0_372, %c0_373] : memref<2x4x1x8xf32, #tpu.memory_space<vmem>>, vector<1x1x1x8xf32>
    %591 = vector.shape_cast %590 : vector<1x1x1x8xf32> to vector<1x8xf32>
    %592 = vector.broadcast %591 : vector<1x8xf32> to vector<16x8xf32>
    %593 = arith.addf %589, %592 : vector<16x8xf32>
    %c1_374 = arith.constant 1 : index
    %c1_375 = arith.constant 1 : index
    %c0_376 = arith.constant 0 : index
    %c0_377 = arith.constant 0 : index
    %594 = vector.load %arg10[%c1_374, %c1_375, %c0_376, %c0_377] : memref<2x4x32x8xbf16, #tpu.memory_space<vmem>>, vector<1x1x32x8xbf16>
    %595 = vector.shape_cast %594 : vector<1x1x32x8xbf16> to vector<32x8xbf16>
    %596 = arith.truncf %532 : vector<16x32xf32> to vector<16x32xbf16>
    %cst_378 = arith.constant dense<0.000000e+00> : vector<16x8xf32>
    %597 = tpu.matmul %596, %595, %cst_378 {dimension_numbers = #tpu.dot_dimension_numbers<[1], [0], [0], [1], [0, 0, 1, 1], [], []>} : vector<16x32xbf16>, vector<32x8xbf16>, vector<16x8xf32> -> vector<16x8xf32>
    %c1_379 = arith.constant 1 : index
    %c1_380 = arith.constant 1 : index
    %c0_381 = arith.constant 0 : index
    %c0_382 = arith.constant 0 : index
    %598 = vector.load %arg11[%c1_379, %c1_380, %c0_381, %c0_382] : memref<2x4x1x8xf32, #tpu.memory_space<vmem>>, vector<1x1x1x8xf32>
    %599 = vector.shape_cast %598 : vector<1x1x1x8xf32> to vector<1x8xf32>
    %600 = vector.broadcast %599 : vector<1x8xf32> to vector<16x8xf32>
    %601 = arith.addf %597, %600 : vector<16x8xf32>
    %c1_383 = arith.constant 1 : index
    %c1_384 = arith.constant 1 : index
    %c0_385 = arith.constant 0 : index
    %c0_386 = arith.constant 0 : index
    %602 = vector.load %arg12[%c1_383, %c1_384, %c0_385, %c0_386] : memref<2x4x32x8xbf16, #tpu.memory_space<vmem>>, vector<1x1x32x8xbf16>
    %603 = vector.shape_cast %602 : vector<1x1x32x8xbf16> to vector<32x8xbf16>
    %604 = arith.truncf %532 : vector<16x32xf32> to vector<16x32xbf16>
    %cst_387 = arith.constant dense<0.000000e+00> : vector<16x8xf32>
    %605 = tpu.matmul %604, %603, %cst_387 {dimension_numbers = #tpu.dot_dimension_numbers<[1], [0], [0], [1], [0, 0, 1, 1], [], []>} : vector<16x32xbf16>, vector<32x8xbf16>, vector<16x8xf32> -> vector<16x8xf32>
    %c1_388 = arith.constant 1 : index
    %c1_389 = arith.constant 1 : index
    %c0_390 = arith.constant 0 : index
    %c0_391 = arith.constant 0 : index
    %606 = vector.load %arg13[%c1_388, %c1_389, %c0_390, %c0_391] : memref<2x4x1x8xf32, #tpu.memory_space<vmem>>, vector<1x1x1x8xf32>
    %607 = vector.shape_cast %606 : vector<1x1x1x8xf32> to vector<1x8xf32>
    %608 = vector.broadcast %607 : vector<1x8xf32> to vector<16x8xf32>
    %609 = arith.addf %605, %608 : vector<16x8xf32>
    %610 = vector.shape_cast %593 : vector<16x8xf32> to vector<2x8x8xf32>
    %611 = arith.truncf %610 : vector<2x8x8xf32> to vector<2x8x8xbf16>
    %612 = vector.shape_cast %601 : vector<16x8xf32> to vector<2x8x8xf32>
    %613 = arith.truncf %612 : vector<2x8x8xf32> to vector<2x8x8xbf16>
    %614 = vector.shape_cast %609 : vector<16x8xf32> to vector<2x8x8xf32>
    %615 = arith.truncf %614 : vector<2x8x8xf32> to vector<2x8x8xbf16>
    "tpu.trace_start"() <{level = 10 : i32, message = "bqd,bkd->bqk"}> : () -> ()
    %cst_392 = arith.constant dense<0.000000e+00> : vector<2x8x8xf32>
    %616 = tpu.matmul %611, %613, %cst_392 {dimension_numbers = #tpu.dot_dimension_numbers<[2], [2], [1], [1], [0, 0, 0, 1, 1, 1], [0], [0]>} : vector<2x8x8xbf16>, vector<2x8x8xbf16>, vector<2x8x8xf32> -> vector<2x8x8xf32>
    "tpu.trace_stop"() : () -> ()
    %617 = vector.shape_cast %232 : vector<8x8xf32> to vector<1x8x8xf32>
    %618 = vector.broadcast %617 : vector<1x8x8xf32> to vector<2x8x8xf32>
    %619 = arith.addf %616, %618 : vector<2x8x8xf32>
    %cst_393 = arith.constant dense<0xFF800000> : vector<2x8xf32>
    %620 = vector.multi_reduction <maximumf>, %619, %cst_393 [2] : vector<2x8x8xf32> to vector<2x8xf32>
    %621 = vector.shape_cast %620 : vector<2x8xf32> to vector<2x8x1xf32>
    %622 = vector.broadcast %621 : vector<2x8x1xf32> to vector<2x8x8xf32>
    %623 = arith.subf %619, %622 : vector<2x8x8xf32>
    %624 = math.exp %623 : vector<2x8x8xf32>
    %cst_394 = arith.constant dense<0.000000e+00> : vector<2x8xf32>
    %625 = vector.multi_reduction <add>, %624, %cst_394 [2] : vector<2x8x8xf32> to vector<2x8xf32>
    %626 = vector.shape_cast %625 : vector<2x8xf32> to vector<2x8x1xf32>
    %627 = tpu.reciprocal %626 {approx = true} : vector<2x8x1xf32> -> vector<2x8x1xf32>
    %628 = vector.broadcast %627 : vector<2x8x1xf32> to vector<2x8x8xf32>
    %629 = arith.mulf %624, %628 : vector<2x8x8xf32>
    %630 = arith.truncf %629 : vector<2x8x8xf32> to vector<2x8x8xbf16>
    "tpu.trace_start"() <{level = 10 : i32, message = "bqk,bkd->bqd"}> : () -> ()
    %cst_395 = arith.constant dense<0.000000e+00> : vector<2x8x8xf32>
    %631 = tpu.matmul %630, %615, %cst_395 {dimension_numbers = #tpu.dot_dimension_numbers<[2], [1], [1], [2], [0, 0, 0, 1, 1, 2], [0], [0]>} : vector<2x8x8xbf16>, vector<2x8x8xbf16>, vector<2x8x8xf32> -> vector<2x8x8xf32>
    "tpu.trace_stop"() : () -> ()
    %632 = vector.shape_cast %631 : vector<2x8x8xf32> to vector<16x8xf32>
    %c1_396 = arith.constant 1 : index
    %c1_397 = arith.constant 1 : index
    %c0_398 = arith.constant 0 : index
    %c0_399 = arith.constant 0 : index
    %633 = vector.load %arg14[%c1_396, %c1_397, %c0_398, %c0_399] : memref<2x4x8x32xbf16, #tpu.memory_space<vmem>>, vector<1x1x8x32xbf16>
    %634 = vector.shape_cast %633 : vector<1x1x8x32xbf16> to vector<8x32xbf16>
    %635 = arith.truncf %632 : vector<16x8xf32> to vector<16x8xbf16>
    %cst_400 = arith.constant dense<0.000000e+00> : vector<16x32xf32>
    %636 = tpu.matmul %635, %634, %cst_400 {dimension_numbers = #tpu.dot_dimension_numbers<[1], [0], [0], [1], [0, 0, 1, 1], [], []>} : vector<16x8xbf16>, vector<8x32xbf16>, vector<16x32xf32> -> vector<16x32xf32>
    %637 = arith.addf %585, %636 : vector<16x32xf32>
    %c1_401 = arith.constant 1 : index
    %c2_402 = arith.constant 2 : index
    %c0_403 = arith.constant 0 : index
    %c0_404 = arith.constant 0 : index
    %638 = vector.load %arg8[%c1_401, %c2_402, %c0_403, %c0_404] : memref<2x4x32x8xbf16, #tpu.memory_space<vmem>>, vector<1x1x32x8xbf16>
    %639 = vector.shape_cast %638 : vector<1x1x32x8xbf16> to vector<32x8xbf16>
    %640 = arith.truncf %532 : vector<16x32xf32> to vector<16x32xbf16>
    %cst_405 = arith.constant dense<0.000000e+00> : vector<16x8xf32>
    %641 = tpu.matmul %640, %639, %cst_405 {dimension_numbers = #tpu.dot_dimension_numbers<[1], [0], [0], [1], [0, 0, 1, 1], [], []>} : vector<16x32xbf16>, vector<32x8xbf16>, vector<16x8xf32> -> vector<16x8xf32>
    %c1_406 = arith.constant 1 : index
    %c2_407 = arith.constant 2 : index
    %c0_408 = arith.constant 0 : index
    %c0_409 = arith.constant 0 : index
    %642 = vector.load %arg9[%c1_406, %c2_407, %c0_408, %c0_409] : memref<2x4x1x8xf32, #tpu.memory_space<vmem>>, vector<1x1x1x8xf32>
    %643 = vector.shape_cast %642 : vector<1x1x1x8xf32> to vector<1x8xf32>
    %644 = vector.broadcast %643 : vector<1x8xf32> to vector<16x8xf32>
    %645 = arith.addf %641, %644 : vector<16x8xf32>
    %c1_410 = arith.constant 1 : index
    %c2_411 = arith.constant 2 : index
    %c0_412 = arith.constant 0 : index
    %c0_413 = arith.constant 0 : index
    %646 = vector.load %arg10[%c1_410, %c2_411, %c0_412, %c0_413] : memref<2x4x32x8xbf16, #tpu.memory_space<vmem>>, vector<1x1x32x8xbf16>
    %647 = vector.shape_cast %646 : vector<1x1x32x8xbf16> to vector<32x8xbf16>
    %648 = arith.truncf %532 : vector<16x32xf32> to vector<16x32xbf16>
    %cst_414 = arith.constant dense<0.000000e+00> : vector<16x8xf32>
    %649 = tpu.matmul %648, %647, %cst_414 {dimension_numbers = #tpu.dot_dimension_numbers<[1], [0], [0], [1], [0, 0, 1, 1], [], []>} : vector<16x32xbf16>, vector<32x8xbf16>, vector<16x8xf32> -> vector<16x8xf32>
    %c1_415 = arith.constant 1 : index
    %c2_416 = arith.constant 2 : index
    %c0_417 = arith.constant 0 : index
    %c0_418 = arith.constant 0 : index
    %650 = vector.load %arg11[%c1_415, %c2_416, %c0_417, %c0_418] : memref<2x4x1x8xf32, #tpu.memory_space<vmem>>, vector<1x1x1x8xf32>
    %651 = vector.shape_cast %650 : vector<1x1x1x8xf32> to vector<1x8xf32>
    %652 = vector.broadcast %651 : vector<1x8xf32> to vector<16x8xf32>
    %653 = arith.addf %649, %652 : vector<16x8xf32>
    %c1_419 = arith.constant 1 : index
    %c2_420 = arith.constant 2 : index
    %c0_421 = arith.constant 0 : index
    %c0_422 = arith.constant 0 : index
    %654 = vector.load %arg12[%c1_419, %c2_420, %c0_421, %c0_422] : memref<2x4x32x8xbf16, #tpu.memory_space<vmem>>, vector<1x1x32x8xbf16>
    %655 = vector.shape_cast %654 : vector<1x1x32x8xbf16> to vector<32x8xbf16>
    %656 = arith.truncf %532 : vector<16x32xf32> to vector<16x32xbf16>
    %cst_423 = arith.constant dense<0.000000e+00> : vector<16x8xf32>
    %657 = tpu.matmul %656, %655, %cst_423 {dimension_numbers = #tpu.dot_dimension_numbers<[1], [0], [0], [1], [0, 0, 1, 1], [], []>} : vector<16x32xbf16>, vector<32x8xbf16>, vector<16x8xf32> -> vector<16x8xf32>
    %c1_424 = arith.constant 1 : index
    %c2_425 = arith.constant 2 : index
    %c0_426 = arith.constant 0 : index
    %c0_427 = arith.constant 0 : index
    %658 = vector.load %arg13[%c1_424, %c2_425, %c0_426, %c0_427] : memref<2x4x1x8xf32, #tpu.memory_space<vmem>>, vector<1x1x1x8xf32>
    %659 = vector.shape_cast %658 : vector<1x1x1x8xf32> to vector<1x8xf32>
    %660 = vector.broadcast %659 : vector<1x8xf32> to vector<16x8xf32>
    %661 = arith.addf %657, %660 : vector<16x8xf32>
    %662 = vector.shape_cast %645 : vector<16x8xf32> to vector<2x8x8xf32>
    %663 = arith.truncf %662 : vector<2x8x8xf32> to vector<2x8x8xbf16>
    %664 = vector.shape_cast %653 : vector<16x8xf32> to vector<2x8x8xf32>
    %665 = arith.truncf %664 : vector<2x8x8xf32> to vector<2x8x8xbf16>
    %666 = vector.shape_cast %661 : vector<16x8xf32> to vector<2x8x8xf32>
    %667 = arith.truncf %666 : vector<2x8x8xf32> to vector<2x8x8xbf16>
    "tpu.trace_start"() <{level = 10 : i32, message = "bqd,bkd->bqk"}> : () -> ()
    %cst_428 = arith.constant dense<0.000000e+00> : vector<2x8x8xf32>
    %668 = tpu.matmul %663, %665, %cst_428 {dimension_numbers = #tpu.dot_dimension_numbers<[2], [2], [1], [1], [0, 0, 0, 1, 1, 1], [0], [0]>} : vector<2x8x8xbf16>, vector<2x8x8xbf16>, vector<2x8x8xf32> -> vector<2x8x8xf32>
    "tpu.trace_stop"() : () -> ()
    %669 = vector.shape_cast %234 : vector<8x8xf32> to vector<1x8x8xf32>
    %670 = vector.broadcast %669 : vector<1x8x8xf32> to vector<2x8x8xf32>
    %671 = arith.addf %668, %670 : vector<2x8x8xf32>
    %cst_429 = arith.constant dense<0xFF800000> : vector<2x8xf32>
    %672 = vector.multi_reduction <maximumf>, %671, %cst_429 [2] : vector<2x8x8xf32> to vector<2x8xf32>
    %673 = vector.shape_cast %672 : vector<2x8xf32> to vector<2x8x1xf32>
    %674 = vector.broadcast %673 : vector<2x8x1xf32> to vector<2x8x8xf32>
    %675 = arith.subf %671, %674 : vector<2x8x8xf32>
    %676 = math.exp %675 : vector<2x8x8xf32>
    %cst_430 = arith.constant dense<0.000000e+00> : vector<2x8xf32>
    %677 = vector.multi_reduction <add>, %676, %cst_430 [2] : vector<2x8x8xf32> to vector<2x8xf32>
    %678 = vector.shape_cast %677 : vector<2x8xf32> to vector<2x8x1xf32>
    %679 = tpu.reciprocal %678 {approx = true} : vector<2x8x1xf32> -> vector<2x8x1xf32>
    %680 = vector.broadcast %679 : vector<2x8x1xf32> to vector<2x8x8xf32>
    %681 = arith.mulf %676, %680 : vector<2x8x8xf32>
    %682 = arith.truncf %681 : vector<2x8x8xf32> to vector<2x8x8xbf16>
    "tpu.trace_start"() <{level = 10 : i32, message = "bqk,bkd->bqd"}> : () -> ()
    %cst_431 = arith.constant dense<0.000000e+00> : vector<2x8x8xf32>
    %683 = tpu.matmul %682, %667, %cst_431 {dimension_numbers = #tpu.dot_dimension_numbers<[2], [1], [1], [2], [0, 0, 0, 1, 1, 2], [0], [0]>} : vector<2x8x8xbf16>, vector<2x8x8xbf16>, vector<2x8x8xf32> -> vector<2x8x8xf32>
    "tpu.trace_stop"() : () -> ()
    %684 = vector.shape_cast %683 : vector<2x8x8xf32> to vector<16x8xf32>
    %c1_432 = arith.constant 1 : index
    %c2_433 = arith.constant 2 : index
    %c0_434 = arith.constant 0 : index
    %c0_435 = arith.constant 0 : index
    %685 = vector.load %arg14[%c1_432, %c2_433, %c0_434, %c0_435] : memref<2x4x8x32xbf16, #tpu.memory_space<vmem>>, vector<1x1x8x32xbf16>
    %686 = vector.shape_cast %685 : vector<1x1x8x32xbf16> to vector<8x32xbf16>
    %687 = arith.truncf %684 : vector<16x8xf32> to vector<16x8xbf16>
    %cst_436 = arith.constant dense<0.000000e+00> : vector<16x32xf32>
    %688 = tpu.matmul %687, %686, %cst_436 {dimension_numbers = #tpu.dot_dimension_numbers<[1], [0], [0], [1], [0, 0, 1, 1], [], []>} : vector<16x8xbf16>, vector<8x32xbf16>, vector<16x32xf32> -> vector<16x32xf32>
    %689 = arith.addf %637, %688 : vector<16x32xf32>
    %c1_437 = arith.constant 1 : index
    %c3_438 = arith.constant 3 : index
    %c0_439 = arith.constant 0 : index
    %c0_440 = arith.constant 0 : index
    %690 = vector.load %arg8[%c1_437, %c3_438, %c0_439, %c0_440] : memref<2x4x32x8xbf16, #tpu.memory_space<vmem>>, vector<1x1x32x8xbf16>
    %691 = vector.shape_cast %690 : vector<1x1x32x8xbf16> to vector<32x8xbf16>
    %692 = arith.truncf %532 : vector<16x32xf32> to vector<16x32xbf16>
    %cst_441 = arith.constant dense<0.000000e+00> : vector<16x8xf32>
    %693 = tpu.matmul %692, %691, %cst_441 {dimension_numbers = #tpu.dot_dimension_numbers<[1], [0], [0], [1], [0, 0, 1, 1], [], []>} : vector<16x32xbf16>, vector<32x8xbf16>, vector<16x8xf32> -> vector<16x8xf32>
    %c1_442 = arith.constant 1 : index
    %c3_443 = arith.constant 3 : index
    %c0_444 = arith.constant 0 : index
    %c0_445 = arith.constant 0 : index
    %694 = vector.load %arg9[%c1_442, %c3_443, %c0_444, %c0_445] : memref<2x4x1x8xf32, #tpu.memory_space<vmem>>, vector<1x1x1x8xf32>
    %695 = vector.shape_cast %694 : vector<1x1x1x8xf32> to vector<1x8xf32>
    %696 = vector.broadcast %695 : vector<1x8xf32> to vector<16x8xf32>
    %697 = arith.addf %693, %696 : vector<16x8xf32>
    %c1_446 = arith.constant 1 : index
    %c3_447 = arith.constant 3 : index
    %c0_448 = arith.constant 0 : index
    %c0_449 = arith.constant 0 : index
    %698 = vector.load %arg10[%c1_446, %c3_447, %c0_448, %c0_449] : memref<2x4x32x8xbf16, #tpu.memory_space<vmem>>, vector<1x1x32x8xbf16>
    %699 = vector.shape_cast %698 : vector<1x1x32x8xbf16> to vector<32x8xbf16>
    %700 = arith.truncf %532 : vector<16x32xf32> to vector<16x32xbf16>
    %cst_450 = arith.constant dense<0.000000e+00> : vector<16x8xf32>
    %701 = tpu.matmul %700, %699, %cst_450 {dimension_numbers = #tpu.dot_dimension_numbers<[1], [0], [0], [1], [0, 0, 1, 1], [], []>} : vector<16x32xbf16>, vector<32x8xbf16>, vector<16x8xf32> -> vector<16x8xf32>
    %c1_451 = arith.constant 1 : index
    %c3_452 = arith.constant 3 : index
    %c0_453 = arith.constant 0 : index
    %c0_454 = arith.constant 0 : index
    %702 = vector.load %arg11[%c1_451, %c3_452, %c0_453, %c0_454] : memref<2x4x1x8xf32, #tpu.memory_space<vmem>>, vector<1x1x1x8xf32>
    %703 = vector.shape_cast %702 : vector<1x1x1x8xf32> to vector<1x8xf32>
    %704 = vector.broadcast %703 : vector<1x8xf32> to vector<16x8xf32>
    %705 = arith.addf %701, %704 : vector<16x8xf32>
    %c1_455 = arith.constant 1 : index
    %c3_456 = arith.constant 3 : index
    %c0_457 = arith.constant 0 : index
    %c0_458 = arith.constant 0 : index
    %706 = vector.load %arg12[%c1_455, %c3_456, %c0_457, %c0_458] : memref<2x4x32x8xbf16, #tpu.memory_space<vmem>>, vector<1x1x32x8xbf16>
    %707 = vector.shape_cast %706 : vector<1x1x32x8xbf16> to vector<32x8xbf16>
    %708 = arith.truncf %532 : vector<16x32xf32> to vector<16x32xbf16>
    %cst_459 = arith.constant dense<0.000000e+00> : vector<16x8xf32>
    %709 = tpu.matmul %708, %707, %cst_459 {dimension_numbers = #tpu.dot_dimension_numbers<[1], [0], [0], [1], [0, 0, 1, 1], [], []>} : vector<16x32xbf16>, vector<32x8xbf16>, vector<16x8xf32> -> vector<16x8xf32>
    %c1_460 = arith.constant 1 : index
    %c3_461 = arith.constant 3 : index
    %c0_462 = arith.constant 0 : index
    %c0_463 = arith.constant 0 : index
    %710 = vector.load %arg13[%c1_460, %c3_461, %c0_462, %c0_463] : memref<2x4x1x8xf32, #tpu.memory_space<vmem>>, vector<1x1x1x8xf32>
    %711 = vector.shape_cast %710 : vector<1x1x1x8xf32> to vector<1x8xf32>
    %712 = vector.broadcast %711 : vector<1x8xf32> to vector<16x8xf32>
    %713 = arith.addf %709, %712 : vector<16x8xf32>
    %714 = vector.shape_cast %697 : vector<16x8xf32> to vector<2x8x8xf32>
    %715 = arith.truncf %714 : vector<2x8x8xf32> to vector<2x8x8xbf16>
    %716 = vector.shape_cast %705 : vector<16x8xf32> to vector<2x8x8xf32>
    %717 = arith.truncf %716 : vector<2x8x8xf32> to vector<2x8x8xbf16>
    %718 = vector.shape_cast %713 : vector<16x8xf32> to vector<2x8x8xf32>
    %719 = arith.truncf %718 : vector<2x8x8xf32> to vector<2x8x8xbf16>
    "tpu.trace_start"() <{level = 10 : i32, message = "bqd,bkd->bqk"}> : () -> ()
    %cst_464 = arith.constant dense<0.000000e+00> : vector<2x8x8xf32>
    %720 = tpu.matmul %715, %717, %cst_464 {dimension_numbers = #tpu.dot_dimension_numbers<[2], [2], [1], [1], [0, 0, 0, 1, 1, 1], [0], [0]>} : vector<2x8x8xbf16>, vector<2x8x8xbf16>, vector<2x8x8xf32> -> vector<2x8x8xf32>
    "tpu.trace_stop"() : () -> ()
    %721 = vector.shape_cast %236 : vector<8x8xf32> to vector<1x8x8xf32>
    %722 = vector.broadcast %721 : vector<1x8x8xf32> to vector<2x8x8xf32>
    %723 = arith.addf %720, %722 : vector<2x8x8xf32>
    %cst_465 = arith.constant dense<0xFF800000> : vector<2x8xf32>
    %724 = vector.multi_reduction <maximumf>, %723, %cst_465 [2] : vector<2x8x8xf32> to vector<2x8xf32>
    %725 = vector.shape_cast %724 : vector<2x8xf32> to vector<2x8x1xf32>
    %726 = vector.broadcast %725 : vector<2x8x1xf32> to vector<2x8x8xf32>
    %727 = arith.subf %723, %726 : vector<2x8x8xf32>
    %728 = math.exp %727 : vector<2x8x8xf32>
    %cst_466 = arith.constant dense<0.000000e+00> : vector<2x8xf32>
    %729 = vector.multi_reduction <add>, %728, %cst_466 [2] : vector<2x8x8xf32> to vector<2x8xf32>
    %730 = vector.shape_cast %729 : vector<2x8xf32> to vector<2x8x1xf32>
    %731 = tpu.reciprocal %730 {approx = true} : vector<2x8x1xf32> -> vector<2x8x1xf32>
    %732 = vector.broadcast %731 : vector<2x8x1xf32> to vector<2x8x8xf32>
    %733 = arith.mulf %728, %732 : vector<2x8x8xf32>
    %734 = arith.truncf %733 : vector<2x8x8xf32> to vector<2x8x8xbf16>
    "tpu.trace_start"() <{level = 10 : i32, message = "bqk,bkd->bqd"}> : () -> ()
    %cst_467 = arith.constant dense<0.000000e+00> : vector<2x8x8xf32>
    %735 = tpu.matmul %734, %719, %cst_467 {dimension_numbers = #tpu.dot_dimension_numbers<[2], [1], [1], [2], [0, 0, 0, 1, 1, 2], [0], [0]>} : vector<2x8x8xbf16>, vector<2x8x8xbf16>, vector<2x8x8xf32> -> vector<2x8x8xf32>
    "tpu.trace_stop"() : () -> ()
    %736 = vector.shape_cast %735 : vector<2x8x8xf32> to vector<16x8xf32>
    %c1_468 = arith.constant 1 : index
    %c3_469 = arith.constant 3 : index
    %c0_470 = arith.constant 0 : index
    %c0_471 = arith.constant 0 : index
    %737 = vector.load %arg14[%c1_468, %c3_469, %c0_470, %c0_471] : memref<2x4x8x32xbf16, #tpu.memory_space<vmem>>, vector<1x1x8x32xbf16>
    %738 = vector.shape_cast %737 : vector<1x1x8x32xbf16> to vector<8x32xbf16>
    %739 = arith.truncf %736 : vector<16x8xf32> to vector<16x8xbf16>
    %cst_472 = arith.constant dense<0.000000e+00> : vector<16x32xf32>
    %740 = tpu.matmul %739, %738, %cst_472 {dimension_numbers = #tpu.dot_dimension_numbers<[1], [0], [0], [1], [0, 0, 1, 1], [], []>} : vector<16x8xbf16>, vector<8x32xbf16>, vector<16x32xf32> -> vector<16x32xf32>
    %741 = arith.addf %689, %740 : vector<16x32xf32>
    %c1_473 = arith.constant 1 : index
    %c0_474 = arith.constant 0 : index
    %c0_475 = arith.constant 0 : index
    %742 = vector.load %arg15[%c1_473, %c0_474, %c0_475] : memref<2x1x32xf32, #tpu.memory_space<vmem>>, vector<1x1x32xf32>
    %743 = vector.shape_cast %742 : vector<1x1x32xf32> to vector<1x32xf32>
    %744 = vector.broadcast %743 : vector<1x32xf32> to vector<16x32xf32>
    %745 = arith.addf %741, %744 : vector<16x32xf32>
    %c1_476 = arith.constant 1 : index
    %c0_477 = arith.constant 0 : index
    %c0_478 = arith.constant 0 : index
    %746 = vector.load %arg16[%c1_476, %c0_477, %c0_478] : memref<2x2x32xf32, #tpu.memory_space<vmem>>, vector<1x2x32xf32>
    %747 = vector.shape_cast %746 : vector<1x2x32xf32> to vector<2x32xf32>
    %748 = arith.addf %532, %745 : vector<16x32xf32>
    %749 = vector.extract_strided_slice %747 {offsets = [0, 0], sizes = [1, 32], strides = [1, 1]} : vector<2x32xf32> to vector<1x32xf32>
    %750 = vector.extract_strided_slice %747 {offsets = [1, 0], sizes = [1, 32], strides = [1, 1]} : vector<2x32xf32> to vector<1x32xf32>
    %cst_479 = arith.constant dense<0.000000e+00> : vector<16xf32>
    %751 = vector.multi_reduction <add>, %748, %cst_479 [1] : vector<16x32xf32> to vector<16xf32>
    %752 = vector.shape_cast %751 : vector<16xf32> to vector<16x1xf32>
    %cst_480 = arith.constant 3.200000e+01 : f32
    %753 = vector.broadcast %cst_480 : f32 to vector<16x1xf32>
    %754 = arith.divf %752, %753 : vector<16x1xf32>
    %755 = vector.broadcast %754 : vector<16x1xf32> to vector<16x32xf32>
    %756 = arith.subf %748, %755 : vector<16x32xf32>
    %757 = arith.mulf %756, %756 : vector<16x32xf32>
    %cst_481 = arith.constant dense<0.000000e+00> : vector<16xf32>
    %758 = vector.multi_reduction <add>, %757, %cst_481 [1] : vector<16x32xf32> to vector<16xf32>
    %759 = vector.shape_cast %758 : vector<16xf32> to vector<16x1xf32>
    %cst_482 = arith.constant 3.200000e+01 : f32
    %760 = vector.broadcast %cst_482 : f32 to vector<16x1xf32>
    %761 = arith.divf %759, %760 : vector<16x1xf32>
    %762 = vector.broadcast %754 : vector<16x1xf32> to vector<16x32xf32>
    %763 = arith.subf %748, %762 : vector<16x32xf32>
    %cst_483 = arith.constant 9.99999974E-6 : f32
    %764 = vector.broadcast %cst_483 : f32 to vector<16x1xf32>
    %765 = arith.addf %761, %764 : vector<16x1xf32>
    %766 = math.rsqrt %765 : vector<16x1xf32>
    %767 = vector.broadcast %766 : vector<16x1xf32> to vector<16x32xf32>
    %768 = arith.mulf %763, %767 : vector<16x32xf32>
    %769 = vector.broadcast %749 : vector<1x32xf32> to vector<16x32xf32>
    %770 = arith.mulf %768, %769 : vector<16x32xf32>
    %771 = vector.broadcast %750 : vector<1x32xf32> to vector<16x32xf32>
    %772 = arith.addf %770, %771 : vector<16x32xf32>
    %c1_484 = arith.constant 1 : index
    %c0_485 = arith.constant 0 : index
    %c0_486 = arith.constant 0 : index
    %773 = vector.load %arg17[%c1_484, %c0_485, %c0_486] : memref<2x32x64xbf16, #tpu.memory_space<vmem>>, vector<1x32x64xbf16>
    %774 = vector.shape_cast %773 : vector<1x32x64xbf16> to vector<32x64xbf16>
    %775 = arith.truncf %772 : vector<16x32xf32> to vector<16x32xbf16>
    %cst_487 = arith.constant dense<0.000000e+00> : vector<16x64xf32>
    %776 = tpu.matmul %775, %774, %cst_487 {dimension_numbers = #tpu.dot_dimension_numbers<[1], [0], [0], [1], [0, 0, 1, 1], [], []>} : vector<16x32xbf16>, vector<32x64xbf16>, vector<16x64xf32> -> vector<16x64xf32>
    %c1_488 = arith.constant 1 : index
    %c0_489 = arith.constant 0 : index
    %c0_490 = arith.constant 0 : index
    %777 = vector.load %arg18[%c1_488, %c0_489, %c0_490] : memref<2x1x64xf32, #tpu.memory_space<vmem>>, vector<1x1x64xf32>
    %778 = vector.shape_cast %777 : vector<1x1x64xf32> to vector<1x64xf32>
    %779 = vector.broadcast %778 : vector<1x64xf32> to vector<16x64xf32>
    %780 = arith.addf %776, %779 : vector<16x64xf32>
    %cst_491 = arith.constant 5.000000e-01 : f32
    %781 = vector.broadcast %cst_491 : f32 to vector<16x64xf32>
    %782 = arith.mulf %781, %780 : vector<16x64xf32>
    %783 = arith.mulf %780, %780 : vector<16x64xf32>
    %784 = arith.mulf %783, %780 : vector<16x64xf32>
    %cst_492 = arith.constant 4.471500e-02 : f32
    %785 = vector.broadcast %cst_492 : f32 to vector<16x64xf32>
    %786 = arith.mulf %785, %784 : vector<16x64xf32>
    %787 = arith.addf %780, %786 : vector<16x64xf32>
    %cst_493 = arith.constant 0.797884583 : f32
    %788 = vector.broadcast %cst_493 : f32 to vector<16x64xf32>
    %789 = arith.mulf %788, %787 : vector<16x64xf32>
    %790 = math.tanh %789 : vector<16x64xf32>
    %cst_494 = arith.constant 1.000000e+00 : f32
    %791 = vector.broadcast %cst_494 : f32 to vector<16x64xf32>
    %792 = arith.addf %791, %790 : vector<16x64xf32>
    %793 = arith.mulf %782, %792 : vector<16x64xf32>
    %c1_495 = arith.constant 1 : index
    %c0_496 = arith.constant 0 : index
    %c0_497 = arith.constant 0 : index
    %794 = vector.load %arg19[%c1_495, %c0_496, %c0_497] : memref<2x64x32xbf16, #tpu.memory_space<vmem>>, vector<1x64x32xbf16>
    %795 = vector.shape_cast %794 : vector<1x64x32xbf16> to vector<64x32xbf16>
    %796 = arith.truncf %793 : vector<16x64xf32> to vector<16x64xbf16>
    %cst_498 = arith.constant dense<0.000000e+00> : vector<16x32xf32>
    %797 = tpu.matmul %796, %795, %cst_498 {dimension_numbers = #tpu.dot_dimension_numbers<[1], [0], [0], [1], [0, 0, 1, 1], [], []>} : vector<16x64xbf16>, vector<64x32xbf16>, vector<16x32xf32> -> vector<16x32xf32>
    %c1_499 = arith.constant 1 : index
    %c0_500 = arith.constant 0 : index
    %c0_501 = arith.constant 0 : index
    %798 = vector.load %arg20[%c1_499, %c0_500, %c0_501] : memref<2x1x32xf32, #tpu.memory_space<vmem>>, vector<1x1x32xf32>
    %799 = vector.shape_cast %798 : vector<1x1x32xf32> to vector<1x32xf32>
    %800 = vector.broadcast %799 : vector<1x32xf32> to vector<16x32xf32>
    %801 = arith.addf %797, %800 : vector<16x32xf32>
    %c1_502 = arith.constant 1 : index
    %c0_503 = arith.constant 0 : index
    %c0_504 = arith.constant 0 : index
    %802 = vector.load %arg21[%c1_502, %c0_503, %c0_504] : memref<2x2x32xf32, #tpu.memory_space<vmem>>, vector<1x2x32xf32>
    %803 = vector.shape_cast %802 : vector<1x2x32xf32> to vector<2x32xf32>
    %804 = arith.addf %772, %801 : vector<16x32xf32>
    %805 = vector.extract_strided_slice %803 {offsets = [0, 0], sizes = [1, 32], strides = [1, 1]} : vector<2x32xf32> to vector<1x32xf32>
    %806 = vector.extract_strided_slice %803 {offsets = [1, 0], sizes = [1, 32], strides = [1, 1]} : vector<2x32xf32> to vector<1x32xf32>
    %cst_505 = arith.constant dense<0.000000e+00> : vector<16xf32>
    %807 = vector.multi_reduction <add>, %804, %cst_505 [1] : vector<16x32xf32> to vector<16xf32>
    %808 = vector.shape_cast %807 : vector<16xf32> to vector<16x1xf32>
    %cst_506 = arith.constant 3.200000e+01 : f32
    %809 = vector.broadcast %cst_506 : f32 to vector<16x1xf32>
    %810 = arith.divf %808, %809 : vector<16x1xf32>
    %811 = vector.broadcast %810 : vector<16x1xf32> to vector<16x32xf32>
    %812 = arith.subf %804, %811 : vector<16x32xf32>
    %813 = arith.mulf %812, %812 : vector<16x32xf32>
    %cst_507 = arith.constant dense<0.000000e+00> : vector<16xf32>
    %814 = vector.multi_reduction <add>, %813, %cst_507 [1] : vector<16x32xf32> to vector<16xf32>
    %815 = vector.shape_cast %814 : vector<16xf32> to vector<16x1xf32>
    %cst_508 = arith.constant 3.200000e+01 : f32
    %816 = vector.broadcast %cst_508 : f32 to vector<16x1xf32>
    %817 = arith.divf %815, %816 : vector<16x1xf32>
    %818 = vector.broadcast %810 : vector<16x1xf32> to vector<16x32xf32>
    %819 = arith.subf %804, %818 : vector<16x32xf32>
    %cst_509 = arith.constant 9.99999974E-6 : f32
    %820 = vector.broadcast %cst_509 : f32 to vector<16x1xf32>
    %821 = arith.addf %817, %820 : vector<16x1xf32>
    %822 = math.rsqrt %821 : vector<16x1xf32>
    %823 = vector.broadcast %822 : vector<16x1xf32> to vector<16x32xf32>
    %824 = arith.mulf %819, %823 : vector<16x32xf32>
    %825 = vector.broadcast %805 : vector<1x32xf32> to vector<16x32xf32>
    %826 = arith.mulf %824, %825 : vector<16x32xf32>
    %827 = vector.broadcast %806 : vector<1x32xf32> to vector<16x32xf32>
    %828 = arith.addf %826, %827 : vector<16x32xf32>
    %829 = vector.shape_cast %828 : vector<16x32xf32> to vector<2x8x32xf32>
    %c0_510 = arith.constant 0 : index
    %c0_511 = arith.constant 0 : index
    %c0_512 = arith.constant 0 : index
    %830 = vector.load %arg22[%c0_510, %c0_511, %c0_512] : memref<2x8x32xf32, #tpu.memory_space<vmem>>, vector<2x8x32xf32>
    tpu.vector_store %arg22[%c0_510, %c0_511, %c0_512], %829 {strides = array<i32>} : memref<2x8x32xf32, #tpu.memory_space<vmem>>, vector<2x8x32xf32>,
    return
  }
  func.func @transform_0(%arg0: i32) -> (i32, i32, i32, i32) {
    %c0_i32 = arith.constant 0 : i32
    %c0_i32_0 = arith.constant 0 : i32
    %c0_i32_1 = arith.constant 0 : i32
    %c0_i32_2 = arith.constant 0 : i32
    return %arg0, %c0_i32, %c0_i32_0, %c0_i32_1 : i32, i32, i32, i32
  }
  func.func @transform_1(%arg0: i32) -> (i32, i32, i32) {
    %c0_i32 = arith.constant 0 : i32
    %c0_i32_0 = arith.constant 0 : i32
    %c0_i32_1 = arith.constant 0 : i32
    %c0_i32_2 = arith.constant 0 : i32
    return %c0_i32, %c0_i32_0, %c0_i32_1 : i32, i32, i32
  }
  func.func @transform_2(%arg0: i32) -> (i32, i32) {
    %c0_i32 = arith.constant 0 : i32
    %c0_i32_0 = arith.constant 0 : i32
    %c0_i32_1 = arith.constant 0 : i32
    return %c0_i32, %c0_i32_0 : i32, i32
  }
  func.func @transform_3(%arg0: i32) -> (i32, i32, i32) {
    %c0_i32 = arith.constant 0 : i32
    %c0_i32_0 = arith.constant 0 : i32
    %c0_i32_1 = arith.constant 0 : i32
    %c0_i32_2 = arith.constant 0 : i32
    return %c0_i32, %c0_i32_0, %c0_i32_1 : i32, i32, i32
  }
  func.func @transform_4(%arg0: i32) -> (i32, i32) {
    %c0_i32 = arith.constant 0 : i32
    %c0_i32_0 = arith.constant 0 : i32
    %c0_i32_1 = arith.constant 0 : i32
    return %c0_i32, %c0_i32_0 : i32, i32
  }
  func.func @transform_5(%arg0: i32) -> (i32, i32) {
    %c0_i32 = arith.constant 0 : i32
    %c0_i32_0 = arith.constant 0 : i32
    %c0_i32_1 = arith.constant 0 : i32
    return %c0_i32, %c0_i32_0 : i32, i32
  }
  func.func @transform_6(%arg0: i32) -> (i32, i32) {
    %c0_i32 = arith.constant 0 : i32
    %c0_i32_0 = arith.constant 0 : i32
    %c0_i32_1 = arith.constant 0 : i32
    return %c0_i32, %c0_i32_0 : i32, i32
  }
  func.func @transform_7(%arg0: i32) -> (i32, i32, i32, i32) {
    %c0_i32 = arith.constant 0 : i32
    %c0_i32_0 = arith.constant 0 : i32
    %c0_i32_1 = arith.constant 0 : i32
    %c0_i32_2 = arith.constant 0 : i32
    %c0_i32_3 = arith.constant 0 : i32
    return %c0_i32, %c0_i32_0, %c0_i32_1, %c0_i32_2 : i32, i32, i32, i32
  }
  func.func @transform_8(%arg0: i32) -> (i32, i32, i32, i32) {
    %c0_i32 = arith.constant 0 : i32
    %c0_i32_0 = arith.constant 0 : i32
    %c0_i32_1 = arith.constant 0 : i32
    %c0_i32_2 = arith.constant 0 : i32
    %c0_i32_3 = arith.constant 0 : i32
    return %c0_i32, %c0_i32_0, %c0_i32_1, %c0_i32_2 : i32, i32, i32, i32
  }
  func.func @transform_9(%arg0: i32) -> (i32, i32, i32, i32) {
    %c0_i32 = arith.constant 0 : i32
    %c0_i32_0 = arith.constant 0 : i32
    %c0_i32_1 = arith.constant 0 : i32
    %c0_i32_2 = arith.constant 0 : i32
    %c0_i32_3 = arith.constant 0 : i32
    return %c0_i32, %c0_i32_0, %c0_i32_1, %c0_i32_2 : i32, i32, i32, i32
  }
  func.func @transform_10(%arg0: i32) -> (i32, i32, i32, i32) {
    %c0_i32 = arith.constant 0 : i32
    %c0_i32_0 = arith.constant 0 : i32
    %c0_i32_1 = arith.constant 0 : i32
    %c0_i32_2 = arith.constant 0 : i32
    %c0_i32_3 = arith.constant 0 : i32
    return %c0_i32, %c0_i32_0, %c0_i32_1, %c0_i32_2 : i32, i32, i32, i32
  }
  func.func @transform_11(%arg0: i32) -> (i32, i32, i32, i32) {
    %c0_i32 = arith.constant 0 : i32
    %c0_i32_0 = arith.constant 0 : i32
    %c0_i32_1 = arith.constant 0 : i32
    %c0_i32_2 = arith.constant 0 : i32
    %c0_i32_3 = arith.constant 0 : i32
    return %c0_i32, %c0_i32_0, %c0_i32_1, %c0_i32_2 : i32, i32, i32, i32
  }
  func.func @transform_12(%arg0: i32) -> (i32, i32, i32, i32) {
    %c0_i32 = arith.constant 0 : i32
    %c0_i32_0 = arith.constant 0 : i32
    %c0_i32_1 = arith.constant 0 : i32
    %c0_i32_2 = arith.constant 0 : i32
    %c0_i32_3 = arith.constant 0 : i32
    return %c0_i32, %c0_i32_0, %c0_i32_1, %c0_i32_2 : i32, i32, i32, i32
  }
  func.func @transform_13(%arg0: i32) -> (i32, i32, i32, i32) {
    %c0_i32 = arith.constant 0 : i32
    %c0_i32_0 = arith.constant 0 : i32
    %c0_i32_1 = arith.constant 0 : i32
    %c0_i32_2 = arith.constant 0 : i32
    %c0_i32_3 = arith.constant 0 : i32
    return %c0_i32, %c0_i32_0, %c0_i32_1, %c0_i32_2 : i32, i32, i32, i32
  }
  func.func @transform_14(%arg0: i32) -> (i32, i32, i32) {
    %c0_i32 = arith.constant 0 : i32
    %c0_i32_0 = arith.constant 0 : i32
    %c0_i32_1 = arith.constant 0 : i32
    %c0_i32_2 = arith.constant 0 : i32
    return %c0_i32, %c0_i32_0, %c0_i32_1 : i32, i32, i32
  }
  func.func @transform_15(%arg0: i32) -> (i32, i32, i32) {
    %c0_i32 = arith.constant 0 : i32
    %c0_i32_0 = arith.constant 0 : i32
    %c0_i32_1 = arith.constant 0 : i32
    %c0_i32_2 = arith.constant 0 : i32
    return %c0_i32, %c0_i32_0, %c0_i32_1 : i32, i32, i32
  }
  func.func @transform_16(%arg0: i32) -> (i32, i32, i32) {
    %c0_i32 = arith.constant 0 : i32
    %c0_i32_0 = arith.constant 0 : i32
    %c0_i32_1 = arith.constant 0 : i32
    %c0_i32_2 = arith.constant 0 : i32
    return %c0_i32, %c0_i32_0, %c0_i32_1 : i32, i32, i32
  }
  func.func @transform_17(%arg0: i32) -> (i32, i32, i32) {
    %c0_i32 = arith.constant 0 : i32
    %c0_i32_0 = arith.constant 0 : i32
    %c0_i32_1 = arith.constant 0 : i32
    %c0_i32_2 = arith.constant 0 : i32
    return %c0_i32, %c0_i32_0, %c0_i32_1 : i32, i32, i32
  }
  func.func @transform_18(%arg0: i32) -> (i32, i32, i32) {
    %c0_i32 = arith.constant 0 : i32
    %c0_i32_0 = arith.constant 0 : i32
    %c0_i32_1 = arith.constant 0 : i32
    %c0_i32_2 = arith.constant 0 : i32
    return %c0_i32, %c0_i32_0, %c0_i32_1 : i32, i32, i32
  }
  func.func @transform_19(%arg0: i32) -> (i32, i32, i32) {
    %c0_i32 = arith.constant 0 : i32
    %c0_i32_0 = arith.constant 0 : i32
    %c0_i32_1 = arith.constant 0 : i32
    %c0_i32_2 = arith.constant 0 : i32
    return %c0_i32, %c0_i32_0, %c0_i32_1 : i32, i32, i32
  }
  func.func @transform_20(%arg0: i32) -> (i32, i32, i32) {
    %c0_i32 = arith.constant 0 : i32
    %c0_i32_0 = arith.constant 0 : i32
    %c0_i32_1 = arith.constant 0 : i32
    %c0_i32_2 = arith.constant 0 : i32
    return %c0_i32, %c0_i32_0, %c0_i32_1 : i32, i32, i32
  }
  func.func @transform_21(%arg0: i32) -> (i32, i32, i32) {
    %c0_i32 = arith.constant 0 : i32
    %c0_i32_0 = arith.constant 0 : i32
    %c0_i32_1 = arith.constant 0 : i32
    return %arg0, %c0_i32, %c0_i32_0 : i32, i32, i32
  }
}

</mosaic_0001>

<bundles_post_ra>
// kernel: tpu_custom_call.1
= control target key start
LH: loop header
LB: loop body
LE: loop exit
PB: predicated region body
PF: predicated region fallthrough
CT: control target
= control target key end

     0   :  { %s4726_s0 = inlined_call_operand.vmem [shape: f32[2,4,9,8], index: 0, kind: input, shape index: {}]   ;;  %s4727_s1 = inlined_call_operand.vmem [shape: bf16[5,8,32], index: 1, kind: input, shape index: {}]   ;;  %s4728_s2 = inlined_call_operand.vmem [shape: f32[3,32], index: 2, kind: input, shape index: {}]   ;;  %s4729_s3 = inlined_call_operand.vmem [shape: bf16[5,32,32], index: 3, kind: input, shape index: {}]   ;;  %s4730_s4 = inlined_call_operand.vmem [shape: f32[3,32], index: 4, kind: input, shape index: {}]   ;;  %s4731_s5 = inlined_call_operand.vmem [shape: bf16[32,32], index: 5, kind: input, shape index: {}]   ;;  %s4732_s6 = inlined_call_operand.vmem [shape: f32[1,32], index: 6, kind: input, shape index: {}]   ;;  %s4733_s7 = inlined_call_operand.vmem [shape: bf16[2,4,32,8], index: 7, kind: input, shape index: {}]   ;;  %s4734_s8 = inlined_call_operand.vmem [shape: f32[2,4,1,8], index: 8, kind: input, shape index: {}]   ;;  %s4735_s9 = inlined_call_operand.vmem [shape: bf16[2,4,32,8], index: 9, kind: input, shape index: {}]   ;;  %s4736_s10 = inlined_call_operand.vmem [shape: f32[2,4,1,8], index: 10, kind: input, shape index: {}]   ;;  %s4737_s11 = inlined_call_operand.vmem [shape: bf16[2,4,32,8], index: 11, kind: input, shape index: {}]   ;;  %s4738_s12 = inlined_call_operand.vmem [shape: f32[2,4,1,8], index: 12, kind: input, shape index: {}]   ;;  %s4739_s13 = inlined_call_operand.vmem [shape: bf16[2,4,8,32], index: 13, kind: input, shape index: {}]   ;;  %s4740_s14 = inlined_call_operand.vmem [shape: f32[2,1,32], index: 14, kind: input, shape index: {}]   ;;  %s4741_s15 = inlined_call_operand.vmem [shape: f32[2,2,32], index: 15, kind: input, shape index: {}]   ;;  %s4742_s16 = inlined_call_operand.vmem [shape: bf16[2,32,64], index: 16, kind: input, shape index: {}]   ;;  %s4743_s17 = inlined_call_operand.vmem [shape: f32[2,1,64], index: 17, kind: input, shape index: {}]   ;;  %s4744_s18 = inlined_call_operand.vmem [shape: bf16[2,64,32], index: 18, kind: input, shape index: {}]   ;;  %s4745_s19 = inlined_call_operand.vmem [shape: f32[2,1,32], index: 19, kind: input, shape index: {}]   ;;  %s4746_s20 = inlined_call_operand.vmem [shape: f32[2,2,32], index: 20, kind: input, shape index: {}]   ;;  %s4747_s21 = inlined_call_operand.hbm [shape: f32[2,8,32], index: 21, kind: output, shape index: {}]  }
   0x1   :  { %4752 = sst [smem:[#allocation7_spill]] %s4726_s0 }
   0x2   :  { %4753 = sst [smem:[#allocation8_spill]] %s4727_s1 }
   0x3   :  { %4754 = sst [smem:[#allocation9_spill]] %s4728_s2 }
   0x4   :  { %4755 = sst [smem:[#allocation10_spill]] %s4729_s3 }
   0x5   :  { %4756 = sst [smem:[#allocation11_spill]] %s4730_s4 }
   0x6   :  { %4757 = sst [smem:[#allocation12_spill]] %s4731_s5 }
   0x7   :  { %s4758_s26 = sld [smem:[#allocation8_spill]]  ;;  %vm106_vm0 = vcmask 1043456   ;;  %vm102_vm1 = vcmask 64512   ;;  %vm90_vm2 = vcmask 1046528  }
   0x8   :  { %s4759_s0 = sld [smem:[#allocation7_spill]] }
   0xd   :  { %v99_v0 = vld [vmem:[%s4758_s26] sm:$0xf]  ;;  %v3108_v1 = vld [vmem:[%s4758_s26 + $0x4] sm:$0xf]  ;;  %v3110_v5 = vld [vmem:[%s4758_s26 + $0x8] sm:$0xf] }
   0xe   :  { %v72_v2 = vld [vmem:[%s4759_s0] sm:$0xff]  ;;  %v108_v3 = vsel %vm106_vm0, %v99_v0, 0  ;;  %v131_v4 = vsel %vm106_vm0, %v3108_v1, 0  ;;  %v3112_v6 = vld [vmem:[%s4758_s26 + $0xc] sm:$0xf]  ;;  %v156_v7 = vsel %vm106_vm0, %v3110_v5, 0 }
   0xf   :  { %117 = vmatpush.bf16.msra.mxu0 %v108_v3  ;;  %140 = vmatpush.bf16.msra.mxu1 %v131_v4  ;;  %v181_v8 = vsel %vm106_vm0, %v3112_v6, 0  ;;  %v79_v9 = vld [vmem:[%s4759_s0 + $0x40] sm:$0xff]  ;;  %v74_v10 = vld [vmem:[%s4759_s0 + $0x10] sm:$0xff]  ;;  %v73_v22 = vld [vmem:[%s4759_s0 + $0x8] sm:$0x1]  ;;  %v91_v24 = vrot.slane %v72_v2, 1 }
  0x10   :  { %165 = vmatpush.bf16.msra.mxu2 %v156_v7  ;;  %190 = vmatpush.bf16.msra.mxu3 %v181_v8  ;;  %v100_v11 = vpack.c.bf16 %v79_v9, %v72_v2  ;;  %v81_v12 = vld [vmem:[%s4759_s0 + $0x50] sm:$0xff]  ;;  %v76_v14 = vld [vmem:[%s4759_s0 + $0x20] sm:$0xff]  ;;  %v80_v23 = vld [vmem:[%s4759_s0 + $0x48] sm:$0x1]  ;;  %v94_v25 = vrot.slane %v79_v9, 1  ;;  %v92_v26 = vrot.slane %v73_v22, 1 }
  0x11   :  { %v126_v13 = vpack.c.bf16 %v81_v12, %v74_v10  ;;  %v83_v15 = vld [vmem:[%s4759_s0 + $0x60] sm:$0xff]  ;;  %v78_v17 = vld [vmem:[%s4759_s0 + $0x30] sm:$0xff]  ;;  %v95_v27 = vrot.slane %v80_v23, 1 }
  0x12   :  { %3107 = vmatmul.msk.bf16.vlgmr.msra.gmra.mxu0 %vm102_vm1, %v100_v11  ;;  %v151_v16 = vpack.c.bf16 %v83_v15, %v76_v14  ;;  %v85_v18 = vld [vmem:[%s4759_s0 + $0x70] sm:$0xff]  ;;  %v93_v28 = vsel %vm90_vm2, %v91_v24, %v92_v26 }
  0x13   :  { %255 = vmatpush.bf16.msrb.mxu1 %v108_v3  ;;  %v3114_v19 = vld [vmem:[%s4758_s26 + $0x10] sm:$0xf]  ;;  %v176_v20 = vpack.c.bf16 %v85_v18, %v78_v17  ;;  %v96_v29 = vsel %vm90_vm2, %v94_v25, %v95_v27 }
  0x14   :  { %269 = vmatpush.bf16.msrb.mxu2 %v131_v4  ;;  %285 = vmatpush.bf16.msrb.mxu3 %v156_v7  ;;  %v206_v21 = vsel %vm106_vm0, %v3114_v19, 0  ;;  %v201_v30 = vpack.c.bf16 %v96_v29, %v93_v28 }
  0x15   :  { %3109 = vmatmul.msk.bf16.vlgmr.msra.gmra.mxu1 %vm102_vm1, %v126_v13  ;;  %3111 = vmatmul.msk.bf16.vlgmr.msra.gmra.mxu2 %vm102_vm1, %v151_v16 }
  0x16   :  { %215 = vmatpush.bf16.msrb.mxu0 %v206_v21  ;;  %3113 = vmatmul.msk.bf16.vlgmr.msra.gmra.mxu3 %vm102_vm1, %v176_v20 }
  0x17   :  { %325 = vmatpush.bf16.msra.mxu1 %v206_v21 }
  0x1a   :  { %305 = vmatpush.bf16.msra.mxu0 %v181_v8 }
  0x1b   :  { %26 = vsyncpa [#allocation5], 0  ;;  %v75_v31 = vld [vmem:[%s4759_s0 + $0x18] sm:$0x1]  ;;  %v77_v33 = vld [vmem:[%s4759_s0 + $0x28] sm:$0x1] }
  0x1c   :  { %v82_v32 = vld [vmem:[%s4759_s0 + $0x58] sm:$0x1]  ;;  %v84_v34 = vld [vmem:[%s4759_s0 + $0x68] sm:$0x1]  ;;  %v228_v35 = vrot.slane %v74_v10, 1  ;;  %v229_v36 = vrot.slane %v75_v31, 1 }
  0x1d   :  { %v231_v37 = vrot.slane %v81_v12, 1  ;;  %v232_v38 = vrot.slane %v82_v32, 1  ;;  %v240_v39 = vrot.slane %v76_v14, 1  ;;  %v241_v40 = vrot.slane %v77_v33, 1  ;;  %s4760_s24 = sld [smem:[#allocation9_spill]]  ;;  %s3095_s2 = sshll.u32 %s4747_s21, 4  ;;  %s3096_s2 = int_to_ptr.hbm [resolvable:$true] %s3095_s2 }
  0x1e   :  { %v243_v41 = vrot.slane %v83_v15, 1  ;;  %v244_v42 = vrot.slane %v84_v34, 1  ;;  %v230_v43 = vsel %vm90_vm2, %v228_v35, %v229_v36  ;;  %s4761_s27 = sld [smem:[#allocation10_spill]]  ;;  %vm356_vm4 = vcmask 261120   ;;  %s3858_s25 = smov 128  }
  0x1f   :  { %v233_v44 = vsel %vm90_vm2, %v231_v37, %v232_v38  ;;  %v242_v45 = vsel %vm90_vm2, %v240_v39, %v241_v40  ;;  %vm359_vm5 = vcmask 253952   ;;  %vm362_vm8 = vcmask 261127   ;;  %s4762_s30 = sld [smem:[#allocation11_spill]] }
  0x20   :  { %v245_v46 = vsel %vm90_vm2, %v243_v41, %v244_v42  ;;  %v294_v47 = vpack.c.bf16 %v233_v44, %v230_v43  ;;  %s4763_s23 = sld [smem:[#allocation12_spill]] }
  0x21   :  { %v314_v48 = vpack.c.bf16 %v245_v46, %v242_v45 }
  0x22   :  { %3115 = vmatmul.msk.bf16.vlgmr.msrb.gmra.mxu0 %vm102_vm1, %v201_v30 }
  0x23   :  { %v70_v49 = vld [vmem:[%s4760_s24] sm:$0x7] }
  0x24   :  { %v4051_v51 = vperm.slane %v70_v49, 0  ;;  %v3634_v54 = vld [vmem:[%s4761_s27 + $0x8] sm:$0xff]  ;;  %v3633_v62 = vld [vmem:[%s4761_s27] sm:$0xff]  ;;  %v4067_v7 = vperm.slane %v70_v49, 1  ;;  %v4069_v11 = vperm.slane %v70_v49, 2  ;;  %v3636_v14 = vld [vmem:[%s4761_s27 + $0x18] sm:$0xff] }
  0x25   :  { %3116 = vmatmul.msk.bf16.vlgmr.msrb.gmra.mxu1 %vm102_vm1, %v151_v16  ;;  %3117 = vmatmul.msk.bf16.vlgmr.msrb.gmra.mxu2 %vm102_vm1, %v176_v20  ;;  %v3638_v55 = vld [vmem:[%s4761_s27 + $0x28] sm:$0xff]  ;;  %v3637_v63 = vld [vmem:[%s4761_s27 + $0x20] sm:$0xff]  ;;  %v4078_v15 = vld [vmem:[%s4761_s27 + $0x38] sm:$0xff] }
  0x26   :  { %3118 = vmatmul.msk.bf16.vlgmr.msrb.gmra.mxu3 %vm102_vm1, %v201_v30  ;;  %408 = vmatpush.bf16.msra.mxu2 %v3634_v54  ;;  %v4083_v16 = vld [vmem:[%s4761_s27 + $0x48] sm:$0xff]  ;;  %v3635_v20 = vld [vmem:[%s4761_s27 + $0x10] sm:$0xff]  ;;  %v4098_v26 = vld [vmem:[%s4761_s27 + $0x40] sm:$0xff] }
  0x27   :  { %480 = vmatpush.bf16.msrb.mxu0 %v3638_v55  ;;  %443 = vmatpush.bf16.msra.mxu3 %v3636_v14  ;;  %v3639_v25 = vld [vmem:[%s4761_s27 + $0x30] sm:$0xff] }
  0x28   :  { %517 = vmatpush.bf16.msrb.mxu1 %v4078_v15 }
  0x2a   :  { %409 = vmatpush.bf16.msra.mxu2 %v3633_v62 }
  0x2b   :  { %481 = vmatpush.bf16.msrb.mxu0 %v3637_v63  ;;  %444 = vmatpush.bf16.msra.mxu3 %v3635_v20 }
  0x2c   :  { %518 = vmatpush.bf16.msrb.mxu1 %v3639_v25 }
  0x2e   :  { %554 = vmatpush.bf16.msrb.mxu2 %v4083_v16 }
  0x2f   :  { %572 = vmatpush.bf16.msrb.mxu3 %v3634_v54 }
  0x32   :  { %3119 = vmatmul.msk.bf16.vlgmr.msra.gmra.mxu0 %vm102_vm1, %v294_v47  ;;  %555 = vmatpush.bf16.msrb.mxu2 %v4098_v26 }
  0x33   :  { %586 = vmatpush.bf16.msra.mxu0 %v3636_v14  ;;  %573 = vmatpush.bf16.msrb.mxu3 %v3633_v62 }
  0x35   :  { %3120 = vmatmul.msk.bf16.vlgmr.msra.gmra.mxu1 %vm102_vm1, %v314_v48 }
  0x36   :  { %602 = vmatpush.bf16.msra.mxu1 %v3638_v55 }
  0x37   :  { %587 = vmatpush.bf16.msra.mxu0 %v3635_v20 }
  0x3a   :  { %603 = vmatpush.bf16.msra.mxu1 %v3637_v63 }
  0x8f   :  { %v119_v50 = vpop.f32.mrf.mxu0 }
  0x90   :  { %v120_v53 = vadd.f32 %v119_v50, %v4051_v51 }
  0x92   :  { %v142_v52 = vpop.f32.mrf.mxu1 }
  0x93   :  { %v147_v57 = vadd.f32 %v142_v52, %v120_v53 }
  0x97   :  { %v121_v56 = vpop.f32.mrf.mxu0 }
  0x98   :  { %v167_v58 = vpop.f32.mrf.mxu2  ;;  %v122_v0 = vadd.f32 %v121_v56, %v4051_v51 }
  0x99   :  { %v192_v60 = vpop.f32.mrf.mxu3  ;;  %v172_v61 = vadd.f32 %v167_v58, %v147_v57 }
  0x9a   :  { %v144_v59 = vpop.f32.mrf.mxu1 }
  0x9b   :  { %v197_v1 = vadd.f32 %v192_v60, %v172_v61  ;;  %v148_v3 = vadd.f32 %v144_v59, %v122_v0 }
  0x9f   :  { %v217_v2 = vpop.f32.mrf.mxu0 }
  0xa0   :  { %v169_v4 = vpop.f32.mrf.mxu2  ;;  %v222_v5 = vadd.f32 %v217_v2, %v197_v1 }
  0xa1   :  { %v194_v8 = vpop.f32.mrf.mxu3  ;;  %v173_v9 = vadd.f32 %v169_v4, %v148_v3 }
  0xa2   :  { %v257_v6 = vpop.f32.mrf.mxu1  ;;  %vm334_vm3 = vcmp.gt.f32.partialorder %v222_v5, 0.0  ;;  %v336_v10 = vmul.f32 0.2, %v222_v5 }
  0xa3   :  { %v198_v17 = vadd.f32 %v194_v8, %v173_v9  ;;  %v258_v21 = vadd.f32 %v257_v6, %v4051_v51 }
  0xa4   :  { %v338_v12 = vsel %vm334_vm3, %v222_v5, %v336_v10 }
  0xa5   :  { %v341_v13 = vmul.f32 %v4067_v7, %v338_v12 }
  0xa7   :  { %v344_v18 = vadd.f32 %v4069_v11, %v341_v13  ;;  %v219_v19 = vpop.f32.mrf.mxu0 }
  0xa8   :  { %v271_v22 = vpop.f32.mrf.mxu2  ;;  %v223_v23 = vadd.f32 %v219_v19, %v198_v17  ;;  %v71_v17 = vld [vmem:[%s4762_s30] sm:$0x7] }
  0xa9   :  { %357 = vst.msk [vmem:[#allocation2 + $0x1] sm:$0xff] %vm356_vm4, %v344_v18  ;;  %v276_v27 = vadd.f32 %v271_v22, %v258_v21  ;;  %v287_v29 = vpop.f32.mrf.mxu3  ;;  %v386_v19 = vperm.slane %v71_v17, 0  ;;  %v3644_v21 = vld [vmem:[%s4763_s23 + $0x8] sm:$0xff] }
  0xaa   :  { %v259_v24 = vpop.f32.mrf.mxu1  ;;  %360 = vst.msk [vmem:[#allocation2] sm:$0x1] %vm359_vm5, %v344_v18  ;;  %vm335_vm6 = vcmp.gt.f32.partialorder %v223_v23, 0.0  ;;  %v337_v28 = vmul.f32 0.2, %v223_v23 }
  0xab   :  { %367 = vst.msk [vmem:[#allocation3] sm:$0x1] %vm359_vm5, %v344_v18  ;;  %v292_v32 = vadd.f32 %v287_v29, %v276_v27  ;;  %v260_v35 = vadd.f32 %v259_v24, %v4051_v51 }
  0xac   :  { %v339_v30 = vsel %vm335_vm6, %v223_v23, %v337_v28  ;;  %v3643_v23 = vld [vmem:[%s4763_s23] sm:$0xff] }
  0xad   :  { %v342_v31 = vmul.f32 %v4067_v7, %v339_v30 }
  0xaf   :  { %v345_v33 = vadd.f32 %v4069_v11, %v342_v31  ;;  %v307_v34 = vpop.f32.mrf.mxu0 }
  0xb0   :  { %v273_v36 = vpop.f32.mrf.mxu2  ;;  %v312_v37 = vadd.f32 %v307_v34, %v292_v32  ;;  %v375_v48 = vld [vmem:[#allocation2 + $0x1] sm:$0xff] }
  0xb1   :  { %358 = vst.msk [vmem:[#allocation2 + $0x11] sm:$0xff] %vm356_vm4, %v345_v33  ;;  %v277_v39 = vadd.f32 %v273_v36, %v260_v35  ;;  %v289_v42 = vpop.f32.mrf.mxu3  ;;  %v371_v52 = vld [vmem:[#allocation2] sm:$0xff] }
  0xb2   :  { %v327_v38 = vpop.f32.mrf.mxu1  ;;  %361 = vst.msk [vmem:[#allocation2 + $0x10] sm:$0x1] %vm359_vm5, %v345_v33 }
  0xb3   :  { %v332_v40 = vadd.f32 %v327_v38, %v312_v37  ;;  %368 = vst.msk [vmem:[#allocation3 + $0x10] sm:$0x1] %vm359_vm5, %v345_v33  ;;  %v293_v43 = vadd.f32 %v289_v42, %v277_v39 }
  0xb5   :  { %vm346_vm7 = vcmp.gt.f32.partialorder %v332_v40, 0.0  ;;  %v348_v41 = vmul.f32 0.2, %v332_v40 }
  0xb7   :  { %v350_v44 = vsel %vm346_vm7, %v332_v40, %v348_v41  ;;  %v309_v46 = vpop.f32.mrf.mxu0 }
  0xb8   :  { %v352_v45 = vmul.f32 %v350_v44, %v4067_v7  ;;  %v313_v47 = vadd.f32 %v309_v46, %v293_v43  ;;  %v376_v49 = vld [vmem:[#allocation2 + $0x11] sm:$0xff] }
  0xb9   :  { %v372_v53 = vld [vmem:[#allocation2 + $0x10] sm:$0xff]  ;;  %v458_v54 = vpack.c.bf16 %v376_v49, %v375_v48 }
  0xba   :  { %v354_v50 = vadd.f32 %v352_v45, %v4069_v11  ;;  %v329_v51 = vpop.f32.mrf.mxu1  ;;  %v385_v56 = vpack.c.bf16 %v372_v53, %v371_v52 }
  0xbb   :  { %v333_v55 = vadd.f32 %v329_v51, %v313_v47  ;;  %3155 = vmatmul.msk.bf16.vlgmr.msrb.gmra.mxu0 %vm356_vm4, %v458_v54 }
  0xbc   :  { %363 = vst.msk [vmem:[#allocation2 + $0x2] sm:$0x80] %vm362_vm8, %v354_v50  ;;  %3129 = vmatmul.msk.bf16.vlgmr.msra.gmra.mxu2 %vm356_vm4, %v385_v56  ;;  %702 = vmatpush.bf16.msrb.mxu0 %v3644_v21 }
  0xbd   :  { %365 = vst.msk [vmem:[#allocation3 + $0x1] sm:$0xff] %vm356_vm4, %v354_v50  ;;  %vm347_vm9 = vcmp.gt.f32.partialorder %v333_v55, 0.0  ;;  %v349_v57 = vmul.f32 0.2, %v333_v55  ;;  %618 = vmatpush.bf16.msra.mxu2 %v4078_v15 }
  0xbe   :  { %369 = vst.msk [vmem:[#allocation3 + $0x2] sm:$0x80] %vm362_vm8, %v354_v50 }
  0xbf   :  { %v351_v58 = vsel %vm347_vm9, %v333_v55, %v349_v57  ;;  %v654_v55 = vperm.slane %v71_v17, 1  ;;  %vm1831_vm9 = vcmask 523264  }
  0xc0   :  { %v353_v59 = vmul.f32 %v351_v58, %v4067_v7  ;;  %703 = vmatpush.bf16.msrb.mxu0 %v3643_v23  ;;  %v3712_v23 = vld [vmem:[%s4738_s12] ss:$0 sm:$0xff] }
  0xc1   :  { %619 = vmatpush.bf16.msra.mxu2 %v3639_v25 }
  0xc2   :  { %v355_v60 = vadd.f32 %v353_v59, %v4069_v11 }
  0xc3   :  { %v379_v62 = vld [vmem:[#allocation2 + $0x2] sm:$0xff] }
  0xc4   :  { %364 = vst.msk [vmem:[#allocation2 + $0x12] sm:$0x80] %vm362_vm8, %v355_v60  ;;  %v373_v61 = vld [vmem:[#allocation3] sm:$0xff] }
  0xc5   :  { %366 = vst.msk [vmem:[#allocation3 + $0x11] sm:$0xff] %vm356_vm4, %v355_v60  ;;  %v377_v1 = vld [vmem:[#allocation3 + $0x1] sm:$0xff] }
  0xc6   :  { %370 = vst.msk [vmem:[#allocation3 + $0x12] sm:$0x80] %vm362_vm8, %v355_v60  ;;  %v564_v7 = vld [vmem:[#allocation3 + $0x2] sm:$0xff] }
  0xcb   :  { %v380_v63 = vld [vmem:[#allocation2 + $0x12] sm:$0xff]  ;;  %3183 = vmatmul.msk.bf16.vlgmr.msra.gmra.mxu0 %vm356_vm4, %v458_v54 }
  0xcc   :  { %v374_v0 = vld [vmem:[#allocation3 + $0x10] sm:$0xff]  ;;  %v532_v3 = vpack.c.bf16 %v380_v63, %v379_v62  ;;  %v657_v62 = vperm.slane %v71_v17, 2  ;;  %v3709_v17 = vld [vmem:[%s4732_s6] ss:$0 sm:$0xff] }
  0xcd   :  { %v378_v2 = vld [vmem:[#allocation3 + $0x11] sm:$0xff]  ;;  %v421_v4 = vpack.c.bf16 %v374_v0, %v373_v61 }
  0xce   :  { %v495_v5 = vpack.c.bf16 %v378_v2, %v377_v1  ;;  %3181 = vmatmul.msk.bf16.vlgmr.msrb.gmra.mxu2 %vm356_vm4, %v532_v3  ;;  %v565_v6 = vld [vmem:[#allocation3 + $0x12] sm:$0xff] }
  0xcf   :  { %3142 = vmatmul.msk.bf16.vlgmr.msra.gmra.mxu3 %vm356_vm4, %v421_v4  ;;  %v628_v8 = vpack.c.bf16 %v565_v6, %v564_v7 }
  0xd0   :  { %3168 = vmatmul.msk.bf16.vlgmr.msrb.gmra.mxu1 %vm356_vm4, %v495_v5  ;;  %638 = vmatpush.bf16.msra.mxu3 %v4083_v16 }
  0xd4   :  { %639 = vmatpush.bf16.msra.mxu3 %v4098_v26 }
  0xde   :  { %3185 = vmatmul.msk.bf16.vlgmr.msra.gmra.mxu2 %vm356_vm4, %v532_v3 }
  0xdf   :  { %3182 = vmatmul.msk.bf16.vlgmr.msrb.gmra.mxu3 %vm356_vm4, %v421_v4 }
  0xe0   :  { %3184 = vmatmul.msk.bf16.vlgmr.msra.gmra.mxu1 %vm356_vm4, %v495_v5 }
  0xef   :  { %3186 = vmatmul.msk.bf16.vlgmr.msra.gmra.mxu3 %vm356_vm4, %v628_v8 }
 0x138   :  { %v483_v10 = vpop.f32.mrf.mxu0 }
 0x13f   :  { %v411_v9 = vpop.f32.mrf.mxu2 }
 0x140   :  { %v485_v16 = vpop.f32.mrf.mxu0  ;;  %v412_v24 = vadd.f32 %v411_v9, %v386_v19 }
 0x147   :  { %v413_v11 = vpop.f32.mrf.mxu2 }
 0x148   :  { %v414_v25 = vadd.f32 %v413_v11, %v386_v19  ;;  %v589_v27 = vpop.f32.mrf.mxu0  ;;  %v3648_v11 = vld [vmem:[%s4735_s9 + $0x8] sm:$0xff] }
 0x149   :  { %787 = vmatpush.bf16.msrb.mxu2 %v3648_v11 }
 0x14d   :  { %v520_v13 = vpop.f32.mrf.mxu1 }
 0x150   :  { %v591_v40 = vpop.f32.mrf.mxu0 }
 0x151   :  { %v557_v14 = vpop.f32.mrf.mxu2 }
 0x152   :  { %v446_v12 = vpop.f32.mrf.mxu3 }
 0x153   :  { %v451_v28 = vadd.f32 %v446_v12, %v412_v24  ;;  %v3650_v12 = vld [vmem:[%s4737_s11 + $0x8] sm:$0xff] }
 0x154   :  { %821 = vmatpush.bf16.msrb.mxu3 %v3650_v12 }
 0x155   :  { %v522_v18 = vpop.f32.mrf.mxu1  ;;  %v488_v33 = vadd.f32 %v483_v10, %v451_v28  ;;  %v3646_v10 = vld [vmem:[%s4733_s7 + $0x8] sm:$0xff] }
 0x156   :  { %753 = vmatpush.bf16.msrb.mxu1 %v3646_v10 }
 0x157   :  { %v525_v38 = vadd.f32 %v520_v13, %v488_v33  ;;  %v3645_v13 = vld [vmem:[%s4733_s7] sm:$0xff] }
 0x159   :  { %v559_v22 = vpop.f32.mrf.mxu2  ;;  %v562_v44 = vadd.f32 %v557_v14, %v525_v38  ;;  %v3647_v14 = vld [vmem:[%s4735_s9] sm:$0xff] }
 0x15a   :  { %v448_v15 = vpop.f32.mrf.mxu3  ;;  %754 = vmatpush.bf16.msrb.mxu1 %v3645_v13  ;;  %788 = vmatpush.bf16.msrb.mxu2 %v3647_v14 }
 0x15b   :  { %v452_v29 = vadd.f32 %v448_v15, %v414_v25  ;;  %v650_v50 = vmul.f32 0.2, %v562_v44  ;;  %vm648_vm11 = vcmp.gt.f32.partialorder %v562_v44, 0.0  ;;  %v3649_v15 = vld [vmem:[%s4737_s11] sm:$0xff] }
 0x15c   :  { %822 = vmatpush.bf16.msrb.mxu3 %v3649_v15 }
 0x15d   :  { %v605_v31 = vpop.f32.mrf.mxu1  ;;  %v489_v34 = vadd.f32 %v485_v16, %v452_v29  ;;  %v652_v57 = vsel %vm648_vm11, %v562_v44, %v650_v50  ;;  %v3710_v29 = vld [vmem:[%s4734_s8] ss:$0 sm:$0xff] }
 0x15e   :  { %v655_v63 = vmul.f32 %v654_v55, %v652_v57 }
 0x15f   :  { %v526_v39 = vadd.f32 %v522_v18, %v489_v34 }
 0x160   :  { %v658_v4 = vadd.f32 %v657_v62, %v655_v63 }
 0x161   :  { %v621_v37 = vpop.f32.mrf.mxu2  ;;  %v563_v45 = vadd.f32 %v559_v22, %v526_v39  ;;  %v3711_v22 = vld [vmem:[%s4736_s10] ss:$0 sm:$0xff] }
 0x162   :  { %v575_v20 = vpop.f32.mrf.mxu3 }
 0x163   :  { %v576_v26 = vadd.f32 %v575_v20, %v386_v19  ;;  %v651_v51 = vmul.f32 0.2, %v563_v45  ;;  %vm649_vm12 = vcmp.gt.f32.partialorder %v563_v45, 0.0 }
 0x165   :  { %v594_v30 = vadd.f32 %v589_v27, %v576_v26  ;;  %v607_v47 = vpop.f32.mrf.mxu1  ;;  %v653_v58 = vsel %vm649_vm12, %v563_v45, %v651_v51  ;;  %v710_v51 = vlaneseq }
 0x166   :  { %v656_v0 = vmul.f32 %v654_v55, %v653_v58 }
 0x167   :  { %v610_v35 = vadd.f32 %v605_v31, %v594_v30  ;;  %v3652_v31 = vld [vmem:[%s4733_s7 + $0x18] sm:$0xff] }
 0x168   :  { %v659_v5 = vadd.f32 %v657_v62, %v656_v0 }
 0x169   :  { %v626_v41 = vadd.f32 %v621_v37, %v610_v35  ;;  %v623_v52 = vpop.f32.mrf.mxu2 }
 0x16a   :  { %v577_v32 = vpop.f32.mrf.mxu3 }
 0x16b   :  { %v578_v36 = vadd.f32 %v577_v32, %v386_v19 }
 0x16d   :  { %v595_v42 = vadd.f32 %v591_v40, %v578_v36  ;;  %v3651_v36 = vld [vmem:[%s4733_s7 + $0x10] sm:$0xff] }
 0x16f   :  { %v611_v48 = vadd.f32 %v607_v47, %v595_v42 }
 0x171   :  { %v627_v53 = vadd.f32 %v623_v52, %v611_v48  ;;  %v711_v52 = vshrl.u32 %v710_v51, 7 }
 0x172   :  { %v641_v43 = vpop.f32.mrf.mxu3 }
 0x173   :  { %v646_v46 = vadd.f32 %v641_v43, %v626_v41  ;;  %v3654_v43 = vld [vmem:[%s4735_s9 + $0x18] sm:$0xff] }
 0x175   :  { %v662_v49 = vmul.f32 0.2, %v646_v46  ;;  %vm660_vm10 = vcmp.gt.f32.partialorder %v646_v46, 0.0 }
 0x177   :  { %v664_v54 = vsel %vm660_vm10, %v646_v46, %v662_v49  ;;  %v3653_v49 = vld [vmem:[%s4735_s9 + $0x10] sm:$0xff] }
 0x178   :  { %v666_v60 = vmul.f32 %v664_v54, %v654_v55 }
 0x17a   :  { %v643_v56 = vpop.f32.mrf.mxu3  ;;  %v668_v2 = vadd.f32 %v666_v60, %v657_v62 }
 0x17b   :  { %v647_v59 = vadd.f32 %v643_v56, %v627_v53  ;;  %v713_v53 = vand.u32 127, %v710_v51 }
 0x17c   :  { %v670_v7 = vmax.f32 %v658_v4, %v668_v2  ;;  %v3713_v2 = vld [vmem:[%s4734_s8 + $0x1] ss:$0 sm:$0xff] }
 0x17d   :  { %vm661_vm13 = vcmp.gt.f32.partialorder %v647_v59, 0.0  ;;  %v663_v61 = vmul.f32 0.2, %v647_v59  ;;  %v714_v54 = vsub.s32 %v711_v52, %v713_v53  ;;  %v935_v52 = vld [vmem:[%s4739_s13] sm:$0xf] }
 0x17e   :  { %v1178_v53 = vsel %vm106_vm0, %v935_v52, 0 }
 0x17f   :  { %v665_v1 = vsel %vm661_vm13, %v647_v59, %v663_v61  ;;  %vm715_vm14 = vcmp.lt.s32.totalorder %v714_v54, 0 }
 0x180   :  { %v667_v3 = vmul.f32 %v665_v1, %v654_v55  ;;  %v716_v55 = vsub.s32 0, %v714_v54 }
 0x182   :  { %v669_v6 = vadd.f32 %v667_v3, %v657_v62  ;;  %v717_v56 = vsel %vm715_vm14, %v716_v55, %v714_v54 }
 0x183   :  { %v4209_v57 = vcvt.s32.f32 %v717_v56 }
 0x184   :  { %v671_v8 = vmax.f32 %v659_v5, %v669_v6  ;;  %v3714_v6 = vld [vmem:[%s4736_s10 + $0x1] ss:$0 sm:$0xff] }
 0x185   :  { %v4212_v58 = vmul.f32 -0.25, %v4209_v57 }
 0x186   :  { %v676_v9 = vpack.c.bf16 %v671_v8, %v670_v7 }
 0x188   :  { %3195 = vmatmul.msk.bf16.vlgmr.msrb.gmra.mxu0 %vm356_vm4, %v676_v9 }
 0x205   :  { %v705_v16 = vpop.f32.mrf.mxu0 }
 0x206   :  { %v4164_v19 = vadd.f32 %v3709_v17, %v705_v16 }
 0x20d   :  { %v707_v18 = vpop.f32.mrf.mxu0 }
 0x20e   :  { %v4166_v20 = vadd.f32 %v3709_v17, %v707_v18 }
 0x210   :  { %v4170_v21 = vpack.c.bf16 %v4166_v20, %v4164_v19 }
 0x212   :  { %3204 = vmatmul.msk.bf16.vlgmr.msrb.gmra.mxu1 %vm356_vm4, %v4170_v21  ;;  %3213 = vmatmul.msk.bf16.vlgmr.msrb.gmra.mxu2 %vm356_vm4, %v4170_v21 }
 0x213   :  { %3222 = vmatmul.msk.bf16.vlgmr.msrb.gmra.mxu3 %vm356_vm4, %v4170_v21 }
 0x28f   :  { %v756_v27 = vpop.f32.mrf.mxu1 }
 0x290   :  { %v757_v35 = vadd.f32 %v3710_v29, %v756_v27 }
 0x292   :  { %v829_v41 = vpack.c.bf16 %v757_v35, %v757_v35 }
 0x295   :  { %v790_v24 = vpop.f32.mrf.mxu2 }
 0x296   :  { %v791_v25 = vadd.f32 %v3711_v22, %v790_v24  ;;  %v824_v26 = vpop.f32.mrf.mxu3 }
 0x297   :  { %v825_v28 = vadd.f32 %v3712_v23, %v824_v26  ;;  %v758_v44 = vpop.f32.mrf.mxu1 }
 0x298   :  { %v831_v30 = vpack.c.bf16 %v791_v25, %v791_v25  ;;  %v759_v48 = vadd.f32 %v3710_v29, %v758_v44 }
 0x299   :  { %v833_v32 = vpack.c.bf16 %v825_v28, %v825_v28 }
 0x29a   :  { %v839_v33 = vsel %vm102_vm1, %v831_v30, 0  ;;  %v830_v50 = vpack.c.bf16 %v759_v48, %v759_v48 }
 0x29b   :  { %v901_v34 = vsel %vm106_vm0, %v833_v32, 0  ;;  %848 = vmatpush.bf16.xpose.msra.mxu0 %v839_v33 }
 0x29c   :  { %910 = vmatpush.bf16.msra.mxu2 %v901_v34 }
 0x29d   :  { %v792_v37 = vpop.f32.mrf.mxu2 }
 0x29e   :  { %v793_v38 = vadd.f32 %v3711_v22, %v792_v37  ;;  %v826_v39 = vpop.f32.mrf.mxu3  ;;  %v3655_v37 = vld [vmem:[%s4737_s11 + $0x10] sm:$0xff] }
 0x29f   :  { %v827_v40 = vadd.f32 %v3712_v23, %v826_v39 }
 0x2a0   :  { %v832_v42 = vpack.c.bf16 %v793_v38, %v793_v38 }
 0x2a1   :  { %v834_v45 = vpack.c.bf16 %v827_v40, %v827_v40 }
 0x2a2   :  { %3223 = vmatmul.msk.bf16.vlgmr.msra.gmra.mxu0 %vm102_vm1, %v829_v41  ;;  %v858_v46 = vsel %vm102_vm1, %v832_v42, 0 }
 0x2a3   :  { %965 = vmatpush.bf16.msrb.mxu0 %v3652_v31  ;;  %867 = vmatpush.bf16.xpose.msra.mxu1 %v858_v46  ;;  %v920_v47 = vsel %vm106_vm0, %v834_v45, 0  ;;  %v4230_v31 = vmul.f32 -0.0625, %v4209_v57 }
 0x2a4   :  { %929 = vmatpush.bf16.msra.mxu3 %v920_v47 }
 0x2a7   :  { %966 = vmatpush.bf16.msrb.mxu0 %v3651_v36  ;;  %v3656_v36 = vld [vmem:[%s4737_s11 + $0x18] sm:$0xff] }
 0x2a8   :  { %1037 = vmatpush.bf16.msrb.mxu2 %v3656_v36 }
 0x2aa   :  { %3224 = vmatmul.msk.bf16.vlgmr.msra.gmra.mxu1 %vm102_vm1, %v830_v50 }
 0x2ab   :  { %1001 = vmatpush.bf16.msrb.mxu1 %v3654_v43 }
 0x2ac   :  { %1038 = vmatpush.bf16.msrb.mxu2 %v3655_v37 }
 0x2af   :  { %1002 = vmatpush.bf16.msrb.mxu1 %v3653_v49 }
 0x2b2   :  { %3240 = vmatmul.msk.bf16.vlgmr.msrb.gmra.mxu0 %vm356_vm4, %v4170_v21 }
 0x2ba   :  { %3254 = vmatmul.msk.bf16.vlgmr.msrb.gmra.mxu1 %vm356_vm4, %v4170_v21 }
 0x31f   :  { %v850_v59 = vpop.f32.mrf.mxu0 }
 0x320   :  { %v851_v60 = vadd.f32 %v850_v59, %v4212_v58 }
 0x322   :  { %v873_v61 = vsel %vm102_vm1, %v851_v60, -inf }
 0x323   :  { %874 = vmax.xlane.f32.xlu1 %v873_v61 }
 0x327   :  { %v852_v62 = vpop.f32.mrf.mxu0  ;;  %v869_v63 = vpop.f32.mrf.mxu1 }
 0x328   :  { %v870_v0 = vadd.f32 %v869_v63, %v4212_v58 }
 0x32a   :  { %v876_v1 = vsel %vm102_vm1, %v870_v0, -inf }
 0x32b   :  { %877 = vmax.xlane.f32.xlu0 %v876_v1 }
 0x32f   :  { %v871_v3 = vpop.f32.mrf.mxu1  ;;  %v968_v4 = vpop.f32.mrf.mxu0 }
 0x330   :  { %v969_v5 = vadd.f32 %v3713_v2, %v968_v4 }
 0x332   :  { %v1045_v46 = vpack.c.bf16 %v969_v5, %v969_v5 }
 0x337   :  { %v1004_v7 = vpop.f32.mrf.mxu1  ;;  %v970_v14 = vpop.f32.mrf.mxu0 }
 0x338   :  { %v1005_v8 = vadd.f32 %v3714_v6, %v1004_v7  ;;  %v971_v16 = vadd.f32 %v3713_v2, %v970_v14 }
 0x33a   :  { %v1047_v9 = vpack.c.bf16 %v1005_v8, %v1005_v8  ;;  %v1046_v17 = vpack.c.bf16 %v971_v16, %v971_v16 }
 0x33c   :  { %v1055_v10 = vsel %vm102_vm1, %v1047_v9, 0  ;;  %v3660_v9 = vld [vmem:[%s4735_s9 + $0x28] sm:$0xff] }
 0x33d   :  { %1064 = vmatpush.bf16.xpose.msrb.mxu3 %v1055_v10 }
 0x33f   :  { %v1006_v11 = vpop.f32.mrf.mxu1 }
 0x340   :  { %v1007_v12 = vadd.f32 %v3714_v6, %v1006_v11  ;;  %v3659_v11 = vld [vmem:[%s4735_s9 + $0x20] sm:$0xff] }
 0x342   :  { %v1048_v13 = vpack.c.bf16 %v1007_v12, %v1007_v12 }
 0x344   :  { %v1074_v15 = vsel %vm102_vm1, %v1048_v13, 0 }
 0x345   :  { %1083 = vmatpush.bf16.xpose.msra.mxu0 %v1074_v15 }
 0x34c   :  { %3270 = vmatmul.msk.bf16.vlgmr.msra.gmra.mxu0 %vm102_vm1, %v1046_v17 }
 0x34d   :  { %1187 = vmatpush.bf16.msrb.mxu0 %v1178_v53 }
 0x396   :  { %v875_v18 = vpop.xlane.xlu1 %874 }
 0x397   :  { %v879_v22 = vsub.f32 %v851_v60, %v875_v18  ;;  %v3715_v60 = vld [vmem:[%s4738_s12 + $0x1] ss:$0 sm:$0xff] }
 0x399   :  { %v881_v23 = vmul.f32 1.442695, %v879_v22 }
 0x39b   :  { %3740 = vpow2.f32 %v881_v23 }
 0x39e   :  { %v878_v24 = vpop.xlane.xlu0 %877 }
 0x39f   :  { %v880_v25 = vsub.f32 %v870_v0, %v878_v24 }
 0x3a1   :  { %v3741_v26 = vpop.eup %3740  ;;  %v883_v27 = vmul.f32 1.442695, %v880_v25 }
 0x3a2   :  { %v885_v28 = vsel %vm102_vm1, %v3741_v26, 0.0 }
 0x3a3   :  { %3742 = vpow2.f32 %v883_v27  ;;  %886 = vadd.xlane.f32.xlu1 %v885_v28 }
 0x3a9   :  { %v3743_v29 = vpop.eup %3742 }
 0x3aa   :  { %v888_v30 = vsel %vm102_vm1, %v3743_v29, 0.0 }
 0x3ab   :  { %889 = vadd.xlane.f32.xlu0 %v888_v30 }
 0x3c9   :  { %v1085_v32 = vpop.f32.mrf.mxu0 }
 0x3ca   :  { %v1086_v33 = vadd.f32 %v1085_v32, %v4230_v31  ;;  %v3658_v32 = vld [vmem:[%s4733_s7 + $0x28] sm:$0xff] }
 0x3cc   :  { %v1092_v34 = vsel %vm102_vm1, %v1086_v33, -inf }
 0x3cd   :  { %1093 = vmax.xlane.f32.xlu2 %v1092_v34 }
 0x3d1   :  { %v1087_v35 = vpop.f32.mrf.mxu0 }
 0x416   :  { %v887_v38 = vpop.xlane.xlu1 %886 }
 0x417   :  { %3744 = vrcp.f32 %v887_v38 }
 0x41d   :  { %v3745_v39 = vpop.eup %3744 }
 0x41e   :  { %v893_v40 = vmul.f32 %v3745_v39, %v3741_v26  ;;  %v890_v41 = vpop.xlane.xlu0 %889  ;;  %v3716_v26 = vld [vmem:[%s4736_s10 + $0x2] ss:$0 sm:$0xff] }
 0x41f   :  { %3746 = vrcp.f32 %v890_v41 }
 0x420   :  { %v895_v42 = vpack.c.bf16 %v893_v40, %v893_v40 }
 0x422   :  { %3225 = vmatmul.msk.bf16.vlgmr.msra.gmra.mxu2 %vm102_vm1, %v895_v42  ;;  %v3273_v42 = vld [vmem:[%s4739_s13 + $0x4] sm:$0xf] }
 0x425   :  { %v3747_v43 = vpop.eup %3746 }
 0x426   :  { %v894_v44 = vmul.f32 %v3747_v43, %v3743_v29  ;;  %v1158_v43 = vsel %vm106_vm0, %v3273_v42, 0 }
 0x428   :  { %v896_v45 = vpack.c.bf16 %v894_v44, %v894_v44  ;;  %v3662_v44 = vld [vmem:[%s4737_s11 + $0x28] sm:$0xff] }
 0x42a   :  { %3226 = vmatmul.msk.bf16.vlgmr.msra.gmra.mxu3 %vm102_vm1, %v896_v45  ;;  %v3661_v45 = vld [vmem:[%s4737_s11 + $0x20] sm:$0xff] }
 0x42b   :  { %1167 = vmatpush.bf16.msra.mxu3 %v1158_v43 }
 0x432   :  { %3268 = vmatmul.msk.bf16.vlgmr.msrb.gmra.mxu2 %vm356_vm4, %v4170_v21 }
 0x43a   :  { %3269 = vmatmul.msk.bf16.vlgmr.msrb.gmra.mxu3 %vm102_vm1, %v1045_v46  ;;  %v3664_v46 = vld [vmem:[%s4733_s7 + $0x38] sm:$0xff] }
 0x43b   :  { %1294 = vmatpush.bf16.msrb.mxu3 %v3662_v44  ;;  %v3322_v44 = vld [vmem:[%s4739_s13 + $0x8] sm:$0xf] }
 0x43f   :  { %1295 = vmatpush.bf16.msrb.mxu3 %v3661_v45  ;;  %v1415_v45 = vsel %vm106_vm0, %v3322_v44, 0 }
 0x440   :  { %v1094_v47 = vpop.xlane.xlu2 %1093 }
 0x441   :  { %v1096_v48 = vsub.f32 %v1086_v33, %v1094_v47  ;;  %v3657_v33 = vld [vmem:[%s4733_s7 + $0x20] sm:$0xff]  ;;  %v3663_v47 = vld [vmem:[%s4733_s7 + $0x30] sm:$0xff] }
 0x443   :  { %v1099_v49 = vmul.f32 1.442695, %v1096_v48 }
 0x445   :  { %3748 = vpow2.f32 %v1099_v49 }
 0x44b   :  { %v3749_v50 = vpop.eup %3748 }
 0x44c   :  { %v1104_v51 = vsel %vm102_vm1, %v3749_v50, 0.0 }
 0x44d   :  { %1105 = vadd.xlane.f32.xlu0 %v1104_v51  ;;  %v3717_v51 = vld [vmem:[%s4734_s8 + $0x2] ss:$0 sm:$0xff] }
 0x4a5   :  { %v912_v54 = vpop.f32.mrf.mxu2 }
 0x4ad   :  { %v914_v55 = vpop.f32.mrf.mxu2  ;;  %v931_v56 = vpop.f32.mrf.mxu3 }
 0x4ae   :  { %v936_v59 = vpack.c.bf16 %v931_v56, %v912_v54 }
 0x4b0   :  { %3275 = vmatmul.msk.bf16.vlgmr.msrb.gmra.mxu0 %vm102_vm1, %v936_v59 }
 0x4b5   :  { %v933_v61 = vpop.f32.mrf.mxu3  ;;  %v1040_v62 = vpop.f32.mrf.mxu2 }
 0x4b6   :  { %v1041_v63 = vadd.f32 %v3715_v60, %v1040_v62 }
 0x4b8   :  { %v1049_v0 = vpack.c.bf16 %v1041_v63, %v1041_v63 }
 0x4ba   :  { %v1117_v1 = vsel %vm106_vm0, %v1049_v0, 0  ;;  %v4317_v0 = vmul.f32 -0.015625, %v4209_v57 }
 0x4bb   :  { %1126 = vmatpush.bf16.msra.mxu1 %v1117_v1 }
 0x4bd   :  { %v1042_v2 = vpop.f32.mrf.mxu2  ;;  %v1066_v3 = vpop.f32.mrf.mxu3 }
 0x4be   :  { %v1043_v4 = vadd.f32 %v3715_v60, %v1042_v2  ;;  %v1067_v5 = vadd.f32 %v1066_v3, %v4230_v31  ;;  %v3718_v3 = vld [vmem:[%s4738_s12 + $0x2] ss:$0 sm:$0xff] }
 0x4bf   :  { %1222 = vmatpush.bf16.msrb.mxu1 %v3658_v32  ;;  %v3666_v32 = vld [vmem:[%s4735_s9 + $0x38] sm:$0xff] }
 0x4c0   :  { %v1050_v6 = vpack.c.bf16 %v1043_v4, %v1043_v4  ;;  %v1106_v7 = vpop.xlane.xlu0 %1105  ;;  %v1089_v8 = vsel %vm102_vm1, %v1067_v5, -inf }
 0x4c1   :  { %3750 = vrcp.f32 %v1106_v7  ;;  %1090 = vmax.xlane.f32.xlu2 %v1089_v8 }
 0x4c2   :  { %v1136_v10 = vsel %vm106_vm0, %v1050_v6, 0 }
 0x4c3   :  { %1145 = vmatpush.bf16.msra.mxu2 %v1136_v10  ;;  %1223 = vmatpush.bf16.msrb.mxu1 %v3657_v33  ;;  %v3665_v33 = vld [vmem:[%s4735_s9 + $0x30] sm:$0xff] }
 0x4c5   :  { %v1068_v12 = vpop.f32.mrf.mxu3 }
 0x4c7   :  { %1258 = vmatpush.bf16.msrb.mxu2 %v3660_v9  ;;  %v3751_v13 = vpop.eup %3750 }
 0x4c8   :  { %v1110_v14 = vmul.f32 %v3751_v13, %v3749_v50 }
 0x4ca   :  { %v1112_v15 = vpack.c.bf16 %v1110_v14, %v1110_v14 }
 0x4cb   :  { %1259 = vmatpush.bf16.msrb.mxu2 %v3659_v11 }
 0x4cc   :  { %3272 = vmatmul.msk.bf16.vlgmr.msra.gmra.mxu2 %vm102_vm1, %v1112_v15 }
 0x4dc   :  { %3303 = vmatmul.msk.bf16.vlgmr.msrb.gmra.mxu2 %vm356_vm4, %v4170_v21 }
 0x52d   :  { %v4308_v60 = vpop.f32.mrf.mxu0 }
 0x534   :  { %v1091_v16 = vpop.xlane.xlu2 %1090 }
 0x535   :  { %v1095_v17 = vsub.f32 %v1067_v5, %v1091_v16  ;;  %v4312_v62 = vpop.f32.mrf.mxu0 }
 0x537   :  { %v1097_v18 = vmul.f32 1.442695, %v1095_v17 }
 0x539   :  { %3752 = vpow2.f32 %v1097_v18 }
 0x53f   :  { %v3753_v22 = vpop.eup %3752 }
 0x540   :  { %v1101_v23 = vsel %vm102_vm1, %v3753_v22, 0.0 }
 0x541   :  { %1102 = vadd.xlane.f32.xlu1 %v1101_v23 }
 0x54f   :  { %v1147_v24 = vpop.f32.mrf.mxu2 }
 0x557   :  { %v1149_v25 = vpop.f32.mrf.mxu2 }
 0x55f   :  { %v1261_v27 = vpop.f32.mrf.mxu2 }
 0x560   :  { %v1262_v28 = vadd.f32 %v3716_v26, %v1261_v27 }
 0x562   :  { %v1304_v29 = vpack.c.bf16 %v1262_v28, %v1262_v28 }
 0x564   :  { %v1312_v30 = vsel %vm102_vm1, %v1304_v29, 0 }
 0x565   :  { %1321 = vmatpush.bf16.xpose.msra.mxu0 %v1312_v30 }
 0x567   :  { %v1263_v35 = vpop.f32.mrf.mxu2 }
 0x568   :  { %v1264_v36 = vadd.f32 %v3716_v26, %v1263_v35  ;;  %v3667_v35 = vld [vmem:[%s4737_s11 + $0x30] sm:$0xff] }
 0x56a   :  { %v1305_v38 = vpack.c.bf16 %v1264_v36, %v1264_v36 }
 0x56c   :  { %v1331_v41 = vsel %vm102_vm1, %v1305_v38, 0 }
 0x56d   :  { %1424 = vmatpush.bf16.msrb.mxu0 %v1415_v45 }
 0x5b4   :  { %v1103_v34 = vpop.xlane.xlu1 %1102 }
 0x5b5   :  { %3754 = vrcp.f32 %v1103_v34  ;;  %v3668_v34 = vld [vmem:[%s4737_s11 + $0x38] sm:$0xff] }
 0x5bb   :  { %v3755_v37 = vpop.eup %3754 }
 0x5bc   :  { %v1109_v39 = vmul.f32 %v3755_v37, %v3753_v22 }
 0x5be   :  { %v1111_v40 = vpack.c.bf16 %v1109_v39, %v1109_v39 }
 0x5c0   :  { %3271 = vmatmul.msk.bf16.vlgmr.msra.gmra.mxu1 %vm102_vm1, %v1111_v40 }
 0x5c1   :  { %1340 = vmatpush.bf16.xpose.msra.mxu1 %v1331_v41 }
 0x5d0   :  { %3289 = vmatmul.msk.bf16.vlgmr.msrb.gmra.mxu1 %vm356_vm4, %v4170_v21 }
 0x5d1   :  { %1461 = vmatpush.bf16.msrb.mxu1 %v3664_v46 }
 0x5d5   :  { %1462 = vmatpush.bf16.msrb.mxu1 %v3663_v47 }
 0x63d   :  { %v1128_v48 = vpop.f32.mrf.mxu1 }
 0x63e   :  { %v1153_v49 = vpack.c.bf16 %v1147_v24, %v1128_v48 }
 0x640   :  { %3274 = vmatmul.msk.bf16.vlgmr.msra.gmra.mxu3 %vm102_vm1, %v1153_v49 }
 0x645   :  { %v1130_v50 = vpop.f32.mrf.mxu1 }
 0x646   :  { %v3720_v50 = vld [vmem:[%s4736_s10 + $0x3] ss:$0 sm:$0xff] }
 0x64d   :  { %v1225_v52 = vpop.f32.mrf.mxu1 }
 0x64e   :  { %v1226_v53 = vadd.f32 %v3717_v51, %v1225_v52 }
 0x650   :  { %v1302_v54 = vpack.c.bf16 %v1226_v53, %v1226_v53  ;;  %3317 = vmatmul.msk.bf16.vlgmr.msrb.gmra.mxu3 %vm356_vm4, %v4170_v21 }
 0x652   :  { %3318 = vmatmul.msk.bf16.vlgmr.msra.gmra.mxu0 %vm102_vm1, %v1302_v54  ;;  %v3719_v54 = vld [vmem:[%s4734_s8 + $0x3] ss:$0 sm:$0xff] }
 0x655   :  { %v1227_v55 = vpop.f32.mrf.mxu1 }
 0x656   :  { %v1228_v56 = vadd.f32 %v3717_v51, %v1227_v55 }
 0x658   :  { %v1303_v59 = vpack.c.bf16 %v1228_v56, %v1228_v56 }
 0x65a   :  { %3319 = vmatmul.msk.bf16.vlgmr.msra.gmra.mxu1 %vm102_vm1, %v1303_v59  ;;  %v3721_v59 = vld [vmem:[%s4738_s12 + $0x3] ss:$0 sm:$0xff] }
 0x66a   :  { %3337 = vmatmul.msk.bf16.vlgmr.msrb.gmra.mxu1 %vm356_vm4, %v4170_v21 }
 0x6c3   :  { %v4310_v61 = vpop.f32.mrf.mxu3 }
 0x6cb   :  { %v4314_v63 = vpop.f32.mrf.mxu3 }
 0x6cf   :  { %v1323_v1 = vpop.f32.mrf.mxu0 }
 0x6d0   :  { %v1324_v2 = vadd.f32 %v1323_v1, %v4317_v0 }
 0x6d2   :  { %v1346_v4 = vsel %vm102_vm1, %v1324_v2, -inf }
 0x6d3   :  { %v1297_v5 = vpop.f32.mrf.mxu3  ;;  %1347 = vmax.xlane.f32.xlu2 %v1346_v4 }
 0x6d4   :  { %v1298_v6 = vadd.f32 %v3718_v3, %v1297_v5 }
 0x6d6   :  { %v1306_v7 = vpack.c.bf16 %v1298_v6, %v1298_v6 }
 0x6d7   :  { %v1325_v8 = vpop.f32.mrf.mxu0  ;;  %v1342_v9 = vpop.f32.mrf.mxu1 }
 0x6d8   :  { %v1374_v10 = vsel %vm106_vm0, %v1306_v7, 0  ;;  %v1343_v11 = vadd.f32 %v1342_v9, %v4317_v0 }
 0x6d9   :  { %1383 = vmatpush.bf16.msra.mxu2 %v1374_v10 }
 0x6da   :  { %v1349_v12 = vsel %vm102_vm1, %v1343_v11, -inf }
 0x6db   :  { %v1299_v13 = vpop.f32.mrf.mxu3  ;;  %1350 = vmax.xlane.f32.xlu0 %v1349_v12 }
 0x6dc   :  { %v1300_v14 = vadd.f32 %v3718_v3, %v1299_v13 }
 0x6dd   :  { %1497 = vmatpush.bf16.msrb.mxu2 %v3666_v32 }
 0x6de   :  { %v1307_v15 = vpack.c.bf16 %v1300_v14, %v1300_v14 }
 0x6df   :  { %v1344_v16 = vpop.f32.mrf.mxu1 }
 0x6e0   :  { %v1393_v17 = vsel %vm106_vm0, %v1307_v15, 0 }
 0x6e1   :  { %1402 = vmatpush.bf16.msra.mxu3 %v1393_v17  ;;  %1498 = vmatpush.bf16.msrb.mxu2 %v3665_v33 }
 0x6e5   :  { %1533 = vmatpush.bf16.msrb.mxu3 %v3668_v34 }
 0x6e7   :  { %v1464_v53 = vpop.f32.mrf.mxu1 }
 0x6e8   :  { %v1465_v1 = vadd.f32 %v3719_v54, %v1464_v53 }
 0x6e9   :  { %1534 = vmatpush.bf16.msrb.mxu3 %v3667_v35 }
 0x6ea   :  { %v1541_v6 = vpack.c.bf16 %v1465_v1, %v1465_v1 }
 0x6ef   :  { %v1466_v9 = vpop.f32.mrf.mxu1 }
 0x6f0   :  { %v1467_v12 = vadd.f32 %v3719_v54, %v1466_v9 }
 0x6f2   :  { %v1542_v15 = vpack.c.bf16 %v1467_v12, %v1467_v12  ;;  %v3856_v12 = vmov 32.0  }
 0x746   :  { %v1348_v18 = vpop.xlane.xlu2 %1347 }
 0x747   :  { %v1352_v22 = vsub.f32 %v1324_v2, %v1348_v18  ;;  %v1190_v18 = vadd.f32 %v4308_v60, %v4310_v61 }
 0x749   :  { %v1354_v23 = vmul.f32 1.442695, %v1352_v22 }
 0x74b   :  { %3756 = vpow2.f32 %v1354_v23 }
 0x74e   :  { %v1351_v24 = vpop.xlane.xlu0 %1350 }
 0x74f   :  { %v1353_v25 = vsub.f32 %v1343_v11, %v1351_v24 }
 0x751   :  { %v3757_v26 = vpop.eup %3756  ;;  %v1356_v27 = vmul.f32 1.442695, %v1353_v25  ;;  %v4371_v25 = vmul.f32 -0.00390625, %v4209_v57 }
 0x752   :  { %v1358_v28 = vsel %vm102_vm1, %v3757_v26, 0.0 }
 0x753   :  { %3758 = vpow2.f32 %v1356_v27  ;;  %1359 = vadd.xlane.f32.xlu1 %v1358_v28 }
 0x759   :  { %v3759_v29 = vpop.eup %3758 }
 0x75a   :  { %v1361_v30 = vsel %vm102_vm1, %v3759_v29, 0.0 }
 0x75b   :  { %1362 = vadd.xlane.f32.xlu2 %v1361_v30 }
 0x7c6   :  { %v1360_v36 = vpop.xlane.xlu1 %1359 }
 0x7c7   :  { %3760 = vrcp.f32 %v1360_v36 }
 0x7cd   :  { %v3761_v37 = vpop.eup %3760 }
 0x7ce   :  { %v1366_v38 = vmul.f32 %v3761_v37, %v3757_v26  ;;  %v1363_v39 = vpop.xlane.xlu2 %1362 }
 0x7cf   :  { %3762 = vrcp.f32 %v1363_v39 }
 0x7d0   :  { %v1368_v40 = vpack.c.bf16 %v1366_v38, %v1366_v38 }
 0x7d2   :  { %3320 = vmatmul.msk.bf16.vlgmr.msra.gmra.mxu2 %vm102_vm1, %v1368_v40 }
 0x7d5   :  { %v3763_v41 = vpop.eup %3762 }
 0x7d6   :  { %v1367_v42 = vmul.f32 %v3763_v41, %v3759_v29 }
 0x7d8   :  { %v1369_v43 = vpack.c.bf16 %v1367_v42, %v1367_v42 }
 0x7da   :  { %3321 = vmatmul.msk.bf16.vlgmr.msra.gmra.mxu3 %vm102_vm1, %v1369_v43 }
 0x7e2   :  { %3351 = vmatmul.msk.bf16.vlgmr.msrb.gmra.mxu2 %vm356_vm4, %v4170_v21 }
 0x7ea   :  { %3365 = vmatmul.msk.bf16.vlgmr.msrb.gmra.mxu3 %vm356_vm4, %v4170_v21 }
 0x855   :  { %v1385_v46 = vpop.f32.mrf.mxu2 }
 0x85d   :  { %v1387_v47 = vpop.f32.mrf.mxu2  ;;  %v1404_v48 = vpop.f32.mrf.mxu3 }
 0x85e   :  { %v1410_v49 = vpack.c.bf16 %v1404_v48, %v1385_v46 }
 0x860   :  { %3323 = vmatmul.msk.bf16.vlgmr.msrb.gmra.mxu0 %vm102_vm1, %v1410_v49 }
 0x865   :  { %v1406_v51 = vpop.f32.mrf.mxu3  ;;  %v1500_v52 = vpop.f32.mrf.mxu2 }
 0x866   :  { %v1501_v21 = vadd.f32 %v3720_v50, %v1500_v52 }
 0x868   :  { %v1543_v55 = vpack.c.bf16 %v1501_v21, %v1501_v21 }
 0x86a   :  { %v1551_v56 = vsel %vm102_vm1, %v1543_v55, 0 }
 0x86b   :  { %1560 = vmatpush.bf16.xpose.msra.mxu0 %v1551_v56  ;;  %v3722_v56 = vld [vmem:[%s4740_s14] ss:$0 sm:$0xff] }
 0x86d   :  { %v1502_v2 = vpop.f32.mrf.mxu2  ;;  %v1536_v3 = vpop.f32.mrf.mxu3 }
 0x86e   :  { %v1503_v4 = vadd.f32 %v3720_v50, %v1502_v2  ;;  %v1537_v5 = vadd.f32 %v3721_v59, %v1536_v3  ;;  %v3370_v50 = vld [vmem:[%s4739_s13 + $0xc] sm:$0xf]  ;;  %v1192_v3 = vadd.f32 %v4312_v62, %v4314_v63 }
 0x86f   :  { %v1654_v51 = vsel %vm106_vm0, %v3370_v50, 0 }
 0x870   :  { %v1544_v7 = vpack.c.bf16 %v1503_v4, %v1503_v4  ;;  %v1545_v8 = vpack.c.bf16 %v1537_v5, %v1537_v5 }
 0x872   :  { %v1570_v10 = vsel %vm102_vm1, %v1544_v7, 0  ;;  %v1613_v11 = vsel %vm106_vm0, %v1545_v8, 0  ;;  %3366 = vmatmul.msk.bf16.vlgmr.msra.gmra.mxu0 %vm102_vm1, %v1541_v6 }
 0x873   :  { %1579 = vmatpush.bf16.xpose.msra.mxu1 %v1570_v10  ;;  %1622 = vmatpush.bf16.msra.mxu2 %v1613_v11 }
 0x874   :  { %1663 = vmatpush.bf16.msrb.mxu0 %v1654_v51 }
 0x875   :  { %v1538_v13 = vpop.f32.mrf.mxu3 }
 0x876   :  { %v1539_v14 = vadd.f32 %v3721_v59, %v1538_v13 }
 0x878   :  { %v1546_v16 = vpack.c.bf16 %v1539_v14, %v1539_v14 }
 0x87a   :  { %v1632_v17 = vsel %vm106_vm0, %v1546_v16, 0  ;;  %3367 = vmatmul.msk.bf16.vlgmr.msra.gmra.mxu1 %vm102_vm1, %v1542_v15 }
 0x87b   :  { %1641 = vmatpush.bf16.msra.mxu3 %v1632_v17 }
 0x8dd   :  { %v1426_v22 = vpop.f32.mrf.mxu0 }
 0x8de   :  { %v1431_v23 = vadd.f32 %v1426_v22, %v1190_v18 }
 0x8e5   :  { %v1428_v24 = vpop.f32.mrf.mxu0 }
 0x8e6   :  { %v1432_v5 = vadd.f32 %v1428_v24, %v1192_v3  ;;  %v3672_v3 = vld [vmem:[%s4744_s18 + $0x8] sm:$0xff] }
 0x8ef   :  { %v1562_v26 = vpop.f32.mrf.mxu0 }
 0x8f0   :  { %v1563_v27 = vadd.f32 %v1562_v26, %v4371_v25 }
 0x8f2   :  { %v1585_v28 = vsel %vm102_vm1, %v1563_v27, -inf }
 0x8f3   :  { %1586 = vmax.xlane.f32.xlu0 %v1585_v28 }
 0x8f7   :  { %v1564_v29 = vpop.f32.mrf.mxu0  ;;  %v1581_v30 = vpop.f32.mrf.mxu1 }
 0x8f8   :  { %v1582_v32 = vadd.f32 %v1581_v30, %v4371_v25 }
 0x8fa   :  { %v1588_v33 = vsel %vm102_vm1, %v1582_v32, -inf }
 0x8fb   :  { %1589 = vmax.xlane.f32.xlu1 %v1588_v33 }
 0x8ff   :  { %v1583_v60 = vpop.f32.mrf.mxu1 }
 0x900   :  { %v3669_v60 = vld [vmem:[%s4742_s16] sm:$0xff] }
 0x966   :  { %v1587_v61 = vpop.xlane.xlu0 %1586 }
 0x967   :  { %v1591_v34 = vsub.f32 %v1563_v27, %v1587_v61 }
 0x969   :  { %v1593_v35 = vmul.f32 1.442695, %v1591_v34 }
 0x96b   :  { %3764 = vpow2.f32 %v1593_v35 }
 0x96e   :  { %v1590_v57 = vpop.xlane.xlu1 %1589 }
 0x96f   :  { %v1592_v36 = vsub.f32 %v1582_v32, %v1590_v57  ;;  %v3670_v32 = vld [vmem:[%s4742_s16 + $0x8] sm:$0xff] }
 0x970   :  { %1768 = vmatpush.bf16.msrb.mxu1 %v3670_v32 }
 0x971   :  { %v3765_v37 = vpop.eup %3764  ;;  %v1595_v38 = vmul.f32 1.442695, %v1592_v36 }
 0x972   :  { %v1597_v39 = vsel %vm102_vm1, %v3765_v37, 0.0 }
 0x973   :  { %3766 = vpow2.f32 %v1595_v38  ;;  %1598 = vadd.xlane.f32.xlu2 %v1597_v39 }
 0x974   :  { %1769 = vmatpush.bf16.msrb.mxu1 %v3669_v60 }
 0x979   :  { %v3767_v40 = vpop.eup %3766 }
 0x97a   :  { %v1600_v41 = vsel %vm102_vm1, %v3767_v40, 0.0 }
 0x97b   :  { %1601 = vadd.xlane.f32.xlu0 %v1600_v41 }
 0x9e6   :  { %v1599_v42 = vpop.xlane.xlu2 %1598 }
 0x9e7   :  { %3768 = vrcp.f32 %v1599_v42 }
 0x9ed   :  { %v3769_v43 = vpop.eup %3768 }
 0x9ee   :  { %v1605_v44 = vmul.f32 %v3769_v43, %v3765_v37  ;;  %v1602_v45 = vpop.xlane.xlu0 %1601 }
 0x9ef   :  { %3770 = vrcp.f32 %v1602_v45 }
 0x9f0   :  { %v1607_v46 = vpack.c.bf16 %v1605_v44, %v1605_v44  ;;  %3772 = vrcp.f32 %v3856_v12  ;;  %v1678_v44 = vld [vmem:[%s4741_s15] sm:$0x3] }
 0x9f2   :  { %3368 = vmatmul.msk.bf16.vlgmr.msra.gmra.mxu2 %vm102_vm1, %v1607_v46 }
 0x9f5   :  { %v3771_v47 = vpop.eup %3770 }
 0x9f6   :  { %v1606_v48 = vmul.f32 %v3771_v47, %v3767_v40  ;;  %v3773_v13 = vpop.eup %3772 }
 0x9f7   :  { %v1688_v14 = vmul.f32 32.0, %v3773_v13  ;;  %vm1692_vm15 = vweird.f32 %v3773_v13 }
 0x9f8   :  { %v1608_v49 = vpack.c.bf16 %v1606_v48, %v1606_v48  ;;  %v1732_v48 = vperm.slane %v1678_v44, 0 }
 0x9f9   :  { %v1689_v15 = vsub.f32 1.0, %v1688_v14 }
 0x9fa   :  { %3369 = vmatmul.msk.bf16.vlgmr.msra.gmra.mxu3 %vm102_vm1, %v1608_v49 }
 0x9fb   :  { %v1690_v62 = vmul.f32 %v3773_v13, %v1689_v15 }
 0x9fd   :  { %v1691_v63 = vadd.f32 %v3773_v13, %v1690_v62 }
 0xa75   :  { %v1624_v52 = vpop.f32.mrf.mxu2 }
 0xa7d   :  { %v1626_v21 = vpop.f32.mrf.mxu2  ;;  %v1643_v53 = vpop.f32.mrf.mxu3 }
 0xa7e   :  { %v1649_v54 = vpack.c.bf16 %v1643_v53, %v1624_v52  ;;  %v1735_v52 = vperm.slane %v1678_v44, 1 }
 0xa80   :  { %3371 = vmatmul.msk.bf16.vlgmr.msrb.gmra.mxu0 %vm102_vm1, %v1649_v54 }
 0xa85   :  { %v1645_v55 = vpop.f32.mrf.mxu3 }
 0xafd   :  { %v1665_v59 = vpop.f32.mrf.mxu0 }
 0xafe   :  { %v1670_v1 = vadd.f32 %v1665_v59, %v1431_v23 }
 0xb00   :  { %v1676_v2 = vadd.f32 %v3722_v56, %v1670_v1  ;;  %v3674_v1 = vld [vmem:[%s4744_s18 + $0x18] sm:$0xff] }
 0xb01   :  { %1839 = vmatpush.bf16.msrb.mxu2 %v3674_v1 }
 0xb02   :  { %v1679_v4 = vadd.f32 %v1676_v2, %v4164_v19  ;;  %v4395_v19 = vsel %vm1692_vm15, %v3773_v13, %v1691_v63  ;;  %v3673_v2 = vld [vmem:[%s4744_s18 + $0x10] sm:$0xff] }
 0xb04   :  { %v1681_v6 = vsel %vm356_vm4, %v1679_v4, 0.0 }
 0xb05   :  { %1682 = vadd.xlane.f32.xlu1 %v1681_v6  ;;  %v1667_v7 = vpop.f32.mrf.mxu0  ;;  %1840 = vmatpush.bf16.msrb.mxu2 %v3673_v2  ;;  %v3671_v6 = vld [vmem:[%s4744_s18] sm:$0xff] }
 0xb06   :  { %v1671_v8 = vadd.f32 %v1667_v7, %v1432_v5 }
 0xb08   :  { %v1677_v9 = vadd.f32 %v3722_v56, %v1671_v8 }
 0xb09   :  { %1841 = vmatpush.bf16.msrb.mxu2 %v3672_v3 }
 0xb0a   :  { %v1680_v10 = vadd.f32 %v1677_v9, %v4166_v20 }
 0xb0c   :  { %v1684_v11 = vsel %vm356_vm4, %v1680_v10, 0.0 }
 0xb0d   :  { %1685 = vadd.xlane.f32.xlu2 %v1684_v11  ;;  %1842 = vmatpush.bf16.msrb.mxu2 %v3671_v6 }
 0xb78   :  { %v1683_v16 = vpop.xlane.xlu1 %1682 }
 0xb79   :  { %v1694_v17 = vmul.f32 %v4395_v19, %v1683_v16 }
 0xb7b   :  { %v1696_v18 = vsub.f32 %v1679_v4, %v1694_v17  ;;  %v3723_v4 = vld [vmem:[%s4743_s17] ss:$0 sm:$0xff] }
 0xb7d   :  { %v1698_v22 = vmul.f32 %v1696_v18, %v1696_v18 }
 0xb7f   :  { %v1700_v20 = vsel %vm356_vm4, %v1698_v22, 0.0 }
 0xb80   :  { %1701 = vadd.xlane.f32.xlu0 %v1700_v20  ;;  %v1686_v23 = vpop.xlane.xlu2 %1685 }
 0xb81   :  { %v1695_v24 = vmul.f32 %v4395_v19, %v1686_v23 }
 0xb83   :  { %v1697_v26 = vsub.f32 %v1680_v10, %v1695_v24 }
 0xb85   :  { %v1699_v27 = vmul.f32 %v1697_v26, %v1697_v26 }
 0xb87   :  { %v1703_v28 = vsel %vm356_vm4, %v1699_v27, 0.0 }
 0xb88   :  { %1704 = vadd.xlane.f32.xlu1 %v1703_v28 }
 0xbf3   :  { %v1702_v29 = vpop.xlane.xlu0 %1701 }
 0xbf4   :  { %v1706_v30 = vmul.f32 %v1702_v29, %v4395_v19 }
 0xbf6   :  { %v1708_v33 = vadd.f32 1e-05, %v1706_v30  ;;  %v3724_v30 = vld [vmem:[%s4745_s19] ss:$0 sm:$0xff] }
 0xbf8   :  { %3774 = vrsqrt.f32 %v1708_v33  ;;  %vm1716_vm3 = vweird.f32 %v1708_v33 }
 0xbfb   :  { %v1705_v61 = vpop.xlane.xlu1 %1704 }
 0xbfc   :  { %v1707_v34 = vmul.f32 %v1705_v61, %v4395_v19 }
 0xbfe   :  { %v3775_v35 = vpop.eup %3774  ;;  %v1709_v57 = vadd.f32 1e-05, %v1707_v34 }
 0xbff   :  { %v1711_v36 = vmul.f32 %v3775_v35, %v1708_v33  ;;  %vm1717_vm2 = vweird.f32 %v3775_v35 }
 0xc00   :  { %3776 = vrsqrt.f32 %v1709_v57  ;;  %vm1718_vm5 = vmor %vm1716_vm3, %vm1717_vm2  ;;  %vm1726_vm7 = vweird.f32 %v1709_v57 }
 0xc01   :  { %v1712_v37 = vmul.f32 %v3775_v35, %v1711_v36 }
 0xc03   :  { %v1713_v38 = vmul.f32 0.5, %v1712_v37 }
 0xc05   :  { %v1714_v39 = vsub.f32 1.5, %v1713_v38 }
 0xc06   :  { %v3777_v40 = vpop.eup %3776 }
 0xc07   :  { %v1715_v41 = vmul.f32 %v3775_v35, %v1714_v39  ;;  %v1721_v42 = vmul.f32 %v3777_v40, %v1709_v57  ;;  %vm1727_vm6 = vweird.f32 %v3777_v40 }
 0xc08   :  { %vm1728_vm8 = vmor %vm1726_vm7, %vm1727_vm6 }
 0xc09   :  { %v1722_v43 = vmul.f32 %v3777_v40, %v1721_v42  ;;  %v1719_v45 = vsel %vm1718_vm5, %v3775_v35, %v1715_v41 }
 0xc0a   :  { %v1730_v49 = vmul.f32 %v1719_v45, %v1696_v18 }
 0xc0b   :  { %v1723_v46 = vmul.f32 0.5, %v1722_v43 }
 0xc0c   :  { %v1733_v21 = vmul.f32 %v1732_v48, %v1730_v49  ;;  %v3676_v49 = vld [vmem:[%s4733_s7 + $0x48] sm:$0xff] }
 0xc0d   :  { %v1724_v47 = vsub.f32 1.5, %v1723_v46  ;;  %1934 = vmatpush.bf16.msrb.mxu3 %v3676_v49 }
 0xc0e   :  { %v1736_v55 = vadd.f32 %v1735_v52, %v1733_v21  ;;  %v3675_v21 = vld [vmem:[%s4733_s7 + $0x40] sm:$0xff] }
 0xc0f   :  { %v1725_v50 = vmul.f32 %v3777_v40, %v1724_v47 }
 0xc11   :  { %v1729_v51 = vsel %vm1728_vm8, %v3777_v40, %v1725_v50  ;;  %v3678_v50 = vld [vmem:[%s4735_s9 + $0x48] sm:$0xff]  ;;  %1935 = vmatpush.bf16.msrb.mxu3 %v3675_v21 }
 0xc12   :  { %v1731_v53 = vmul.f32 %v1729_v51, %v1697_v26  ;;  %v3680_v51 = vld [vmem:[%s4737_s11 + $0x48] sm:$0xff]  ;;  %1970 = vmatpush.bf16.msra.mxu0 %v3678_v50 }
 0xc13   :  { %2006 = vmatpush.bf16.msra.mxu1 %v3680_v51  ;;  %v3683_v51 = vld [vmem:[%s4735_s9 + $0x50] sm:$0xff] }
 0xc14   :  { %v1734_v54 = vmul.f32 %v1732_v48, %v1731_v53  ;;  %v3677_v53 = vld [vmem:[%s4735_s9 + $0x40] sm:$0xff] }
 0xc16   :  { %v1737_v56 = vadd.f32 %v1735_v52, %v1734_v54  ;;  %v3679_v54 = vld [vmem:[%s4737_s11 + $0x40] sm:$0xff]  ;;  %1971 = vmatpush.bf16.msra.mxu0 %v3677_v53 }
 0xc17   :  { %2007 = vmatpush.bf16.msra.mxu1 %v3679_v54 }
 0xc18   :  { %v1742_v59 = vpack.c.bf16 %v1737_v56, %v1736_v55 }
 0xc1a   :  { %3380 = vmatmul.msk.bf16.vlgmr.msrb.gmra.mxu1 %vm356_vm4, %v1742_v59 }
 0xc97   :  { %v1771_v5 = vpop.f32.mrf.mxu1 }
 0xc98   :  { %v1772_v7 = vadd.f32 %v3723_v4, %v1771_v5 }
 0xc9a   :  { %v1778_v8 = vmul.f32 %v1772_v7, %v1772_v7  ;;  %v1776_v23 = vmul.f32 0.5, %v1772_v7 }
 0xc9c   :  { %v1780_v9 = vmul.f32 %v1778_v8, %v1772_v7 }
 0xc9e   :  { %v1782_v10 = vmul.f32 0.044715, %v1780_v9 }
 0xc9f   :  { %v1773_v11 = vpop.f32.mrf.mxu1 }
 0xca0   :  { %v1784_v12 = vadd.f32 %v1782_v10, %v1772_v7  ;;  %v1774_v13 = vadd.f32 %v3723_v4, %v1773_v11  ;;  %v1849_v10 = vld [vmem:[%s4746_s20] sm:$0x3] }
 0xca2   :  { %v1779_v14 = vmul.f32 %v1774_v13, %v1774_v13  ;;  %v1786_v15 = vmul.f32 0.7978846, %v1784_v12  ;;  %v1777_v24 = vmul.f32 0.5, %v1774_v13 }
 0xca4   :  { %v1781_v62 = vmul.f32 %v1779_v14, %v1774_v13  ;;  %3778 = vtanh.f32 %v1786_v15  ;;  %v1896_v14 = vperm.slane %v1849_v10, 0 }
 0xca6   :  { %v1783_v63 = vmul.f32 0.044715, %v1781_v62 }
 0xca8   :  { %v1785_v16 = vadd.f32 %v1783_v63, %v1774_v13 }
 0xcaa   :  { %v1787_v17 = vmul.f32 0.7978846, %v1785_v16  ;;  %v3779_v18 = vpop.eup %3778  ;;  %v1899_v16 = vperm.slane %v1849_v10, 1 }
 0xcab   :  { %v1790_v22 = vadd.f32 1.0, %v3779_v18 }
 0xcac   :  { %3780 = vtanh.f32 %v1787_v17 }
 0xcad   :  { %v1792_v27 = vmul.f32 %v1790_v22, %v1776_v23 }
 0xcb2   :  { %v3781_v20 = vpop.eup %3780 }
 0xcb3   :  { %v1791_v26 = vadd.f32 1.0, %v3781_v20 }
 0xcb5   :  { %v1793_v28 = vmul.f32 %v1791_v26, %v1777_v24  ;;  %v3725_v26 = vld [vmem:[%s4736_s10 + $0x4] ss:$0 sm:$0xff] }
 0xcb7   :  { %v1802_v29 = vpack.c.bf16 %v1793_v28, %v1792_v27  ;;  %v3726_v27 = vld [vmem:[%s4738_s12 + $0x4] ss:$0 sm:$0xff] }
 0xcb9   :  { %3397 = vmatmul.msk.bf16.vlgmr.msrb.gmra.mxu2 %vm1831_vm9, %v1802_v29 }
 0xd3c   :  { %v1844_v32 = vpop.f32.mrf.mxu2 }
 0xd3d   :  { %v1845_v33 = vadd.f32 %v3724_v30, %v1844_v32 }
 0xd3f   :  { %v1850_v60 = vadd.f32 %v1845_v33, %v1736_v55 }
 0xd41   :  { %v1852_v61 = vsel %vm356_vm4, %v1850_v60, 0.0 }
 0xd42   :  { %1853 = vadd.xlane.f32.xlu2 %v1852_v61  ;;  %v3682_v61 = vld [vmem:[%s4733_s7 + $0x58] sm:$0xff] }
 0xd44   :  { %v1846_v34 = vpop.f32.mrf.mxu2 }
 0xd45   :  { %v1847_v35 = vadd.f32 %v3724_v30, %v1846_v34 }
 0xd47   :  { %v1851_v57 = vadd.f32 %v1847_v35, %v1737_v56 }
 0xd49   :  { %v1855_v36 = vsel %vm356_vm4, %v1851_v57, 0.0 }
 0xd4a   :  { %1856 = vadd.xlane.f32.xlu0 %v1855_v36 }
 0xdb5   :  { %v1854_v37 = vpop.xlane.xlu2 %1853 }
 0xdb6   :  { %v1858_v38 = vmul.f32 %v1854_v37, %v4395_v19 }
 0xdb8   :  { %v1860_v39 = vsub.f32 %v1850_v60, %v1858_v38  ;;  %v3727_v60 = vld [vmem:[%s4734_s8 + $0x4] ss:$0 sm:$0xff]  ;;  %v3681_v38 = vld [vmem:[%s4733_s7 + $0x50] sm:$0xff] }
 0xdba   :  { %v1862_v40 = vmul.f32 %v1860_v39, %v1860_v39 }
 0xdbc   :  { %v1864_v41 = vsel %vm356_vm4, %v1862_v40, 0.0 }
 0xdbd   :  { %v1857_v42 = vpop.xlane.xlu0 %1856  ;;  %1865 = vadd.xlane.f32.xlu1 %v1864_v41 }
 0xdbe   :  { %v1859_v43 = vmul.f32 %v1857_v42, %v4395_v19 }
 0xdc0   :  { %v1861_v44 = vsub.f32 %v1851_v57, %v1859_v43 }
 0xdc2   :  { %v1863_v45 = vmul.f32 %v1861_v44, %v1861_v44 }
 0xdc4   :  { %v1867_v46 = vsel %vm356_vm4, %v1863_v45, 0.0  ;;  %v3684_v45 = vld [vmem:[%s4735_s9 + $0x58] sm:$0xff] }
 0xdc5   :  { %1868 = vadd.xlane.f32.xlu2 %v1867_v46 }
 0xe30   :  { %v1866_v47 = vpop.xlane.xlu1 %1865 }
 0xe31   :  { %v1870_v48 = vmul.f32 %v1866_v47, %v4395_v19 }
 0xe33   :  { %v1872_v52 = vadd.f32 1e-05, %v1870_v48 }
 0xe35   :  { %3782 = vrsqrt.f32 %v1872_v52  ;;  %vm1880_vm11 = vweird.f32 %v1872_v52 }
 0xe38   :  { %v1869_v55 = vpop.xlane.xlu2 %1868 }
 0xe39   :  { %v1871_v56 = vmul.f32 %v1869_v55, %v4395_v19 }
 0xe3b   :  { %v3783_v59 = vpop.eup %3782  ;;  %v1873_v1 = vadd.f32 1e-05, %v1871_v56 }
 0xe3c   :  { %v1875_v2 = vmul.f32 %v3783_v59, %v1872_v52  ;;  %vm1881_vm10 = vweird.f32 %v3783_v59 }
 0xe3d   :  { %3784 = vrsqrt.f32 %v1873_v1  ;;  %vm1882_vm12 = vmor %vm1880_vm11, %vm1881_vm10  ;;  %vm1890_vm14 = vweird.f32 %v1873_v1 }
 0xe3e   :  { %v1876_v3 = vmul.f32 %v3783_v59, %v1875_v2  ;;  %v3728_v2 = vld [vmem:[%s4734_s8 + $0x5] ss:$0 sm:$0xff] }
 0xe40   :  { %v1877_v4 = vmul.f32 0.5, %v1876_v3 }
 0xe42   :  { %v1878_v5 = vsub.f32 1.5, %v1877_v4 }
 0xe43   :  { %v3785_v6 = vpop.eup %3784 }
 0xe44   :  { %v1879_v7 = vmul.f32 %v3783_v59, %v1878_v5  ;;  %v1885_v8 = vmul.f32 %v3785_v6, %v1873_v1  ;;  %vm1891_vm13 = vweird.f32 %v3785_v6 }
 0xe45   :  { %vm1892_vm15 = vmor %vm1890_vm14, %vm1891_vm13 }
 0xe46   :  { %v1886_v9 = vmul.f32 %v3785_v6, %v1885_v8  ;;  %v1883_v11 = vsel %vm1882_vm12, %v3783_v59, %v1879_v7 }
 0xe47   :  { %v1894_v15 = vmul.f32 %v1883_v11, %v1860_v39 }
 0xe48   :  { %v1887_v12 = vmul.f32 0.5, %v1886_v9 }
 0xe49   :  { %v1897_v17 = vmul.f32 %v1896_v14, %v1894_v15 }
 0xe4a   :  { %v1888_v13 = vsub.f32 1.5, %v1887_v12 }
 0xe4b   :  { %v4461_v20 = vadd.f32 %v1899_v16, %v1897_v17 }
 0xe4c   :  { %v1889_v62 = vmul.f32 %v3785_v6, %v1888_v13 }
 0xe4e   :  { %v1893_v63 = vsel %vm1892_vm15, %v3785_v6, %v1889_v62  ;;  %v3729_v6 = vld [vmem:[%s4736_s10 + $0x5] ss:$0 sm:$0xff] }
 0xe4f   :  { %v1895_v18 = vmul.f32 %v1893_v63, %v1861_v44 }
 0xe51   :  { %v1898_v22 = vmul.f32 %v1896_v14, %v1895_v18 }
 0xe53   :  { %v4463_v23 = vadd.f32 %v1899_v16, %v1898_v22 }
 0xe55   :  { %v4467_v24 = vpack.c.bf16 %v4463_v23, %v4461_v20 }
 0xe57   :  { %3411 = vmatmul.msk.bf16.vlgmr.msrb.gmra.mxu3 %vm356_vm4, %v4467_v24  ;;  %3425 = vmatmul.msk.bf16.vlgmr.msra.gmra.mxu0 %vm356_vm4, %v4467_v24 }
 0xe58   :  { %3439 = vmatmul.msk.bf16.vlgmr.msra.gmra.mxu1 %vm356_vm4, %v4467_v24 }
 0xed4   :  { %v1973_v28 = vpop.f32.mrf.mxu0 }
 0xed5   :  { %v1974_v29 = vadd.f32 %v3725_v26, %v1973_v28  ;;  %v2009_v30 = vpop.f32.mrf.mxu1 }
 0xed6   :  { %v2010_v32 = vadd.f32 %v3726_v27, %v2009_v30 }
 0xed7   :  { %v2016_v33 = vpack.c.bf16 %v1974_v29, %v1974_v29 }
 0xed8   :  { %v2018_v34 = vpack.c.bf16 %v2010_v32, %v2010_v32 }
 0xed9   :  { %v2024_v35 = vsel %vm102_vm1, %v2016_v33, 0 }
 0xeda   :  { %v2086_v57 = vsel %vm106_vm0, %v2018_v34, 0  ;;  %v1937_v36 = vpop.f32.mrf.mxu3  ;;  %2033 = vmatpush.bf16.xpose.msra.mxu2 %v2024_v35  ;;  %v3686_v34 = vld [vmem:[%s4737_s11 + $0x58] sm:$0xff]  ;;  %v3685_v35 = vld [vmem:[%s4737_s11 + $0x50] sm:$0xff] }
 0xedb   :  { %v1938_v37 = vadd.f32 %v3727_v60, %v1937_v36  ;;  %2095 = vmatpush.bf16.msrb.mxu0 %v2086_v57 }
 0xedc   :  { %v1975_v39 = vpop.f32.mrf.mxu0 }
 0xedd   :  { %v1976_v40 = vadd.f32 %v3725_v26, %v1975_v39  ;;  %v2011_v41 = vpop.f32.mrf.mxu1  ;;  %v2014_v43 = vpack.c.bf16 %v1938_v37, %v1938_v37 }
 0xede   :  { %v2012_v42 = vadd.f32 %v3726_v27, %v2011_v41 }
 0xedf   :  { %v2017_v44 = vpack.c.bf16 %v1976_v40, %v1976_v40  ;;  %2223 = vmatpush.bf16.msra.mxu0 %v3686_v34 }
 0xee0   :  { %v2019_v46 = vpack.c.bf16 %v2012_v42, %v2012_v42 }
 0xee1   :  { %v2043_v47 = vsel %vm102_vm1, %v2017_v44, 0  ;;  %3440 = vmatmul.msk.bf16.vlgmr.msra.gmra.mxu2 %vm102_vm1, %v2014_v43 }
 0xee2   :  { %2151 = vmatpush.bf16.msrb.mxu2 %v3682_v61  ;;  %v2105_v48 = vsel %vm106_vm0, %v2019_v46, 0  ;;  %v1939_v49 = vpop.f32.mrf.mxu3  ;;  %2052 = vmatpush.bf16.xpose.msra.mxu3 %v2043_v47 }
 0xee3   :  { %v1940_v50 = vadd.f32 %v3727_v60, %v1939_v49  ;;  %2114 = vmatpush.bf16.msrb.mxu1 %v2105_v48  ;;  %2224 = vmatpush.bf16.msra.mxu0 %v3685_v35  ;;  %v3444_v49 = vld [vmem:[%s4739_s13 + $0x10] sm:$0xf] }
 0xee5   :  { %v2015_v52 = vpack.c.bf16 %v1940_v50, %v1940_v50  ;;  %v2364_v50 = vsel %vm106_vm0, %v3444_v49, 0 }
 0xee6   :  { %2152 = vmatpush.bf16.msrb.mxu2 %v3681_v38 }
 0xee9   :  { %3441 = vmatmul.msk.bf16.vlgmr.msra.gmra.mxu3 %vm102_vm1, %v2015_v52 }
 0xeea   :  { %2187 = vmatpush.bf16.msrb.mxu3 %v3684_v45 }
 0xeee   :  { %2188 = vmatpush.bf16.msrb.mxu3 %v3683_v51 }
 0xef1   :  { %3458 = vmatmul.msk.bf16.vlgmr.msrb.gmra.mxu2 %vm356_vm4, %v4467_v24 }
 0xef9   :  { %3472 = vmatmul.msk.bf16.vlgmr.msrb.gmra.mxu3 %vm356_vm4, %v4467_v24 }
 0xf64   :  { %v2035_v21 = vpop.f32.mrf.mxu2 }
 0xf65   :  { %v2036_v53 = vadd.f32 %v2035_v21, %v4212_v58 }
 0xf67   :  { %v2058_v54 = vsel %vm102_vm1, %v2036_v53, -inf }
 0xf68   :  { %2059 = vmax.xlane.f32.xlu2 %v2058_v54  ;;  %v3730_v54 = vld [vmem:[%s4738_s12 + $0x5] ss:$0 sm:$0xff] }
 0xf6c   :  { %v2037_v55 = vpop.f32.mrf.mxu2  ;;  %v2054_v56 = vpop.f32.mrf.mxu3 }
 0xf6d   :  { %v2055_v59 = vadd.f32 %v2054_v56, %v4212_v58 }
 0xf6f   :  { %v2061_v1 = vsel %vm102_vm1, %v2055_v59, -inf }
 0xf70   :  { %2062 = vmax.xlane.f32.xlu0 %v2061_v1 }
 0xf74   :  { %v2056_v3 = vpop.f32.mrf.mxu3  ;;  %v2154_v4 = vpop.f32.mrf.mxu2 }
 0xf75   :  { %v2155_v5 = vadd.f32 %v3728_v2, %v2154_v4 }
 0xf77   :  { %v2231_v43 = vpack.c.bf16 %v2155_v5, %v2155_v5 }
 0xf7c   :  { %v2190_v7 = vpop.f32.mrf.mxu3  ;;  %v2156_v13 = vpop.f32.mrf.mxu2 }
 0xf7d   :  { %v2191_v8 = vadd.f32 %v3729_v6, %v2190_v7  ;;  %v2157_v15 = vadd.f32 %v3728_v2, %v2156_v13 }
 0xf7f   :  { %v2233_v9 = vpack.c.bf16 %v2191_v8, %v2191_v8  ;;  %v2232_v62 = vpack.c.bf16 %v2157_v15, %v2157_v15 }
 0xf81   :  { %v2241_v10 = vsel %vm102_vm1, %v2233_v9, 0  ;;  %v3690_v9 = vld [vmem:[%s4735_s9 + $0x68] sm:$0xff] }
 0xf82   :  { %2250 = vmatpush.bf16.xpose.msra.mxu1 %v2241_v10 }
 0xf84   :  { %v2192_v58 = vpop.f32.mrf.mxu3 }
 0xf85   :  { %v2193_v11 = vadd.f32 %v3729_v6, %v2192_v58  ;;  %v3689_v58 = vld [vmem:[%s4735_s9 + $0x60] sm:$0xff] }
 0xf87   :  { %v2234_v12 = vpack.c.bf16 %v2193_v11, %v2193_v11 }
 0xf89   :  { %v2260_v14 = vsel %vm102_vm1, %v2234_v12, 0 }
 0xf8a   :  { %2269 = vmatpush.bf16.xpose.msra.mxu2 %v2260_v14 }
 0xf91   :  { %3488 = vmatmul.msk.bf16.vlgmr.msra.gmra.mxu2 %vm102_vm1, %v2232_v62 }
 0xf92   :  { %2373 = vmatpush.bf16.msrb.mxu2 %v2364_v50 }
 0xfdb   :  { %v2060_v63 = vpop.xlane.xlu2 %2059 }
 0xfdc   :  { %v2064_v16 = vsub.f32 %v2036_v53, %v2060_v63 }
 0xfde   :  { %v2066_v17 = vmul.f32 1.442695, %v2064_v16 }
 0xfe0   :  { %3786 = vpow2.f32 %v2066_v17 }
 0xfe3   :  { %v2063_v18 = vpop.xlane.xlu0 %2062 }
 0xfe4   :  { %v2065_v22 = vsub.f32 %v2055_v59, %v2063_v18 }
 0xfe6   :  { %v3787_v26 = vpop.eup %3786  ;;  %v2068_v27 = vmul.f32 1.442695, %v2065_v22 }
 0xfe7   :  { %v2070_v28 = vsel %vm102_vm1, %v3787_v26, 0.0 }
 0xfe8   :  { %3788 = vpow2.f32 %v2068_v27  ;;  %2071 = vadd.xlane.f32.xlu0 %v2070_v28 }
 0xfee   :  { %v3789_v29 = vpop.eup %3788 }
 0xfef   :  { %v2073_v30 = vsel %vm102_vm1, %v3789_v29, 0.0 }
 0xff0   :  { %2074 = vadd.xlane.f32.xlu1 %v2073_v30 }
0x1014   :  { %v2271_v32 = vpop.f32.mrf.mxu2 }
0x1015   :  { %v2272_v33 = vadd.f32 %v2271_v32, %v4230_v31  ;;  %v3688_v32 = vld [vmem:[%s4733_s7 + $0x68] sm:$0xff] }
0x1017   :  { %v2278_v60 = vsel %vm102_vm1, %v2272_v33, -inf }
0x1018   :  { %2279 = vmax.xlane.f32.xlu1 %v2278_v60 }
0x101c   :  { %v2273_v61 = vpop.f32.mrf.mxu2 }
0x105b   :  { %v2072_v57 = vpop.xlane.xlu0 %2071 }
0x105c   :  { %3790 = vrcp.f32 %v2072_v57 }
0x1062   :  { %v3791_v36 = vpop.eup %3790 }
0x1063   :  { %v2078_v37 = vmul.f32 %v3791_v36, %v3787_v26  ;;  %v2075_v38 = vpop.xlane.xlu1 %2074  ;;  %v3731_v26 = vld [vmem:[%s4736_s10 + $0x6] ss:$0 sm:$0xff] }
0x1064   :  { %3792 = vrcp.f32 %v2075_v38 }
0x1065   :  { %v2080_v39 = vpack.c.bf16 %v2078_v37, %v2078_v37 }
0x1067   :  { %3442 = vmatmul.msk.bf16.vlgmr.msrb.gmra.mxu0 %vm102_vm1, %v2080_v39  ;;  %v3491_v39 = vld [vmem:[%s4739_s13 + $0x14] sm:$0xf] }
0x106a   :  { %v3793_v40 = vpop.eup %3792 }
0x106b   :  { %v2079_v41 = vmul.f32 %v3793_v40, %v3789_v29  ;;  %v2344_v40 = vsel %vm106_vm0, %v3491_v39, 0 }
0x106d   :  { %v2081_v42 = vpack.c.bf16 %v2079_v41, %v2079_v41  ;;  %v3692_v41 = vld [vmem:[%s4737_s11 + $0x68] sm:$0xff] }
0x106f   :  { %3443 = vmatmul.msk.bf16.vlgmr.msrb.gmra.mxu1 %vm102_vm1, %v2081_v42  ;;  %v3691_v42 = vld [vmem:[%s4737_s11 + $0x60] sm:$0xff] }
0x1070   :  { %2353 = vmatpush.bf16.msrb.mxu1 %v2344_v40  ;;  %v3540_v40 = vld [vmem:[%s4739_s13 + $0x18] sm:$0xf] }
0x1077   :  { %3486 = vmatmul.msk.bf16.vlgmr.msra.gmra.mxu0 %vm356_vm4, %v4467_v24 }
0x107f   :  { %3487 = vmatmul.msk.bf16.vlgmr.msra.gmra.mxu1 %vm102_vm1, %v2231_v43  ;;  %v3694_v43 = vld [vmem:[%s4733_s7 + $0x78] sm:$0xff] }
0x1080   :  { %2480 = vmatpush.bf16.msra.mxu1 %v3692_v41  ;;  %v2601_v41 = vsel %vm106_vm0, %v3540_v40, 0 }
0x1084   :  { %2481 = vmatpush.bf16.msra.mxu1 %v3691_v42 }
0x108b   :  { %v2280_v44 = vpop.xlane.xlu1 %2279 }
0x108c   :  { %v2282_v45 = vsub.f32 %v2272_v33, %v2280_v44  ;;  %v3687_v33 = vld [vmem:[%s4733_s7 + $0x60] sm:$0xff]  ;;  %v3693_v44 = vld [vmem:[%s4733_s7 + $0x70] sm:$0xff] }
0x108e   :  { %v2285_v46 = vmul.f32 1.442695, %v2282_v45 }
0x1090   :  { %3794 = vpow2.f32 %v2285_v46 }
0x1096   :  { %v3795_v47 = vpop.eup %3794 }
0x1097   :  { %v2290_v48 = vsel %vm102_vm1, %v3795_v47, 0.0 }
0x1098   :  { %2291 = vadd.xlane.f32.xlu0 %v2290_v48  ;;  %v3732_v48 = vld [vmem:[%s4734_s8 + $0x6] ss:$0 sm:$0xff] }
0x10e4   :  { %v2097_v51 = vpop.f32.mrf.mxu0 }
0x10ec   :  { %v2099_v52 = vpop.f32.mrf.mxu0  ;;  %v2116_v21 = vpop.f32.mrf.mxu1 }
0x10ed   :  { %v2122_v53 = vpack.c.bf16 %v2116_v21, %v2097_v51 }
0x10ef   :  { %3493 = vmatmul.msk.bf16.vlgmr.msrb.gmra.mxu2 %vm102_vm1, %v2122_v53 }
0x10f4   :  { %v2118_v55 = vpop.f32.mrf.mxu1  ;;  %v2226_v56 = vpop.f32.mrf.mxu0 }
0x10f5   :  { %v2227_v59 = vadd.f32 %v3730_v54, %v2226_v56 }
0x10f7   :  { %v2235_v1 = vpack.c.bf16 %v2227_v59, %v2227_v59 }
0x10f9   :  { %v2303_v2 = vsel %vm106_vm0, %v2235_v1, 0 }
0x10fa   :  { %2312 = vmatpush.bf16.msra.mxu3 %v2303_v2  ;;  %v3733_v2 = vld [vmem:[%s4738_s12 + $0x6] ss:$0 sm:$0xff] }
0x10fc   :  { %v2228_v3 = vpop.f32.mrf.mxu0  ;;  %v2252_v4 = vpop.f32.mrf.mxu1 }
0x10fd   :  { %v2229_v5 = vadd.f32 %v3730_v54, %v2228_v3  ;;  %v2253_v6 = vadd.f32 %v2252_v4, %v4230_v31 }
0x10fe   :  { %2408 = vmatpush.bf16.msrb.mxu3 %v3688_v32  ;;  %v3695_v32 = vld [vmem:[%s4735_s9 + $0x70] sm:$0xff] }
0x10ff   :  { %v2236_v7 = vpack.c.bf16 %v2229_v5, %v2229_v5  ;;  %v2275_v8 = vsel %vm102_vm1, %v2253_v6, -inf }
0x1100   :  { %2276 = vmax.xlane.f32.xlu2 %v2275_v8 }
0x1101   :  { %v2322_v10 = vsel %vm106_vm0, %v2236_v7, 0 }
0x1102   :  { %2331 = vmatpush.bf16.msrb.mxu0 %v2322_v10  ;;  %2409 = vmatpush.bf16.msrb.mxu3 %v3687_v33  ;;  %v3698_v33 = vld [vmem:[%s4737_s11 + $0x78] sm:$0xff] }
0x1104   :  { %v2254_v11 = vpop.f32.mrf.mxu1 }
0x1106   :  { %2444 = vmatpush.bf16.msra.mxu0 %v3690_v9 }
0x110a   :  { %2445 = vmatpush.bf16.msra.mxu0 %v3689_v58 }
0x110b   :  { %v2292_v12 = vpop.xlane.xlu0 %2291 }
0x110c   :  { %3796 = vrcp.f32 %v2292_v12 }
0x1112   :  { %v3797_v31 = vpop.eup %3796 }
0x1113   :  { %v2296_v13 = vmul.f32 %v3797_v31, %v3795_v47 }
0x1115   :  { %v2298_v14 = vpack.c.bf16 %v2296_v13, %v2296_v13 }
0x1117   :  { %3490 = vmatmul.msk.bf16.vlgmr.msrb.gmra.mxu0 %vm102_vm1, %v2298_v14 }
0x1127   :  { %3521 = vmatmul.msk.bf16.vlgmr.msra.gmra.mxu0 %vm356_vm4, %v4467_v24 }
0x1172   :  { %v4597_v54 = vpop.f32.mrf.mxu2 }
0x1173   :  { %v2277_v15 = vpop.xlane.xlu2 %2276 }
0x1174   :  { %v2281_v62 = vsub.f32 %v2253_v6, %v2277_v15 }
0x1176   :  { %v2283_v63 = vmul.f32 1.442695, %v2281_v62 }
0x1178   :  { %3798 = vpow2.f32 %v2283_v63 }
0x117a   :  { %v2377_v56 = vpop.f32.mrf.mxu2 }
0x117e   :  { %v3799_v16 = vpop.eup %3798 }
0x117f   :  { %v2287_v17 = vsel %vm102_vm1, %v3799_v16, 0.0 }
0x1180   :  { %2288 = vadd.xlane.f32.xlu1 %v2287_v17 }
0x1194   :  { %v2333_v18 = vpop.f32.mrf.mxu0 }
0x119c   :  { %v2335_v22 = vpop.f32.mrf.mxu0 }
0x11a4   :  { %v2447_v27 = vpop.f32.mrf.mxu0 }
0x11a5   :  { %v2448_v28 = vadd.f32 %v3731_v26, %v2447_v27 }
0x11a7   :  { %v2490_v29 = vpack.c.bf16 %v2448_v28, %v2448_v28 }
0x11a9   :  { %v2498_v30 = vsel %vm102_vm1, %v2490_v29, 0 }
0x11aa   :  { %2507 = vmatpush.bf16.xpose.msra.mxu2 %v2498_v30 }
0x11ac   :  { %v2449_v61 = vpop.f32.mrf.mxu0 }
0x11ad   :  { %v2450_v34 = vadd.f32 %v3731_v26, %v2449_v61 }
0x11af   :  { %v2491_v57 = vpack.c.bf16 %v2450_v34, %v2450_v34 }
0x11b1   :  { %v2517_v38 = vsel %vm102_vm1, %v2491_v57, 0 }
0x11b2   :  { %2610 = vmatpush.bf16.msrb.mxu2 %v2601_v41 }
0x11f3   :  { %v2289_v60 = vpop.xlane.xlu1 %2288 }
0x11f4   :  { %3800 = vrcp.f32 %v2289_v60  ;;  %v3697_v60 = vld [vmem:[%s4737_s11 + $0x70] sm:$0xff] }
0x11fa   :  { %v3801_v35 = vpop.eup %3800 }
0x11fb   :  { %v2295_v36 = vmul.f32 %v3801_v35, %v3799_v16 }
0x11fd   :  { %v2297_v37 = vpack.c.bf16 %v2295_v36, %v2295_v36 }
0x11ff   :  { %3489 = vmatmul.msk.bf16.vlgmr.msra.gmra.mxu3 %vm102_vm1, %v2297_v37 }
0x1200   :  { %2526 = vmatpush.bf16.xpose.msra.mxu3 %v2517_v38 }
0x120f   :  { %3507 = vmatmul.msk.bf16.vlgmr.msrb.gmra.mxu3 %vm356_vm4, %v4467_v24 }
0x1210   :  { %2647 = vmatpush.bf16.msrb.mxu3 %v3694_v43 }
0x1214   :  { %2648 = vmatpush.bf16.msrb.mxu3 %v3693_v44 }
0x1282   :  { %v2314_v45 = vpop.f32.mrf.mxu3 }
0x1283   :  { %v2339_v46 = vpack.c.bf16 %v2333_v18, %v2314_v45 }
0x1285   :  { %3492 = vmatmul.msk.bf16.vlgmr.msrb.gmra.mxu1 %vm102_vm1, %v2339_v46  ;;  %v3735_v46 = vld [vmem:[%s4736_s10 + $0x7] ss:$0 sm:$0xff] }
0x128a   :  { %v2316_v47 = vpop.f32.mrf.mxu3 }
0x1292   :  { %v2411_v49 = vpop.f32.mrf.mxu3 }
0x1293   :  { %v2412_v50 = vadd.f32 %v3732_v48, %v2411_v49 }
0x1295   :  { %v2488_v51 = vpack.c.bf16 %v2412_v50, %v2412_v50  ;;  %3535 = vmatmul.msk.bf16.vlgmr.msra.gmra.mxu1 %vm356_vm4, %v4467_v24  ;;  %v3734_v50 = vld [vmem:[%s4734_s8 + $0x7] ss:$0 sm:$0xff]  ;;  %s3859_s8 = smov 8  }
0x1297   :  { %3536 = vmatmul.msk.bf16.vlgmr.msra.gmra.mxu2 %vm102_vm1, %v2488_v51 }
0x129a   :  { %v2413_v52 = vpop.f32.mrf.mxu3 }
0x129b   :  { %v2414_v21 = vadd.f32 %v3732_v48, %v2413_v52 }
0x129d   :  { %v2489_v53 = vpack.c.bf16 %v2414_v21, %v2414_v21  ;;  %v3736_v21 = vld [vmem:[%s4738_s12 + $0x7] ss:$0 sm:$0xff] }
0x129f   :  { %3537 = vmatmul.msk.bf16.vlgmr.msra.gmra.mxu3 %vm102_vm1, %v2489_v53 }
0x12af   :  { %3555 = vmatmul.msk.bf16.vlgmr.msrb.gmra.mxu3 %vm356_vm4, %v4467_v24 }
0x1302   :  { %v4599_v55 = vpop.f32.mrf.mxu1 }
0x130a   :  { %v2357_v59 = vpop.f32.mrf.mxu1 }
0x130b   :  { %v4601_v1 = vadd.f32 %v2377_v56, %v2357_v59 }
0x1312   :  { %v2483_v3 = vpop.f32.mrf.mxu1 }
0x1313   :  { %v2484_v4 = vadd.f32 %v3733_v2, %v2483_v3 }
0x1315   :  { %v2492_v5 = vpack.c.bf16 %v2484_v4, %v2484_v4 }
0x1317   :  { %v2560_v6 = vsel %vm106_vm0, %v2492_v5, 0 }
0x1318   :  { %2569 = vmatpush.bf16.msrb.mxu0 %v2560_v6 }
0x131a   :  { %v2485_v7 = vpop.f32.mrf.mxu1  ;;  %v2509_v8 = vpop.f32.mrf.mxu2 }
0x131b   :  { %v2486_v9 = vadd.f32 %v3733_v2, %v2485_v7  ;;  %v2510_v10 = vadd.f32 %v2509_v8, %v4317_v0 }
0x131d   :  { %v2493_v58 = vpack.c.bf16 %v2486_v9, %v2486_v9  ;;  %v2532_v11 = vsel %vm102_vm1, %v2510_v10, -inf }
0x131e   :  { %2533 = vmax.xlane.f32.xlu2 %v2532_v11 }
0x131f   :  { %v2579_v12 = vsel %vm106_vm0, %v2493_v58, 0 }
0x1320   :  { %2588 = vmatpush.bf16.msrb.mxu1 %v2579_v12 }
0x1322   :  { %v2511_v31 = vpop.f32.mrf.mxu2  ;;  %v2528_v13 = vpop.f32.mrf.mxu3 }
0x1323   :  { %v2529_v14 = vadd.f32 %v2528_v13, %v4317_v0  ;;  %v3696_v0 = vld [vmem:[%s4735_s9 + $0x78] sm:$0xff] }
0x1324   :  { %2683 = vmatpush.bf16.msra.mxu0 %v3696_v0  ;;  %2719 = vmatpush.bf16.msra.mxu1 %v3698_v33 }
0x1325   :  { %v2535_v15 = vsel %vm102_vm1, %v2529_v14, -inf }
0x1326   :  { %2536 = vmax.xlane.f32.xlu0 %v2535_v15 }
0x1328   :  { %2684 = vmatpush.bf16.msra.mxu0 %v3695_v32  ;;  %2720 = vmatpush.bf16.msra.mxu1 %v3697_v60 }
0x132a   :  { %v2530_v62 = vpop.f32.mrf.mxu3 }
0x1332   :  { %v2650_v49 = vpop.f32.mrf.mxu3 }
0x1333   :  { %v2651_v53 = vadd.f32 %v3734_v50, %v2650_v49 }
0x1335   :  { %v2727_v4 = vpack.c.bf16 %v2651_v53, %v2651_v53 }
0x133a   :  { %v2652_v7 = vpop.f32.mrf.mxu3 }
0x1391   :  { %v2534_v63 = vpop.xlane.xlu2 %2533 }
0x1392   :  { %v2538_v16 = vsub.f32 %v2510_v10, %v2534_v63  ;;  %v2653_v10 = vadd.f32 %v3734_v50, %v2652_v7 }
0x1394   :  { %v2540_v17 = vmul.f32 1.442695, %v2538_v16  ;;  %v2728_v12 = vpack.c.bf16 %v2653_v10, %v2653_v10 }
0x1396   :  { %3802 = vpow2.f32 %v2540_v17 }
0x1399   :  { %v2537_v18 = vpop.xlane.xlu0 %2536 }
0x139a   :  { %v2539_v22 = vsub.f32 %v2529_v14, %v2537_v18  ;;  %v2376_v14 = vadd.f32 %v4597_v54, %v4599_v55 }
0x139c   :  { %v3803_v26 = vpop.eup %3802  ;;  %v2542_v27 = vmul.f32 1.442695, %v2539_v22 }
0x139d   :  { %v2544_v28 = vsel %vm102_vm1, %v3803_v26, 0.0 }
0x139e   :  { %3804 = vpow2.f32 %v2542_v27  ;;  %2545 = vadd.xlane.f32.xlu1 %v2544_v28 }
0x13a4   :  { %v3805_v29 = vpop.eup %3804 }
0x13a5   :  { %v2547_v30 = vsel %vm102_vm1, %v3805_v29, 0.0 }
0x13a6   :  { %2548 = vadd.xlane.f32.xlu2 %v2547_v30 }
0x1411   :  { %v2546_v61 = vpop.xlane.xlu1 %2545 }
0x1412   :  { %3806 = vrcp.f32 %v2546_v61 }
0x1418   :  { %v3807_v34 = vpop.eup %3806 }
0x1419   :  { %v2552_v35 = vmul.f32 %v3807_v34, %v3803_v26  ;;  %v2549_v57 = vpop.xlane.xlu2 %2548 }
0x141a   :  { %3808 = vrcp.f32 %v2549_v57 }
0x141b   :  { %v2554_v36 = vpack.c.bf16 %v2552_v35, %v2552_v35 }
0x141d   :  { %3538 = vmatmul.msk.bf16.vlgmr.msrb.gmra.mxu0 %vm102_vm1, %v2554_v36 }
0x1420   :  { %v3809_v37 = vpop.eup %3808 }
0x1421   :  { %v2553_v38 = vmul.f32 %v3809_v37, %v3805_v29 }
0x1423   :  { %v2555_v39 = vpack.c.bf16 %v2553_v38, %v2553_v38 }
0x1425   :  { %3539 = vmatmul.msk.bf16.vlgmr.msrb.gmra.mxu1 %vm102_vm1, %v2555_v39 }
0x142d   :  { %3569 = vmatmul.msk.bf16.vlgmr.msra.gmra.mxu0 %vm356_vm4, %v4467_v24 }
0x1435   :  { %3583 = vmatmul.msk.bf16.vlgmr.msra.gmra.mxu1 %vm356_vm4, %v4467_v24 }
0x149a   :  { %v2571_v42 = vpop.f32.mrf.mxu0 }
0x14a2   :  { %v2573_v43 = vpop.f32.mrf.mxu0  ;;  %v2590_v44 = vpop.f32.mrf.mxu1 }
0x14a3   :  { %v2596_v45 = vpack.c.bf16 %v2590_v44, %v2571_v42  ;;  %v3588_v42 = vld [vmem:[%s4739_s13 + $0x1c] sm:$0xf] }
0x14a4   :  { %v2840_v43 = vsel %vm106_vm0, %v3588_v42, 0  ;;  %v3738_v42 = vld [vmem:[%s4743_s17 + $0x1] ss:$0 sm:$0xff] }
0x14a5   :  { %3541 = vmatmul.msk.bf16.vlgmr.msrb.gmra.mxu2 %vm102_vm1, %v2596_v45 }
0x14aa   :  { %v2592_v47 = vpop.f32.mrf.mxu1  ;;  %v2686_v48 = vpop.f32.mrf.mxu0 }
0x14ab   :  { %v2687_v24 = vadd.f32 %v3735_v46, %v2686_v48 }
0x14ad   :  { %v2729_v51 = vpack.c.bf16 %v2687_v24, %v2687_v24  ;;  %v3737_v24 = vld [vmem:[%s4740_s14 + $0x1] ss:$0 sm:$0xff] }
0x14af   :  { %v2737_v52 = vsel %vm102_vm1, %v2729_v51, 0 }
0x14b0   :  { %2746 = vmatpush.bf16.xpose.msra.mxu2 %v2737_v52 }
0x14b2   :  { %v2688_v56 = vpop.f32.mrf.mxu0  ;;  %v2722_v59 = vpop.f32.mrf.mxu1 }
0x14b3   :  { %v2689_v2 = vadd.f32 %v3735_v46, %v2688_v56  ;;  %v2723_v3 = vadd.f32 %v3736_v21, %v2722_v59 }
0x14b5   :  { %v2730_v5 = vpack.c.bf16 %v2689_v2, %v2689_v2  ;;  %v2731_v6 = vpack.c.bf16 %v2723_v3, %v2723_v3 }
0x14b7   :  { %v2756_v8 = vsel %vm102_vm1, %v2730_v5, 0  ;;  %v2799_v9 = vsel %vm106_vm0, %v2731_v6, 0  ;;  %3584 = vmatmul.msk.bf16.vlgmr.msra.gmra.mxu2 %vm102_vm1, %v2727_v4 }
0x14b8   :  { %2765 = vmatpush.bf16.xpose.msra.mxu3 %v2756_v8  ;;  %2808 = vmatpush.bf16.msrb.mxu0 %v2799_v9 }
0x14b9   :  { %2849 = vmatpush.bf16.msrb.mxu2 %v2840_v43 }
0x14ba   :  { %v2724_v58 = vpop.f32.mrf.mxu1 }
0x14bb   :  { %v2725_v11 = vadd.f32 %v3736_v21, %v2724_v58 }
0x14bd   :  { %v2732_v31 = vpack.c.bf16 %v2725_v11, %v2725_v11 }
0x14bf   :  { %v2818_v13 = vsel %vm106_vm0, %v2732_v31, 0  ;;  %3585 = vmatmul.msk.bf16.vlgmr.msra.gmra.mxu3 %vm102_vm1, %v2728_v12  ;;  %v3700_v31 = vld [vmem:[%s4742_s16 + $0x18] sm:$0xff] }
0x14c0   :  { %2827 = vmatpush.bf16.msrb.mxu1 %v2818_v13  ;;  %2951 = vmatpush.bf16.msrb.mxu3 %v3700_v31 }
0x1528   :  { %v2612_v15 = vpop.f32.mrf.mxu2 }
0x1529   :  { %v2617_v62 = vadd.f32 %v2612_v15, %v2376_v14  ;;  %v3699_v14 = vld [vmem:[%s4742_s16 + $0x10] sm:$0xff] }
0x152a   :  { %2952 = vmatpush.bf16.msrb.mxu3 %v3699_v14 }
0x1530   :  { %v2614_v63 = vpop.f32.mrf.mxu2 }
0x1531   :  { %v2618_v16 = vadd.f32 %v2614_v63, %v4601_v1 }
0x153a   :  { %v2748_v17 = vpop.f32.mrf.mxu2 }
0x153b   :  { %v2749_v18 = vadd.f32 %v2748_v17, %v4371_v25 }
0x153d   :  { %v2771_v22 = vsel %vm102_vm1, %v2749_v18, -inf }
0x153e   :  { %2772 = vmax.xlane.f32.xlu0 %v2771_v22 }
0x1542   :  { %v2750_v26 = vpop.f32.mrf.mxu2  ;;  %v2767_v27 = vpop.f32.mrf.mxu3 }
0x1543   :  { %v2768_v28 = vadd.f32 %v2767_v27, %v4371_v25 }
0x1545   :  { %v2774_v29 = vsel %vm102_vm1, %v2768_v28, -inf }
0x1546   :  { %2775 = vmax.xlane.f32.xlu1 %v2774_v29 }
0x154a   :  { %v2769_v30 = vpop.f32.mrf.mxu3 }
0x15b1   :  { %v2773_v54 = vpop.xlane.xlu0 %2772 }
0x15b2   :  { %v2777_v55 = vsub.f32 %v2749_v18, %v2773_v54  ;;  %v3591_v54 = vld [vmem:[%s4741_s15 + $0x2] sm:$0x3] }
0x15b4   :  { %v2779_v0 = vmul.f32 1.442695, %v2777_v55 }
0x15b6   :  { %3810 = vpow2.f32 %v2779_v0 }
0x15b9   :  { %v2776_v32 = vpop.xlane.xlu1 %2775 }
0x15ba   :  { %v2778_v1 = vsub.f32 %v2768_v28, %v2776_v32 }
0x15bc   :  { %v3811_v33 = vpop.eup %3810  ;;  %v2781_v60 = vmul.f32 1.442695, %v2778_v1  ;;  %v2913_v1 = vperm.slane %v3591_v54, 0 }
0x15bd   :  { %v2783_v61 = vsel %vm102_vm1, %v3811_v33, 0.0 }
0x15be   :  { %3812 = vpow2.f32 %v2781_v60  ;;  %2784 = vadd.xlane.f32.xlu2 %v2783_v61 }
0x15c4   :  { %v3813_v34 = vpop.eup %3812 }
0x15c5   :  { %v2786_v35 = vsel %vm102_vm1, %v3813_v34, 0.0 }
0x15c6   :  { %2787 = vadd.xlane.f32.xlu0 %v2786_v35 }
0x1631   :  { %v2785_v25 = vpop.xlane.xlu2 %2784 }
0x1632   :  { %3814 = vrcp.f32 %v2785_v25 }
0x1638   :  { %v3815_v57 = vpop.eup %3814 }
0x1639   :  { %v2791_v36 = vmul.f32 %v3815_v57, %v3811_v33  ;;  %v2788_v37 = vpop.xlane.xlu0 %2787 }
0x163a   :  { %3816 = vrcp.f32 %v2788_v37 }
0x163b   :  { %v2793_v38 = vpack.c.bf16 %v2791_v36, %v2791_v36 }
0x163d   :  { %3586 = vmatmul.msk.bf16.vlgmr.msrb.gmra.mxu0 %vm102_vm1, %v2793_v38 }
0x1640   :  { %v3817_v39 = vpop.eup %3816 }
0x1641   :  { %v2792_v40 = vmul.f32 %v3817_v39, %v3813_v34  ;;  %v2916_v34 = vperm.slane %v3591_v54, 1  ;;  %v3704_v39 = vld [vmem:[%s4744_s18 + $0x38] sm:$0xff] }
0x1642   :  { %3023 = vmatpush.bf16.msra.mxu0 %v3704_v39 }
0x1643   :  { %v2794_v41 = vpack.c.bf16 %v2792_v40, %v2792_v40  ;;  %v3703_v40 = vld [vmem:[%s4744_s18 + $0x30] sm:$0xff] }
0x1645   :  { %3587 = vmatmul.msk.bf16.vlgmr.msrb.gmra.mxu1 %vm102_vm1, %v2794_v41  ;;  %v3702_v41 = vld [vmem:[%s4744_s18 + $0x28] sm:$0xff] }
0x1646   :  { %3024 = vmatpush.bf16.msra.mxu0 %v3703_v40 }
0x164a   :  { %3025 = vmatpush.bf16.msra.mxu0 %v3702_v41 }
0x16ba   :  { %v2810_v44 = vpop.f32.mrf.mxu0 }
0x16c2   :  { %v2812_v45 = vpop.f32.mrf.mxu0  ;;  %v2829_v46 = vpop.f32.mrf.mxu1 }
0x16c3   :  { %v2835_v47 = vpack.c.bf16 %v2829_v46, %v2810_v44  ;;  %v3701_v44 = vld [vmem:[%s4744_s18 + $0x20] sm:$0xff] }
0x16c4   :  { %3026 = vmatpush.bf16.msra.mxu0 %v3701_v44 }
0x16c5   :  { %3589 = vmatmul.msk.bf16.vlgmr.msrb.gmra.mxu2 %vm102_vm1, %v2835_v47 }
0x16ca   :  { %v2831_v48 = vpop.f32.mrf.mxu1 }
0x1748   :  { %v2851_v49 = vpop.f32.mrf.mxu2 }
0x1749   :  { %v2856_v50 = vadd.f32 %v2851_v49, %v2617_v62 }
0x174b   :  { %v2863_v51 = vadd.f32 %v3737_v24, %v2856_v50 }
0x174d   :  { %v2867_v52 = vadd.f32 %v2863_v51, %v4461_v20 }
0x174f   :  { %v2869_v21 = vsel %vm356_vm4, %v2867_v52, 0.0 }
0x1750   :  { %2870 = vadd.xlane.f32.xlu1 %v2869_v21  ;;  %v2853_v53 = vpop.f32.mrf.mxu2 }
0x1751   :  { %v2857_v56 = vadd.f32 %v2853_v53, %v2618_v16 }
0x1753   :  { %v2864_v59 = vadd.f32 %v3737_v24, %v2857_v56 }
0x1755   :  { %v2868_v2 = vadd.f32 %v2864_v59, %v4463_v23 }
0x1757   :  { %v2872_v3 = vsel %vm356_vm4, %v2868_v2, 0.0 }
0x1758   :  { %2873 = vadd.xlane.f32.xlu2 %v2872_v3 }
0x17c3   :  { %v2871_v4 = vpop.xlane.xlu1 %2870 }
0x17c4   :  { %v2875_v5 = vmul.f32 %v2871_v4, %v4395_v19 }
0x17c6   :  { %v2877_v6 = vsub.f32 %v2867_v52, %v2875_v5 }
0x17c8   :  { %v2879_v7 = vmul.f32 %v2877_v6, %v2877_v6 }
0x17ca   :  { %v2881_v8 = vsel %vm356_vm4, %v2879_v7, 0.0 }
0x17cb   :  { %2882 = vadd.xlane.f32.xlu0 %v2881_v8  ;;  %v2874_v20 = vpop.xlane.xlu2 %2873 }
0x17cc   :  { %v2876_v9 = vmul.f32 %v2874_v20, %v4395_v19 }
0x17ce   :  { %v2878_v10 = vsub.f32 %v2868_v2, %v2876_v9 }
0x17d0   :  { %v2880_v58 = vmul.f32 %v2878_v10, %v2878_v10 }
0x17d2   :  { %v2884_v11 = vsel %vm356_vm4, %v2880_v58, 0.0 }
0x17d3   :  { %2885 = vadd.xlane.f32.xlu1 %v2884_v11 }
0x183e   :  { %v2883_v23 = vpop.xlane.xlu0 %2882 }
0x183f   :  { %v2887_v12 = vmul.f32 %v2883_v23, %v4395_v19 }
0x1841   :  { %v2889_v13 = vadd.f32 1e-05, %v2887_v12 }
0x1843   :  { %3818 = vrsqrt.f32 %v2889_v13  ;;  %vm2897_vm1 = vweird.f32 %v2889_v13 }
0x1846   :  { %v2886_v15 = vpop.xlane.xlu1 %2885 }
0x1847   :  { %v2888_v62 = vmul.f32 %v2886_v15, %v4395_v19 }
0x1849   :  { %v3819_v63 = vpop.eup %3818  ;;  %v2890_v16 = vadd.f32 1e-05, %v2888_v62 }
0x184a   :  { %v2892_v17 = vmul.f32 %v3819_v63, %v2889_v13  ;;  %vm2898_vm0 = vweird.f32 %v3819_v63 }
0x184b   :  { %3820 = vrsqrt.f32 %v2890_v16  ;;  %vm2899_vm2 = vmor %vm2897_vm1, %vm2898_vm0  ;;  %vm2907_vm5 = vweird.f32 %v2890_v16 }
0x184c   :  { %v2893_v18 = vmul.f32 %v3819_v63, %v2892_v17 }
0x184e   :  { %v2894_v22 = vmul.f32 0.5, %v2893_v18 }
0x1850   :  { %v2895_v26 = vsub.f32 1.5, %v2894_v22 }
0x1851   :  { %v3821_v27 = vpop.eup %3820 }
0x1852   :  { %v2896_v28 = vmul.f32 %v3819_v63, %v2895_v26  ;;  %v2902_v29 = vmul.f32 %v3821_v27, %v2890_v16  ;;  %vm2908_vm3 = vweird.f32 %v3821_v27 }
0x1853   :  { %vm2909_vm6 = vmor %vm2907_vm5, %vm2908_vm3 }
0x1854   :  { %v2903_v30 = vmul.f32 %v3821_v27, %v2902_v29  ;;  %v2900_v55 = vsel %vm2899_vm2, %v3819_v63, %v2896_v28 }
0x1855   :  { %v2911_v33 = vmul.f32 %v2900_v55, %v2877_v6 }
0x1856   :  { %v2904_v0 = vmul.f32 0.5, %v2903_v30 }
0x1857   :  { %v2914_v35 = vmul.f32 %v2913_v1, %v2911_v33 }
0x1858   :  { %v2905_v32 = vsub.f32 1.5, %v2904_v0 }
0x1859   :  { %v2917_v36 = vadd.f32 %v2916_v34, %v2914_v35  ;;  %v3632_v35 = vld [vmem:[%s4746_s20 + $0x2] sm:$0x3]  ;;  %s3857_s20 = smov [#allocation4]  }
0x185a   :  { %v2906_v60 = vmul.f32 %v3821_v27, %v2905_v32  ;;  %v3084_v41 = vperm.slane %v3632_v35, 1  ;;  %s3093_s1 = sshll.u32 %s3857_s20, 4  ;;  %s3094_s1 = int_to_ptr.vmem [resolvable:$true] %s3093_s1 }
0x185c   :  { %v2910_v61 = vsel %vm2909_vm6, %v3821_v27, %v2906_v60 }
0x185d   :  { %v2912_v25 = vmul.f32 %v2910_v61, %v2878_v10  ;;  %v3739_v10 = vld [vmem:[%s4745_s19 + $0x1] ss:$0 sm:$0xff] }
0x185f   :  { %v2915_v57 = vmul.f32 %v2913_v1, %v2912_v25 }
0x1861   :  { %v2918_v37 = vadd.f32 %v2916_v34, %v2915_v57 }
0x1863   :  { %v2924_v38 = vpack.c.bf16 %v2918_v37, %v2917_v36 }
0x1865   :  { %3605 = vmatmul.msk.bf16.vlgmr.msrb.gmra.mxu3 %vm356_vm4, %v2924_v38  ;;  %v3081_v38 = vperm.slane %v3632_v35, 0 }
0x18e8   :  { %v2954_v43 = vpop.f32.mrf.mxu3 }
0x18e9   :  { %v2955_v45 = vadd.f32 %v3738_v42, %v2954_v43 }
0x18eb   :  { %v2961_v46 = vmul.f32 %v2955_v45, %v2955_v45  ;;  %v2959_v5 = vmul.f32 0.5, %v2955_v45 }
0x18ed   :  { %v2963_v47 = vmul.f32 %v2961_v46, %v2955_v45 }
0x18ef   :  { %v2965_v48 = vmul.f32 0.044715, %v2963_v47 }
0x18f0   :  { %v2956_v24 = vpop.f32.mrf.mxu3 }
0x18f1   :  { %v2967_v49 = vadd.f32 %v2965_v48, %v2955_v45  ;;  %v2957_v50 = vadd.f32 %v3738_v42, %v2956_v24 }
0x18f3   :  { %v2962_v51 = vmul.f32 %v2957_v50, %v2957_v50  ;;  %v2969_v52 = vmul.f32 0.7978846, %v2967_v49  ;;  %v2960_v6 = vmul.f32 0.5, %v2957_v50 }
0x18f5   :  { %v2964_v21 = vmul.f32 %v2962_v51, %v2957_v50  ;;  %3822 = vtanh.f32 %v2969_v52 }
0x18f7   :  { %v2966_v53 = vmul.f32 0.044715, %v2964_v21 }
0x18f9   :  { %v2968_v56 = vadd.f32 %v2966_v53, %v2957_v50 }
0x18fb   :  { %v2970_v59 = vmul.f32 0.7978846, %v2968_v56  ;;  %v3823_v2 = vpop.eup %3822 }
0x18fc   :  { %v2973_v3 = vadd.f32 1.0, %v3823_v2 }
0x18fd   :  { %3824 = vtanh.f32 %v2970_v59 }
0x18fe   :  { %v2975_v8 = vmul.f32 %v2973_v3, %v2959_v5 }
0x1903   :  { %v3825_v4 = vpop.eup %3824 }
0x1904   :  { %v2974_v7 = vadd.f32 1.0, %v3825_v4 }
0x1906   :  { %v2976_v20 = vmul.f32 %v2974_v7, %v2960_v6 }
0x1908   :  { %v2986_v9 = vpack.c.bf16 %v2976_v20, %v2975_v8 }
0x190a   :  { %3631 = vmatmul.msk.bf16.vlgmr.msra.gmra.mxu0 %vm1831_vm9, %v2986_v9 }
0x1987   :  { %v3028_v58 = vpop.f32.mrf.mxu0 }
0x1988   :  { %v3029_v11 = vadd.f32 %v3739_v10, %v3028_v58 }
0x198a   :  { %v3035_v23 = vadd.f32 %v3029_v11, %v2917_v36 }
0x198c   :  { %v3037_v12 = vsel %vm356_vm4, %v3035_v23, 0.0 }
0x198d   :  { %3038 = vadd.xlane.f32.xlu2 %v3037_v12 }
0x198f   :  { %v3030_v31 = vpop.f32.mrf.mxu0 }
0x1990   :  { %v3031_v13 = vadd.f32 %v3739_v10, %v3030_v31 }
0x1992   :  { %v3036_v14 = vadd.f32 %v3031_v13, %v2918_v37 }
0x1994   :  { %v3040_v15 = vsel %vm356_vm4, %v3036_v14, 0.0 }
0x1995   :  { %3041 = vadd.xlane.f32.xlu0 %v3040_v15 }
0x1a00   :  { %v3039_v62 = vpop.xlane.xlu2 %3038 }
0x1a01   :  { %v3043_v63 = vmul.f32 %v3039_v62, %v4395_v19 }
0x1a03   :  { %v3045_v16 = vsub.f32 %v3035_v23, %v3043_v63 }
0x1a05   :  { %v3047_v17 = vmul.f32 %v3045_v16, %v3045_v16 }
0x1a07   :  { %v3049_v18 = vsel %vm356_vm4, %v3047_v17, 0.0 }
0x1a08   :  { %v3042_v22 = vpop.xlane.xlu0 %3041  ;;  %3050 = vadd.xlane.f32.xlu1 %v3049_v18 }
0x1a09   :  { %v3044_v26 = vmul.f32 %v3042_v22, %v4395_v19 }
0x1a0b   :  { %v3046_v27 = vsub.f32 %v3036_v14, %v3044_v26 }
0x1a0d   :  { %v3048_v28 = vmul.f32 %v3046_v27, %v3046_v27 }
0x1a0f   :  { %v3052_v29 = vsel %vm356_vm4, %v3048_v28, 0.0 }
0x1a10   :  { %3053 = vadd.xlane.f32.xlu2 %v3052_v29 }
0x1a7b   :  { %v3051_v30 = vpop.xlane.xlu1 %3050 }
0x1a7c   :  { %v3055_v54 = vmul.f32 %v3051_v30, %v4395_v19 }
0x1a7e   :  { %v3057_v55 = vadd.f32 1e-05, %v3055_v54 }
0x1a80   :  { %3826 = vrsqrt.f32 %v3057_v55  ;;  %vm3065_vm8 = vweird.f32 %v3057_v55 }
0x1a83   :  { %v3054_v0 = vpop.xlane.xlu2 %3053 }
0x1a84   :  { %v3056_v32 = vmul.f32 %v3054_v0, %v4395_v19 }
0x1a86   :  { %v3827_v1 = vpop.eup %3826  ;;  %v3058_v33 = vadd.f32 1e-05, %v3056_v32 }
0x1a87   :  { %v3060_v60 = vmul.f32 %v3827_v1, %v3057_v55  ;;  %vm3066_vm7 = vweird.f32 %v3827_v1 }
0x1a88   :  { %3828 = vrsqrt.f32 %v3058_v33  ;;  %vm3067_vm9 = vmor %vm3065_vm8, %vm3066_vm7  ;;  %vm3075_vm11 = vweird.f32 %v3058_v33 }
0x1a89   :  { %v3061_v61 = vmul.f32 %v3827_v1, %v3060_v60 }
0x1a8b   :  { %v3062_v34 = vmul.f32 0.5, %v3061_v61 }
0x1a8d   :  { %v3063_v25 = vsub.f32 1.5, %v3062_v34 }
0x1a8e   :  { %v3829_v57 = vpop.eup %3828 }
0x1a8f   :  { %v3064_v36 = vmul.f32 %v3827_v1, %v3063_v25  ;;  %v3070_v37 = vmul.f32 %v3829_v57, %v3058_v33  ;;  %vm3076_vm10 = vweird.f32 %v3829_v57 }
0x1a90   :  { %vm3077_vm12 = vmor %vm3075_vm11, %vm3076_vm10 }
0x1a91   :  { %v3068_v39 = vsel %vm3067_vm9, %v3827_v1, %v3064_v36  ;;  %v3071_v19 = vmul.f32 %v3829_v57, %v3070_v37 }
0x1a92   :  { %v3079_v40 = vmul.f32 %v3068_v39, %v3045_v16 }
0x1a93   :  { %v3072_v42 = vmul.f32 0.5, %v3071_v19 }
0x1a94   :  { %v3082_v43 = vmul.f32 %v3081_v38, %v3079_v40 }
0x1a95   :  { %v3073_v44 = vsub.f32 1.5, %v3072_v42 }
0x1a96   :  { %v3085_v45 = vadd.f32 %v3084_v41, %v3082_v43 }
0x1a97   :  { %v3074_v46 = vmul.f32 %v3829_v57, %v3073_v44 }
0x1a98   :  { %3087 = vst.msk [vmem:[#allocation4] sm:$0xff] %vm356_vm4, %v3085_v45 }
0x1a99   :  { %v3078_v47 = vsel %vm3077_vm12, %v3829_v57, %v3074_v46 }
0x1a9a   :  { %v3080_v48 = vmul.f32 %v3078_v47, %v3046_v27 }
0x1a9c   :  { %v3083_v24 = vmul.f32 %v3081_v38, %v3080_v48 }
0x1a9e   :  { %v3086_v49 = vadd.f32 %v3084_v41, %v3083_v24 }
0x1aa0   :  { %3088 = vst.msk [vmem:[#allocation4 + $0x8] sm:$0xff] %vm356_vm4, %v3086_v49 }
0x1aa1   :  { %3101 = dma.vmem_to_hbm [thread:$0]  %s3094_s1, 256, %s3096_s2, [#allocation5], %s3858_s25, %s3858_s25, %s3859_s8  }
0x1aa2   :  { %3854 = dma.done.wait [#allocation5], 256  }
0x1aa3   :  { %3855 = vsyncadd [#allocation5], 4294967040 }
0x1aa4   :  { %3106 = vsyncpa [#allocation5], 1 }

</bundles_post_ra>
